<compile_context>
chip_gen: v7x
topology: tpu7x:2x2x1
jax: 0.10.0
libtpu: 0.0.40
codegen_flags: <defaults>
</compile_context>

<pallas_src>
import jax
import jax.numpy as jnp
from jax import lax
from jax.experimental import pallas as pl
from jax.experimental.pallas import tpu as pltpu


# ----------------------------------------------------------------------------
# Fused kernel: 3 x (conv3x3 'same' + bias + ReLU) for a tile of B images.
# ----------------------------------------------------------------------------
def _fused_conv_stack_kernel(hrow_ref, x_ref, w1_ref, w2_ref, w3_ref,
                             b1_ref, b2_ref, b3_ref, o_ref):
    # hrow_ref: (B*H, 1)              int32, within-image row index per flat row
    # x_ref   : (B, H, W*C0)          f32 , lane-flattened NHWC activations
    # wK_ref  : (3*W*C_{k-1}, W*C_k)  bf16, dy-concatenated band weights
    # bK_ref  : (1, W*C_k)            f32 , bias tiled across W
    # o_ref   : (B, H, W*C3)          f32
    B, H, WC3 = o_ref.shape
    M = B * H

    # Whole batch tile flattened to (B*H, W*C0): fills the MXU M dimension.
    act = x_ref[...].reshape(M, x_ref.shape[2])

    # Hoisted border masks (reused by all three layers).
    h_idx = hrow_ref[...]                 # (M, 1) int32
    is_top = h_idx == 0
    is_bot = h_idx == H - 1

    def conv3x3_relu(a, w_ref, b_ref):
        # Input-side dy shifts: a_prev[r] = a[r-1], a_next[r] = a[r+1].
        # Rows that would cross an image boundary (including the wrap across
        # batch elements inside the flattened (B*H) axis) are masked to the
        # implicit zero padding of the 'same' conv.
        a_prev = jnp.where(is_top, 0.0, pltpu.roll(a, shift=1, axis=0))
        a_next = jnp.where(is_bot, 0.0, pltpu.roll(a, shift=M - 1, axis=0))
        # ONE MXU matmul per layer: K = 3*W*Cin against the dy-concatenated
        # band matrix (dx shift + channel mixing folded into the matrix).
        cat = jnp.concatenate(
            [a_prev.astype(jnp.bfloat16),
             a.astype(jnp.bfloat16),
             a_next.astype(jnp.bfloat16)], axis=-1)
        y = jnp.dot(cat, w_ref[...], preferred_element_type=jnp.float32)
        return jnp.maximum(y + b_ref[...], 0.0)      # f32 epilogue (v5e-safe)

    a1 = conv3x3_relu(act, w1_ref, b1_ref)
    a2 = conv3x3_relu(a1, w2_ref, b2_ref)
    a3 = conv3x3_relu(a2, w3_ref, b3_ref)
    o_ref[...] = a3.reshape(B, H, WC3).astype(o_ref.dtype)


# ----------------------------------------------------------------------------
# Weight packing (wrapper-side, one-time): fold the dx tap + channel mixing of
# a 3x3 'same' conv into band matrices, one per dy tap, concatenated along K.
#   band_dy[w_in*Cin + cin, w_out*Cout + cout] = w[cout, cin, dy, w_in-w_out+1]
#   for |w_in - w_out| <= 1 (zero padding along W is implicit).
# Row order [dy=0 ; dy=1 ; dy=2] matches the in-kernel concat
# [x[h-1], x[h], x[h+1]].
# ----------------------------------------------------------------------------
def _pack_band_weights_cat(w_oihw, W, cin_pad=None):
    cout, cin = int(w_oihw.shape[0]), int(w_oihw.shape[1])
    if cin_pad is not None and cin_pad > cin:
        w_oihw = jnp.pad(w_oihw, ((0, 0), (0, cin_pad - cin), (0, 0), (0, 0)))
        cin = cin_pad
    wt = jnp.transpose(w_oihw, (2, 3, 1, 0)).astype(jnp.float32)  # (dy,dx,Cin,Cout)
    bands = []
    for dy in range(3):
        band = jnp.zeros((W * cin, W * cout), jnp.float32)
        for dx in range(3):
            sel = jnp.eye(W, W, k=1 - dx, dtype=jnp.float32)      # sel[w_in, w_out]
            blk = jnp.einsum('ab,co->acbo', sel, wt[dy, dx])      # (W,Cin,W,Cout)
            band = band + blk.reshape(W * cin, W * cout)
        bands.append(band)
    return jnp.concatenate(bands, axis=0)                          # (3*W*Cin, W*Cout)


# ----------------------------------------------------------------------------
# Deterministic parameter construction for the wrapped model
# (PruneWrapper just forwards to self.model; model = 3x conv3x3 + ReLU).
# ----------------------------------------------------------------------------
def init_prune_wrapper_params(key, channels=(3, 8, 16, 16), n_groups=2):
    params = []
    for li, (cin, cout) in enumerate(zip(channels[:-1], channels[1:])):
        key, kw, kb = jax.random.split(key, 3)
        scale = 1.0 / jnp.sqrt(cin * 9.0)
        w = jax.random.normal(kw, (cout, cin, 3, 3), jnp.float32) * scale
        b = jax.random.normal(kb, (cout,), jnp.float32) * 0.01
        layer = {"weight": w, "bias": b}
        if li > 0:
            # PruneWrapper registers these buffers on every conv after the
            # first; they are zeros/ones at init and do not affect forward().
            layer["group"] = jnp.zeros((n_groups, cout), jnp.float32)
            layer["mask"] = jnp.ones((cout, cin, 1, 1), jnp.float32)
        params.append(layer)
    return params


def prune_wrapper_forward(params, x_nchw, batch_tile=None):
    """Forward of PruneWrapper == forward of the wrapped conv model.

    x_nchw: (N, C, H, W) float32 (PyTorch layout). Returns (N, Cout, H, W).
    """
    assert len(params) == 3, "fused kernel is specialized to the 3-layer stack"
    N, C0, H, W = x_nchw.shape

    # Pad input channels so the layer-1 activation last dim is lane-dense.
    C0p = ((C0 + 7) // 8) * 8

    # Batch tile so M = bt*H >= 128 fills the MXU; keep grid >= 2 when possible
    # so v7x's two TensorCores both get work (grid axis is "parallel").
    if batch_tile is None:
        batch_tile = max(1, min(N, pl.cdiv(128, H)))
    bt = batch_tile
    Np = pl.cdiv(N, bt) * bt

    # NCHW -> NHWC, pad channels / batch, flatten to lane-dense (N, H, W*C0p).
    x = jnp.transpose(x_nchw, (0, 2, 3, 1))
    if C0p > C0:
        x = jnp.pad(x, ((0, 0), (0, 0), (0, 0), (0, C0p - C0)))
    if Np > N:
        x = jnp.pad(x, ((0, Np - N), (0, 0), (0, 0), (0, 0)))
    x = x.reshape(Np, H, W * C0p).astype(jnp.float32)

    w_cats, biases, chans = [], [], [C0p]
    for li, layer in enumerate(params):
        w = layer["weight"]
        if "mask" in layer:
            # apply_mask semantics: weight *= mask (all-ones at init -> no-op)
            w = w * layer["mask"]
        cout = int(w.shape[0])
        chans.append(cout)
        w_cats.append(
            _pack_band_weights_cat(w, W, cin_pad=C0p if li == 0 else None)
            .astype(jnp.bfloat16))
        biases.append(
            jnp.tile(layer["bias"].astype(jnp.float32), W).reshape(1, W * cout))

    C1, C2, C3 = chans[1], chans[2], chans[3]
    M = bt * H
    # Within-image row index for each flattened (b, h) row of a batch tile.
    hrow = jnp.tile(jnp.arange(H, dtype=jnp.int32), bt).reshape(M, 1)

    # True conv FLOPs (not the band-matrix FLOPs, which include zero taps).
    true_chans = [C0, C1, C2, C3]
    flops = 2 * N * H * W * 9 * sum(
        ci * co for ci, co in zip(true_chans[:-1], true_chans[1:]))
    bytes_accessed = (x.size * 4 + sum(w.size * 2 for w in w_cats)
                      + sum(b.size * 4 for b in biases)
                      + hrow.size * 4 + Np * H * W * C3 * 4)

    out = pl.pallas_call(
        _fused_conv_stack_kernel,
        out_shape=jax.ShapeDtypeStruct((Np, H, W * C3), jnp.float32),
        grid_spec=pltpu.PrefetchScalarGridSpec(
            num_scalar_prefetch=0,
            grid=(Np // bt,),
            in_specs=[
                pl.BlockSpec((M, 1), lambda n: (0, 0)),
                pl.BlockSpec((bt, H, W * C0p), lambda n: (n, 0, 0)),
                pl.BlockSpec((3 * W * C0p, W * C1), lambda n: (0, 0)),
                pl.BlockSpec((3 * W * C1, W * C2), lambda n: (0, 0)),
                pl.BlockSpec((3 * W * C2, W * C3), lambda n: (0, 0)),
                pl.BlockSpec((1, W * C1), lambda n: (0, 0)),
                pl.BlockSpec((1, W * C2), lambda n: (0, 0)),
                pl.BlockSpec((1, W * C3), lambda n: (0, 0)),
            ],
            out_specs=pl.BlockSpec((bt, H, W * C3), lambda n: (n, 0, 0)),
        ),
        compiler_params=pltpu.CompilerParams(
            dimension_semantics=("parallel",)),
        cost_estimate=pl.CostEstimate(
            flops=flops, transcendentals=0, bytes_accessed=bytes_accessed),
    )(hrow, x, w_cats[0], w_cats[1], w_cats[2], biases[0], biases[1], biases[2])

    out = out[:N]
    # (N, H, W*C3) -> (N, C3, H, W)
    return jnp.transpose(out.reshape(N, H, W, C3), (0, 3, 1, 2))


# ----------------------------------------------------------------------------
# Pure-XLA reference for correctness checking.
# ----------------------------------------------------------------------------
def _reference_forward(params, x_nchw):
    x = x_nchw
    for layer in params:
        w = layer["weight"]
        if "mask" in layer:
            w = w * layer["mask"]
        x = lax.conv_general_dilated(
            x, w, window_strides=(1, 1), padding="SAME",
            dimension_numbers=("NCHW", "OIHW", "NCHW"))
        x = jnp.maximum(x + layer["bias"].reshape(1, -1, 1, 1), 0.0)
    return x


if __name__ == "__main__":
    key = jax.random.PRNGKey(0)
    key, kx = jax.random.split(key)

    # Small CIFAR-like input, NCHW (PyTorch convention); batch 16 so the
    # batch-tiled grid is (2,) with M = 8*16 = 128 rows per MXU pass.
    x = jax.random.normal(kx, (16, 3, 16, 16), jnp.float32)

    params = init_prune_wrapper_params(key, channels=(3, 8, 16, 16), n_groups=2)

    out = prune_wrapper_forward(params, x)
    jax.block_until_ready(out)

    assert out.shape == (16, 16, 16, 16), out.shape
    assert bool(jnp.all(jnp.isfinite(out)))

    ref = _reference_forward(params, x)
    max_err = float(jnp.max(jnp.abs(out - ref)))
    assert max_err < 1e-1, f"max abs err vs reference: {max_err}"

    print("KERNEL_OK")
</pallas_src>

<mosaic_0001>
module attributes {stable_mosaic.version = 11 : i64} {
  func.func @_fused_conv_stack_kernel(%arg0: i32, %arg1: memref<128x1xi32, #tpu.memory_space<vmem>>, %arg2: memref<8x16x128xf32, #tpu.memory_space<vmem>>, %arg3: memref<384x128xbf16, #tpu.memory_space<vmem>>, %arg4: memref<384x256xbf16, #tpu.memory_space<vmem>>, %arg5: memref<768x256xbf16, #tpu.memory_space<vmem>>, %arg6: memref<1x128xf32, #tpu.memory_space<vmem>>, %arg7: memref<1x256xf32, #tpu.memory_space<vmem>>, %arg8: memref<1x256xf32, #tpu.memory_space<vmem>>, %arg9: memref<8x16x256xf32, #tpu.memory_space<vmem>>) attributes {dimension_semantics = [#tpu.dimension_semantics<parallel>], iteration_bounds = array<i64: 2>, scalar_prefetch = 0 : i64, scratch_operands = 0 : i64, tpu.core_type = #tpu.core_type<tc>, window_params = [{pipeline_mode = #tpu.pipeline_mode<synchronous>, transform_indices = @transform_0, window_bounds = array<i64: 128, 1>}, {transform_indices = @transform_1, window_bounds = array<i64: 8, 16, 128>}, {pipeline_mode = #tpu.pipeline_mode<synchronous>, transform_indices = @transform_2, window_bounds = array<i64: 384, 128>}, {pipeline_mode = #tpu.pipeline_mode<synchronous>, transform_indices = @transform_3, window_bounds = array<i64: 384, 256>}, {pipeline_mode = #tpu.pipeline_mode<synchronous>, transform_indices = @transform_4, window_bounds = array<i64: 768, 256>}, {pipeline_mode = #tpu.pipeline_mode<synchronous>, transform_indices = @transform_5, window_bounds = array<i64: 1, 128>}, {pipeline_mode = #tpu.pipeline_mode<synchronous>, transform_indices = @transform_6, window_bounds = array<i64: 1, 256>}, {pipeline_mode = #tpu.pipeline_mode<synchronous>, transform_indices = @transform_7, window_bounds = array<i64: 1, 256>}, {transform_indices = @transform_8, window_bounds = array<i64: 8, 16, 256>}]} {
    %c0 = arith.constant 0 : index
    %c0_0 = arith.constant 0 : index
    %c0_1 = arith.constant 0 : index
    %0 = vector.load %arg2[%c0, %c0_0, %c0_1] : memref<8x16x128xf32, #tpu.memory_space<vmem>>, vector<8x16x128xf32>
    %1 = vector.shape_cast %0 : vector<8x16x128xf32> to vector<128x128xf32>
    %c0_2 = arith.constant 0 : index
    %c0_3 = arith.constant 0 : index
    %2 = vector.load %arg1[%c0_2, %c0_3] : memref<128x1xi32, #tpu.memory_space<vmem>>, vector<128x1xi32>
    %c0_i32 = arith.constant 0 : i32
    %3 = vector.broadcast %c0_i32 : i32 to vector<128x1xi32>
    %4 = arith.cmpi eq, %2, %3 : vector<128x1xi32>
    %c15_i32 = arith.constant 15 : i32
    %5 = vector.broadcast %c15_i32 : i32 to vector<128x1xi32>
    %6 = arith.cmpi eq, %2, %5 : vector<128x1xi32>
    %c1_i32 = arith.constant 1 : i32
    %7 = tpu.dynamic_rotate %1 by %c1_i32 dim 0 : vector<128x128xf32>, i32 -> vector<128x128xf32>
    %cst = arith.constant 0.000000e+00 : f32
    %8 = vector.shape_cast %4 : vector<128x1xi1> to vector<128x1xi1>
    %9 = vector.broadcast %8 : vector<128x1xi1> to vector<128x128xi1>
    %10 = vector.broadcast %cst : f32 to vector<128x128xf32>
    %11 = arith.select %9, %10, %7 : vector<128x128xi1>, vector<128x128xf32>
    %c127_i32 = arith.constant 127 : i32
    %12 = tpu.dynamic_rotate %1 by %c127_i32 dim 0 : vector<128x128xf32>, i32 -> vector<128x128xf32>
    %cst_4 = arith.constant 0.000000e+00 : f32
    %13 = vector.shape_cast %6 : vector<128x1xi1> to vector<128x1xi1>
    %14 = vector.broadcast %13 : vector<128x1xi1> to vector<128x128xi1>
    %15 = vector.broadcast %cst_4 : f32 to vector<128x128xf32>
    %16 = arith.select %14, %15, %12 : vector<128x128xi1>, vector<128x128xf32>
    %17 = arith.truncf %11 : vector<128x128xf32> to vector<128x128xbf16>
    %18 = arith.truncf %1 : vector<128x128xf32> to vector<128x128xbf16>
    %19 = arith.truncf %16 : vector<128x128xf32> to vector<128x128xbf16>
    %20 = tpu.concatenate %17, %18, %19 in 1 : vector<128x128xbf16>, vector<128x128xbf16>, vector<128x128xbf16> -> vector<128x384xbf16>
    %c0_5 = arith.constant 0 : index
    %c0_6 = arith.constant 0 : index
    %21 = vector.load %arg3[%c0_5, %c0_6] : memref<384x128xbf16, #tpu.memory_space<vmem>>, vector<384x128xbf16>
    %cst_7 = arith.constant dense<0.000000e+00> : vector<128x128xf32>
    %22 = tpu.matmul %20, %21, %cst_7 {dimension_numbers = #tpu.dot_dimension_numbers<[1], [0], [0], [1], [0, 0, 1, 1], [], []>} : vector<128x384xbf16>, vector<384x128xbf16>, vector<128x128xf32> -> vector<128x128xf32>
    %c0_8 = arith.constant 0 : index
    %c0_9 = arith.constant 0 : index
    %23 = vector.load %arg6[%c0_8, %c0_9] : memref<1x128xf32, #tpu.memory_space<vmem>>, vector<1x128xf32>
    %24 = vector.broadcast %23 : vector<1x128xf32> to vector<128x128xf32>
    %25 = arith.addf %22, %24 : vector<128x128xf32>
    %cst_10 = arith.constant 0.000000e+00 : f32
    %26 = vector.broadcast %cst_10 : f32 to vector<128x128xf32>
    %27 = arith.maximumf %25, %26 : vector<128x128xf32>
    %c1_i32_11 = arith.constant 1 : i32
    %28 = tpu.dynamic_rotate %27 by %c1_i32_11 dim 0 : vector<128x128xf32>, i32 -> vector<128x128xf32>
    %cst_12 = arith.constant 0.000000e+00 : f32
    %29 = vector.shape_cast %4 : vector<128x1xi1> to vector<128x1xi1>
    %30 = vector.broadcast %29 : vector<128x1xi1> to vector<128x128xi1>
    %31 = vector.broadcast %cst_12 : f32 to vector<128x128xf32>
    %32 = arith.select %30, %31, %28 : vector<128x128xi1>, vector<128x128xf32>
    %c127_i32_13 = arith.constant 127 : i32
    %33 = tpu.dynamic_rotate %27 by %c127_i32_13 dim 0 : vector<128x128xf32>, i32 -> vector<128x128xf32>
    %cst_14 = arith.constant 0.000000e+00 : f32
    %34 = vector.shape_cast %6 : vector<128x1xi1> to vector<128x1xi1>
    %35 = vector.broadcast %34 : vector<128x1xi1> to vector<128x128xi1>
    %36 = vector.broadcast %cst_14 : f32 to vector<128x128xf32>
    %37 = arith.select %35, %36, %33 : vector<128x128xi1>, vector<128x128xf32>
    %38 = arith.truncf %32 : vector<128x128xf32> to vector<128x128xbf16>
    %39 = arith.truncf %27 : vector<128x128xf32> to vector<128x128xbf16>
    %40 = arith.truncf %37 : vector<128x128xf32> to vector<128x128xbf16>
    %41 = tpu.concatenate %38, %39, %40 in 1 : vector<128x128xbf16>, vector<128x128xbf16>, vector<128x128xbf16> -> vector<128x384xbf16>
    %c0_15 = arith.constant 0 : index
    %c0_16 = arith.constant 0 : index
    %42 = vector.load %arg4[%c0_15, %c0_16] : memref<384x256xbf16, #tpu.memory_space<vmem>>, vector<384x256xbf16>
    %cst_17 = arith.constant dense<0.000000e+00> : vector<128x256xf32>
    %43 = tpu.matmul %41, %42, %cst_17 {dimension_numbers = #tpu.dot_dimension_numbers<[1], [0], [0], [1], [0, 0, 1, 1], [], []>} : vector<128x384xbf16>, vector<384x256xbf16>, vector<128x256xf32> -> vector<128x256xf32>
    %c0_18 = arith.constant 0 : index
    %c0_19 = arith.constant 0 : index
    %44 = vector.load %arg7[%c0_18, %c0_19] : memref<1x256xf32, #tpu.memory_space<vmem>>, vector<1x256xf32>
    %45 = vector.broadcast %44 : vector<1x256xf32> to vector<128x256xf32>
    %46 = arith.addf %43, %45 : vector<128x256xf32>
    %cst_20 = arith.constant 0.000000e+00 : f32
    %47 = vector.broadcast %cst_20 : f32 to vector<128x256xf32>
    %48 = arith.maximumf %46, %47 : vector<128x256xf32>
    %c1_i32_21 = arith.constant 1 : i32
    %49 = tpu.dynamic_rotate %48 by %c1_i32_21 dim 0 : vector<128x256xf32>, i32 -> vector<128x256xf32>
    %cst_22 = arith.constant 0.000000e+00 : f32
    %50 = vector.shape_cast %4 : vector<128x1xi1> to vector<128x1xi1>
    %51 = vector.broadcast %50 : vector<128x1xi1> to vector<128x256xi1>
    %52 = vector.broadcast %cst_22 : f32 to vector<128x256xf32>
    %53 = arith.select %51, %52, %49 : vector<128x256xi1>, vector<128x256xf32>
    %c127_i32_23 = arith.constant 127 : i32
    %54 = tpu.dynamic_rotate %48 by %c127_i32_23 dim 0 : vector<128x256xf32>, i32 -> vector<128x256xf32>
    %cst_24 = arith.constant 0.000000e+00 : f32
    %55 = vector.shape_cast %6 : vector<128x1xi1> to vector<128x1xi1>
    %56 = vector.broadcast %55 : vector<128x1xi1> to vector<128x256xi1>
    %57 = vector.broadcast %cst_24 : f32 to vector<128x256xf32>
    %58 = arith.select %56, %57, %54 : vector<128x256xi1>, vector<128x256xf32>
    %59 = arith.truncf %53 : vector<128x256xf32> to vector<128x256xbf16>
    %60 = arith.truncf %48 : vector<128x256xf32> to vector<128x256xbf16>
    %61 = arith.truncf %58 : vector<128x256xf32> to vector<128x256xbf16>
    %62 = tpu.concatenate %59, %60, %61 in 1 : vector<128x256xbf16>, vector<128x256xbf16>, vector<128x256xbf16> -> vector<128x768xbf16>
    %c0_25 = arith.constant 0 : index
    %c0_26 = arith.constant 0 : index
    %63 = vector.load %arg5[%c0_25, %c0_26] : memref<768x256xbf16, #tpu.memory_space<vmem>>, vector<768x256xbf16>
    %cst_27 = arith.constant dense<0.000000e+00> : vector<128x256xf32>
    %64 = tpu.matmul %62, %63, %cst_27 {dimension_numbers = #tpu.dot_dimension_numbers<[1], [0], [0], [1], [0, 0, 1, 1], [], []>} : vector<128x768xbf16>, vector<768x256xbf16>, vector<128x256xf32> -> vector<128x256xf32>
    %c0_28 = arith.constant 0 : index
    %c0_29 = arith.constant 0 : index
    %65 = vector.load %arg8[%c0_28, %c0_29] : memref<1x256xf32, #tpu.memory_space<vmem>>, vector<1x256xf32>
    %66 = vector.broadcast %65 : vector<1x256xf32> to vector<128x256xf32>
    %67 = arith.addf %64, %66 : vector<128x256xf32>
    %cst_30 = arith.constant 0.000000e+00 : f32
    %68 = vector.broadcast %cst_30 : f32 to vector<128x256xf32>
    %69 = arith.maximumf %67, %68 : vector<128x256xf32>
    %70 = vector.shape_cast %69 : vector<128x256xf32> to vector<8x16x256xf32>
    %c0_31 = arith.constant 0 : index
    %c0_32 = arith.constant 0 : index
    %c0_33 = arith.constant 0 : index
    %71 = vector.load %arg9[%c0_31, %c0_32, %c0_33] : memref<8x16x256xf32, #tpu.memory_space<vmem>>, vector<8x16x256xf32>
    tpu.vector_store %arg9[%c0_31, %c0_32, %c0_33], %70 {strides = array<i32>} : memref<8x16x256xf32, #tpu.memory_space<vmem>>, vector<8x16x256xf32>,
    return
  }
  func.func @transform_0(%arg0: i32) -> (i32, i32) {
    %c0_i32 = arith.constant 0 : i32
    %c0_i32_0 = arith.constant 0 : i32
    %c0_i32_1 = arith.constant 0 : i32
    return %c0_i32, %c0_i32_0 : i32, i32
  }
  func.func @transform_1(%arg0: i32) -> (i32, i32, i32) {
    %c0_i32 = arith.constant 0 : i32
    %c0_i32_0 = arith.constant 0 : i32
    %c0_i32_1 = arith.constant 0 : i32
    return %arg0, %c0_i32, %c0_i32_0 : i32, i32, i32
  }
  func.func @transform_2(%arg0: i32) -> (i32, i32) {
    %c0_i32 = arith.constant 0 : i32
    %c0_i32_0 = arith.constant 0 : i32
    %c0_i32_1 = arith.constant 0 : i32
    return %c0_i32, %c0_i32_0 : i32, i32
  }
  func.func @transform_3(%arg0: i32) -> (i32, i32) {
    %c0_i32 = arith.constant 0 : i32
    %c0_i32_0 = arith.constant 0 : i32
    %c0_i32_1 = arith.constant 0 : i32
    return %c0_i32, %c0_i32_0 : i32, i32
  }
  func.func @transform_4(%arg0: i32) -> (i32, i32) {
    %c0_i32 = arith.constant 0 : i32
    %c0_i32_0 = arith.constant 0 : i32
    %c0_i32_1 = arith.constant 0 : i32
    return %c0_i32, %c0_i32_0 : i32, i32
  }
  func.func @transform_5(%arg0: i32) -> (i32, i32) {
    %c0_i32 = arith.constant 0 : i32
    %c0_i32_0 = arith.constant 0 : i32
    %c0_i32_1 = arith.constant 0 : i32
    return %c0_i32, %c0_i32_0 : i32, i32
  }
  func.func @transform_6(%arg0: i32) -> (i32, i32) {
    %c0_i32 = arith.constant 0 : i32
    %c0_i32_0 = arith.constant 0 : i32
    %c0_i32_1 = arith.constant 0 : i32
    return %c0_i32, %c0_i32_0 : i32, i32
  }
  func.func @transform_7(%arg0: i32) -> (i32, i32) {
    %c0_i32 = arith.constant 0 : i32
    %c0_i32_0 = arith.constant 0 : i32
    %c0_i32_1 = arith.constant 0 : i32
    return %c0_i32, %c0_i32_0 : i32, i32
  }
  func.func @transform_8(%arg0: i32) -> (i32, i32, i32) {
    %c0_i32 = arith.constant 0 : i32
    %c0_i32_0 = arith.constant 0 : i32
    %c0_i32_1 = arith.constant 0 : i32
    return %arg0, %c0_i32, %c0_i32_0 : i32, i32, i32
  }
}

</mosaic_0001>

<bundles_post_ra>
// kernel: tpu_custom_call.1
= control target key start
LH: loop header
LB: loop body
LE: loop exit
PB: predicated region body
PF: predicated region fallthrough
CT: control target
= control target key end

     0   :  { %s6457_s0 = inlined_call_operand.vmem [shape: s32[128,1], index: 0, kind: input, shape index: {}]   ;;  %s6458_s1 = inlined_call_operand.hbm [shape: f32[16,16,128], index: 1, kind: input, shape index: {}]   ;;  %s6459_s2 = inlined_call_operand.hbm [shape: bf16[384,128], index: 2, kind: input, shape index: {}]   ;;  %s6460_s3 = inlined_call_operand.hbm [shape: bf16[384,256], index: 3, kind: input, shape index: {}]   ;;  %s6461_s4 = inlined_call_operand.hbm [shape: bf16[768,256], index: 4, kind: input, shape index: {}]   ;;  %s6462_s5 = inlined_call_operand.vmem [shape: f32[1,128], index: 5, kind: input, shape index: {}]   ;;  %s6463_s6 = inlined_call_operand.vmem [shape: f32[1,256], index: 6, kind: input, shape index: {}]   ;;  %s6464_s7 = inlined_call_operand.vmem [shape: f32[1,256], index: 7, kind: input, shape index: {}]   ;;  %s6465_s8 = inlined_call_operand.hbm [shape: f32[16,16,256], index: 8, kind: output, shape index: {}]  }
   0x1   :  { %6578 = sst [smem:[#allocation85_spill]] %s6459_s2 }
   0x2   :  { %13 = vsyncpa [#allocation3], 0 }
   0x3   :  { %15 = vsyncpa [#allocation3 + $0x1], 0 }
   0x4   :  { %16 = vsyncpa [#allocation6], 0 }
   0x5   :  { %17 = vsyncpa [#allocation9], 0 }
   0x6   :  { %18 = vsyncpa [#allocation4], 0 }
   0x7   :  { %20 = vsyncpa [#allocation4 + $0x1], 0  ;;  %s4580_s27 = smov 0   ;;  %s4582_s28 = smov 0  }
   0x8   :  { %s4584_s29 = smov 0   ;;  %s4586_s30 = smov 0  }
   0x9 LB: > { %6579 = sst [smem:[#allocation15_spill]] %s4509_s27  ;;  %s4601_s9 = sadd.s32 4294967295, %s4521_s30   ;;  %s4521_s30 = sphi %s4586_s30, %s6958_s30   ;;  %s4517_s29 = sphi %s4584_s29, %s6957_s29   ;;  %s4513_s28 = sphi %s4582_s28, %s6956_s28   ;;  %s4509_s27 = sphi %s4580_s27, %s6955_s27  }
   0xa   : > { %s3155_s10 = sadd.s32 4294967294, %s4521_s30   ;;  %p67_p0 = scmp.ne.s32.totalorder %s4513_s28, %s4509_s27 }
   0xb   : > { %p6466_p1 = scmp.eq.s32.totalorder %s4601_s9, 0  ;;  %p223_p3 = scmp.eq.s32.totalorder %s3155_s10, 1 }
   0xc   : > { %p3156_p5 = scmp.ge.s32.totalorder %s4521_s30, 1  ;;  %p230_p7 = scmp.lt.s32.totalorder %s4521_s30, 3 }
   0xd   : > { %p4610_p4 = por %p6466_p1, %p67_p0  ;;  %p4615_p6 = por %p223_p3, %p67_p0 }
   0xe   : > { %p4620_p8 = pnand %p3156_p5, %p230_p7  ;;  %s4523_s14 = smov [#allocation5]  }
   0xf   : > { %s6580_s11 = scalar_select %p4610_p4, 1, 0 }
  0x10   : > { %s6581_s12 = scalar_select %p4615_p6, 1, 0 }
  0x11   : > { %s6583_s13 = scalar_select %p4620_p8, 1, 0 }
  0x12   : > { %6582 = sst [smem:[#allocation16_spill]] %s6581_s12  ;;  %s245_s15 = sshll.u32 %s4523_s14, 4  ;;  %s4624_s15 = int_to_ptr.vmem [resolvable:$true] %s245_s15 }
  0x13   : > { %p4022_p9 = pneg %p4620_p8  ;;  %s4524_s17 = smov [#allocation7]  }
  0x14   : > { %s258_s18 = sshll.u32 %s4524_s17, 4  ;;  %s6585_s2 = sld [smem:[#allocation85_spill]]  ;;  %s4635_s18 = int_to_ptr.vmem [resolvable:$true] %s258_s18 }
  0x15   : > { %p4631_p11 = pnand %p4022_p9, %p6466_p1 }
  0x17   : > { %p4645_p13 = pneg %p4631_p11 }
  0x1a   : > { %s4333_s21 = scalar_lea.hbm %s6585_s2, 3072 }
  0x1b   : > { %p4334_p12 = scmp.ne.s32.totalorder %s6585_s2, %s4333_s21  ;;  %p4340_p5 = scmp.lt.u32.totalorder %s4333_s21, %s6585_s2 }
  0x1d   : > { %p4336_p0 = pnand %p4645_p13, %p4334_p12 }
  0x1f   : > { %p4337_p3 = pneg %p4336_p0 }
  0x21   : > { %p4342_p7 = pnand %p4340_p5, %p4337_p3 }
  0x23   : > { %4345 = shalt.err (!%p4342_p7)
}
  0x24   : > { %s4346_s10 = scalar_lea.vmem %s4624_s15, 3072  ;;  %p4354_p2 = scmp.lt.s32.totalorder %s4624_s15, %s4624_s15 }
  0x25   : > { %p4347_p9 = scmp.ne.s32.totalorder %s4624_s15, %s4346_s10  ;;  %p4355_p6 = scmp.lt.s32.totalorder %s4346_s10, %s4346_s10 }
  0x27   : > { %p4349_p10 = pnand %p4347_p9, %p4645_p13  ;;  %p4356_p12 = por %p4355_p6, %p4354_p2 }
  0x29   : > { %p4350_p1 = pneg %p4349_p10 }
  0x2b   : > { %p4357_p0 = pnand %p4356_p12, %p4350_p1 }
  0x2d   : > { %4360 = shalt.err (!%p4357_p0)
}
  0x2e   : > { %s4525_s14 = smov 64   ;;  %s4526_s17 = smov 4  }
  0x2f   : > { %4025 = dma.hbm_to_vmem [thread:$0]  (!%p4631_p11), %s6585_s2, 3072, %s4624_s15, [#allocation6], %s4525_s14, %s4525_s14, %s4526_s17  }
  0x30   : > { %s4361_s23 = scalar_lea.hbm %s6460_s3, 6144 }
  0x31   : > { %p4362_p2 = scmp.ne.s32.totalorder %s6460_s3, %s4361_s23  ;;  %p4368_p10 = scmp.lt.u32.totalorder %s4361_s23, %s6460_s3 }
  0x33   : > { %p4364_p1 = pnand %p4362_p2, %p4645_p13 }
  0x35   : > { %p4365_p6 = pneg %p4364_p1 }
  0x37   : > { %p4370_p3 = pnand %p4368_p10, %p4365_p6 }
  0x39   : > { %4373 = shalt.err (!%p4370_p3)
}
  0x3a   : > { %s4374_s15 = scalar_lea.vmem %s4635_s18, 6144  ;;  %p4382_p12 = scmp.lt.s32.totalorder %s4635_s18, %s4635_s18 }
  0x3b   : > { %p4375_p5 = scmp.ne.s32.totalorder %s4635_s18, %s4374_s15  ;;  %p4383_p0 = scmp.lt.s32.totalorder %s4374_s15, %s4374_s15 }
  0x3d   : > { %p4377_p7 = pnand %p4375_p5, %p4645_p13  ;;  %p4384_p2 = por %p4383_p0, %p4382_p12 }
  0x3f   : > { %p4378_p9 = pneg %p4377_p7 }
  0x41   : > { %p4385_p1 = pnand %p4384_p2, %p4378_p9 }
  0x43   : > { %4388 = shalt.err (!%p4385_p1)
}
  0x44   : > { %s4527_s14 = smov 128   ;;  %s4528_s12 = smov 8  }
  0x45   : > { %4028 = dma.hbm_to_vmem [thread:$0]  (!%p4631_p11), %s6460_s3, 6144, %s4635_s18, [#allocation6], %s4527_s14, %s4527_s14, %s4528_s12  }
  0x46   : > { %s4529_s20 = smov [#allocation8]   ;;  %s4693_s22 = sadd.s32 1, %s4521_s30  }
  0x47   : > { %s271_s21 = sshll.u32 %s4529_s20, 4  ;;  %s4389_s26 = scalar_lea.hbm %s6461_s4, 12288  ;;  %s272_s21 = int_to_ptr.vmem [resolvable:$true] %s271_s21 }
  0x48   : > { %p4390_p6 = scmp.ne.s32.totalorder %s6461_s4, %s4389_s26  ;;  %p4396_p5 = scmp.lt.u32.totalorder %s4389_s26, %s6461_s4 }
  0x4a   : > { %p4392_p10 = pnand %p4390_p6, %p4645_p13 }
  0x4c   : > { %p4393_p3 = pneg %p4392_p10 }
  0x4e   : > { %p4398_p7 = pnand %p4396_p5, %p4393_p3 }
  0x50   : > { %4401 = shalt.err (!%p4398_p7)
}
  0x51   : > { %s4402_s18 = scalar_lea.vmem %s272_s21, 12288  ;;  %p4410_p2 = scmp.lt.s32.totalorder %s272_s21, %s272_s21 }
  0x52   : > { %p4403_p9 = scmp.ne.s32.totalorder %s272_s21, %s4402_s18  ;;  %p4411_p1 = scmp.lt.s32.totalorder %s4402_s18, %s4402_s18 }
  0x54   : > { %p4405_p12 = pnand %p4403_p9, %p4645_p13  ;;  %p4412_p4 = por %p4411_p1, %p4410_p2 }
  0x56   : > { %p4406_p0 = pneg %p4405_p12 }
  0x58   : > { %p4413_p8 = pnand %p4412_p4, %p4406_p0 }
  0x5a   : > { %4416 = shalt.err (!%p4413_p8)
}
  0x5b   : > { %4031 = dma.hbm_to_vmem [thread:$0]  (!%p4631_p11), %s6461_s4, 12288, %s272_s21, [#allocation9], %s4527_s14, %s4527_s14, %s4528_s12  }
  0x5c   : > { %s51_s24 = ssub.s32 %s4521_s30, %s4693_s22  ;;  %s54_s16 = sadd.s32 1, %s4517_s29 }
  0x5d   : > { %p52_p4 = scmp.eq.s32.totalorder %s51_s24, 0  ;;  %p61_p8 = scmp.ne.s32.totalorder %s4517_s29, %s4513_s28 }
  0x5e   : > { %p62_p13 = scmp.eq.s32.totalorder %s4521_s30, 0  ;;  %p4043_p6 = scmp.lt.s32.totalorder %s4521_s30, 2 }
  0x5f   : > { %s4724_s17 = scalar_select %p52_p4, %s4517_s29, %s54_s16  }
  0x60   : > { %p63_p10 = por %p62_p13, %p61_p8  ;;  %p6587_p3 = scmp.eq.s32.totalorder %s4601_s9, 1 }
  0x61   : > { %s294_s20 = sand.u32 1, %s4517_s29   ;;  %s3667_s23 = sshll.u32 %s4521_s30, 11 }
  0x62   : > { %p4728_p5 = por %p6587_p3, %p61_p8  ;;  %s3161_s25 = sshll.u32 %s294_s20, 7 }
  0x63   : > { %s4737_s21 = scalar_lea.hbm %s6458_s1, %s3667_s23  ;;  %s298_s15 = scalar_lea.vmem [#allocation2], %s3161_s25 }
  0x64   : > { %s306_s18 = sshll.u32 %s298_s15, 4  ;;  %p4739_p11 = pnand %p4043_p6, %p63_p10  ;;  %s4743_s18 = int_to_ptr.vmem [resolvable:$true] %s306_s18 }
  0x65   : > { %s4745_s27 = scalar_lea.sflag [#allocation3], %s294_s20  ;;  %s4417_s24 = scalar_lea.hbm %s4737_s21, 2048 }
  0x66   : > { %p4418_p7 = scmp.ne.s32.totalorder %s4737_s21, %s4417_s24  ;;  %p4419_p9 = pneg %p4739_p11 }
  0x67   : > { %s4422_s25 = scalar_lea.hbm %s6458_s1, 4096  ;;  %p4423_p2 = scmp.lt.u32.totalorder %s4737_s21, %s6458_s1 }
  0x68   : > { %p4420_p12 = pnand %p4419_p9, %p4418_p7  ;;  %p4424_p1 = scmp.lt.u32.totalorder %s4422_s25, %s4417_s24 }
  0x69   : > { %p4426_p8 = scmp.lt.u32.totalorder %s4417_s24, %s4737_s21 }
  0x6a   : > { %p4421_p0 = pneg %p4420_p12  ;;  %p4425_p4 = por %p4424_p1, %p4423_p2 }
  0x6c   : > { %p4427_p13 = por %p4426_p8, %p4425_p4 }
  0x6e   : > { %p4428_p6 = pnand %p4427_p13, %p4421_p0 }
  0x70   : > { %4431 = shalt.err (!%p4428_p6)
}
  0x71   : > { %s4432_s20 = scalar_lea.vmem %s4743_s18, 2048  ;;  %s4530_s15 = smov [#allocation2]  }
  0x72   : > { %p4433_p10 = scmp.ne.s32.totalorder %s4743_s18, %s4432_s20  ;;  %s4437_s16 = sshll.u32 %s4530_s15, 4  ;;  %s4438_s16 = int_to_ptr.vmem [resolvable:$false] %s4437_s16 }
  0x73   : > { %s4439_s23 = scalar_lea.vmem %s4438_s16, 4096  ;;  %p4440_p12 = scmp.lt.s32.totalorder %s4743_s18, %s4438_s16 }
  0x74   : > { %p4435_p3 = pnand %p4433_p10, %p4419_p9  ;;  %p4441_p2 = scmp.lt.s32.totalorder %s4439_s23, %s4432_s20 }
  0x76   : > { %p4436_p7 = pneg %p4435_p3  ;;  %p4442_p1 = por %p4441_p2, %p4440_p12 }
  0x78   : > { %p4443_p4 = pnand %p4442_p1, %p4436_p7 }
  0x7a   : > { %4446 = shalt.err (!%p4443_p4)
}
  0x7b   : > { %4035 = dma.hbm_to_vmem [thread:$0]  (!%p4739_p11), %s4737_s21, 2048, %s4743_s18, %s4745_s27, %s4527_s14, %s4527_s14, %s4528_s12  }
  0x7c   : > { %p6590_p9 = scmp.ne.s32.totalorder %s6583_s13, 0 }
  0x7e   : > { %318 = sbr.rel (%p6590_p9) target bundleno = 1297 (0x511), region = 52 }
  0x85   : > { %s4779_s24 = sand.u32 1, %s4513_s28   ;;  %p6591_p0 = scmp.ne.s32.totalorder %s6580_s11, 0 }
  0x86   : > { %s3166_s25 = sshll.u32 %s4779_s24, 7  ;;  %s321_s26 = scalar_lea.sflag [#allocation3], %s4779_s24 }
  0x87   : > { %s4783_s10 = scalar_lea.vmem [#allocation2], %s3166_s25 }
  0x88   : > { %4492 = dma.done.wait (%p6591_p0), %s321_s26, 2048  }
  0x89   : > { %4494 = vsyncadd (%p6591_p0), %s321_s26, 4294965248  ;;  %p6592_p11 = scmp.eq.s32.totalorder %s4601_s9, 0 }
  0x8b   : > { %4496 = dma.done.wait (%p6592_p11), [#allocation6], 9216   ;;  %p6593_p8 = pmov %p6592_p11 }
  0x8d   : > { %4498 = vsyncadd (%p6593_p8), [#allocation6], 4294958080  ;;  %p6594_p13 = pmov %p6593_p8 }
  0x8e   : > { %p6595_p6 = pmov %p6593_p8 }
  0x8f   : > { %4500 = dma.done.wait (%p6594_p13), [#allocation9], 12288  }
  0x90   : > { %4502 = vsyncadd (%p6595_p6), [#allocation9], 4294955008  ;;  %v6487_v0 = vmov 0   ;;  %v4802_v1 = vld [vmem:[%s6457_s0 + $0x10] sm:$0xff]  ;;  %v388_v2 = vld [vmem:[%s6457_s0] sm:$0xff]  ;;  %v452_v38 = vlaneseq  ;;  %s3170_s15 = sshll.u32 %s4779_s24, 8 }
  0x91   : > { %4091 = vset.pattern.permute.xlu1 %v6487_v0  ;;  %4090 = vset.pattern.permute.xlu0 %v6487_v0  ;;  %v4810_v3 = vld [vmem:[%s6457_s0 + $0x18] sm:$0xff]  ;;  %vm406_vm0 = vcmp.eq.s32.totalorder %v4802_v1, 0  ;;  %vm404_vm1 = vcmp.eq.s32.totalorder %v388_v2, 0  ;;  %v389_v4 = vld [vmem:[%s6457_s0 + $0x8] sm:$0xff]  ;;  %v4827_v8 = vld [vmem:[%s6457_s0 + $0x20] sm:$0xff]  ;;  %vm420_vm11 = vcmp.eq.s32.totalorder %v388_v2, 15 }
  0x92   : > { %vm407_vm2 = vcmp.eq.s32.totalorder %v4810_v3, 0  ;;  %v473_v5 = vsel %vm406_vm0, 1, %v6487_v0  ;;  %v471_v6 = vsel %vm404_vm1, 1, %v6487_v0  ;;  %vm405_vm3 = vcmp.eq.s32.totalorder %v389_v4, 0  ;;  %v4822_v7 = vld [vmem:[%s6457_s0 + $0x28] sm:$0xff]  ;;  %v4836_v11 = vld [vmem:[%s6457_s0 + $0x38] sm:$0xff] }
  0x93   : > { %494 = vperm.xlu1 %4091, %v473_v5   ;;  %488 = vperm.xlu0 %4090, %v471_v6   ;;  %v474_v9 = vsel %vm407_vm2, 1, %v6487_v0  ;;  %v472_v10 = vsel %vm405_vm3, 1, %v6487_v0  ;;  %vm409_vm4 = vcmp.eq.s32.totalorder %v4822_v7, 0  ;;  %vm408_vm5 = vcmp.eq.s32.totalorder %v4827_v8, 0  ;;  %v4841_v12 = vld [vmem:[%s6457_s0 + $0x30] sm:$0xff]  ;;  %v4092_v15 = vld [vmem:[#allocation5 + $0x40] sm:$0xff]  }
  0x94   : > { %v476_v13 = vsel %vm409_vm4, 1, %v6487_v0  ;;  %v475_v14 = vsel %vm408_vm5, 1, %v6487_v0  ;;  %vm411_vm6 = vcmp.eq.s32.totalorder %v4836_v11, 0  ;;  %vm410_vm7 = vcmp.eq.s32.totalorder %v4841_v12, 0  ;;  %v4093_v16 = vld [vmem:[#allocation5] sm:$0xff]   ;;  %v4850_v17 = vld [vmem:[%s6457_s0 + $0x48] sm:$0xff]  ;;  %3702 = vmatprep.subr.bf16.mxu0 %v4092_v15 }
  0x95   : > { %v4855_v18 = vld [vmem:[%s6457_s0 + $0x40] sm:$0xff]  ;;  %v478_v19 = vsel %vm411_vm6, 1, %v6487_v0  ;;  %v477_v20 = vsel %vm410_vm7, 1, %v6487_v0  ;;  %vm413_vm8 = vcmp.eq.s32.totalorder %v4850_v17, 0  ;;  %3703 = vmatpush3.bf16.msra.mxu0 %v4093_v16  ;;  %v4094_v21 = vld [vmem:[#allocation5 + $0x48] sm:$0xff]   ;;  %vm421_vm10 = vcmp.eq.s32.totalorder %v389_v4, 15 }
  0x96   : > { %vm412_vm9 = vcmp.eq.s32.totalorder %v4855_v18, 0  ;;  %v4095_v22 = vld [vmem:[#allocation5 + $0x8] sm:$0xff]   ;;  %v480_v23 = vsel %vm413_vm8, 1, %v6487_v0  ;;  %v4866_v25 = vld [vmem:[%s6457_s0 + $0x58] sm:$0xff]  ;;  %3704 = vmatprep.subr.bf16.mxu0 %v4094_v21  ;;  %v4871_v26 = vld [vmem:[%s6457_s0 + $0x50] sm:$0xff]  ;;  %v601_v28 = vsel %vm421_vm10, 1, %v6487_v0 }
  0x97   : > { %497 = vperm.xlu1 %4091, %v474_v9   ;;  %491 = vperm.xlu0 %4090, %v472_v10   ;;  %v479_v24 = vsel %vm412_vm9, 1, %v6487_v0  ;;  %v4096_v27 = vld [vmem:[#allocation5 + $0x50] sm:$0xff]   ;;  %v600_v30 = vsel %vm420_vm11, 1, %v6487_v0  ;;  %v4098_v31 = vld [vmem:[#allocation5 + $0x58] sm:$0xff]   ;;  %vm423_vm12 = vcmp.eq.s32.totalorder %v4810_v3, 15  ;;  %vm422_vm13 = vcmp.eq.s32.totalorder %v4802_v1, 15 }
  0x98   : > { %v4097_v29 = vld [vmem:[#allocation5 + $0x10] sm:$0xff]   ;;  %vm415_vm14 = vcmp.eq.s32.totalorder %v4866_v25, 0  ;;  %v4099_v32 = vld [vmem:[#allocation5 + $0x18] sm:$0xff]   ;;  %vm414_vm15 = vcmp.eq.s32.totalorder %v4871_v26, 0  ;;  %v4100_v33 = vld [vmem:[#allocation5 + $0x60] sm:$0xff]   ;;  %v603_v34 = vsel %vm423_vm12, 1, %v6487_v0 }
  0x99   : > { %3705 = vmatpush3.bf16.msra.mxu0 %v4095_v22  ;;  %v602_v35 = vsel %vm422_vm13, 1, %v6487_v0  ;;  %v482_v36 = vsel %vm415_vm14, 1, %v6487_v0  ;;  %v4103_v37 = vld [vmem:[#allocation5 + $0x80] sm:$0xff]   ;;  %v481_v39 = vsel %vm414_vm15, 1, %v6487_v0  ;;  %vm425_vm0 = vcmp.eq.s32.totalorder %v4822_v7, 15  ;;  %v4102_v41 = vld [vmem:[#allocation5 + $0x68] sm:$0xff]  }
  0x9a   : > { %3706 = vmatprep.subr.bf16.mxu0 %v4096_v27  ;;  %v4101_v40 = vld [vmem:[#allocation5 + $0x20] sm:$0xff]   ;;  %3782 = vmatprep.subr.bf16.mxu1 %v4103_v37  ;;  %vm424_vm1 = vcmp.eq.s32.totalorder %v4827_v8, 15  ;;  %v4106_v42 = vld [vmem:[#allocation5 + $0x88] sm:$0xff]   ;;  %v4885_v44 = vshrl.u32 %v452_v38, 7  ;;  %vm427_vm2 = vcmp.eq.s32.totalorder %v4836_v11, 15  ;;  %v4105_v45 = vld [vmem:[#allocation5 + $0x70] sm:$0xff]  }
  0x9b   : > { %503 = vperm.xlu1 %4091, %v476_v13   ;;  %500 = vperm.xlu0 %4090, %v475_v14   ;;  %v4104_v43 = vld [vmem:[#allocation5 + $0x28] sm:$0xff]   ;;  %v605_v46 = vsel %vm425_vm0, 1, %v6487_v0  ;;  %v4109_v47 = vld [vmem:[#allocation5 + $0x90] sm:$0xff]   ;;  %v604_v48 = vsel %vm424_vm1, 1, %v6487_v0  ;;  %vm426_vm3 = vcmp.eq.s32.totalorder %v4841_v12, 15  ;;  %v4899_v51 = vld [vmem:[%s6457_s0 + $0x60] sm:$0xff] }
  0x9c   : > { %3783 = vmatpush3.bf16.msra.mxu1 %v4103_v37  ;;  %v4107_v49 = vld [vmem:[#allocation5 + $0x30] sm:$0xff]   ;;  %v4894_v50 = vld [vmem:[%s6457_s0 + $0x68] sm:$0xff]  ;;  %v4108_v52 = vld [vmem:[#allocation5 + $0x78] sm:$0xff]   ;;  %vm6471_vm4 = vcmp.lt.s32.totalorder %v4885_v44, 1  ;;  %vm6472_vm5 = vcmp.lt.s32.totalorder %v4885_v44, 7  ;;  %v607_v63 = vsel %vm427_vm2, 1, %v6487_v0 }
  0x9d   : > { %3707 = vmatpush3.bf16.msra.mxu0 %v4097_v29  ;;  %3784 = vmatprep.subr.bf16.mxu1 %v4106_v42  ;;  %v4902_v53 = vld [vmem:[%s4783_s10] sm:$0xff]  ;;  %v4905_v54 = vld [vmem:[%s4783_s10 + $0x8] sm:$0xff]  ;;  %v4908_v55 = vld [vmem:[%s4783_s10 + $0x78] sm:$0xff]  ;;  %v606_v3 = vsel %vm426_vm3, 1, %v6487_v0  ;;  %vm417_vm6 = vcmp.eq.s32.totalorder %v4894_v50, 0  ;;  %vm416_vm7 = vcmp.eq.s32.totalorder %v4899_v51, 0 }
  0x9e   : > { %3708 = vmatprep.subr.bf16.mxu0 %v4098_v31  ;;  %v436_v56 = vrot.slane %v4902_v53, 7  ;;  %v437_v57 = vrot.slane %v4905_v54, 7  ;;  %v567_v58 = vrot.slane %v4902_v53, 1  ;;  %v568_v59 = vrot.slane %v4905_v54, 1  ;;  %v4111_v62 = vld [vmem:[#allocation5 + $0x98] sm:$0xff]   ;;  %v4112_v7 = vld [vmem:[#allocation5 + $0xa0] sm:$0xff]  }
  0x9f   : > { %509 = vperm.xlu1 %4091, %v478_v19   ;;  %506 = vperm.xlu0 %4090, %v477_v20   ;;  %v704_v60 = vpack.c.bf16 %v4905_v54, %v4902_v53  ;;  %v451_v61 = vrot.slane %v4908_v55, 7  ;;  %v4110_v4 = vld [vmem:[#allocation5 + $0x38] sm:$0xff]   ;;  %v4948_v8 = vld [vmem:[%s4783_s10 + $0x10] sm:$0xff]  ;;  %v484_v10 = vsel %vm417_vm6, 1, %v6487_v0  ;;  %v483_v11 = vsel %vm416_vm7, 1, %v6487_v0  ;;  %v4113_v13 = vld [vmem:[#allocation5 + $0xa8] sm:$0xff]  }
  0xa0   : > { %3785 = vmatpush3.bf16.msra.mxu1 %v4106_v42  ;;  %v4926_v1 = vsel %vm6471_vm4, %v436_v56, %v437_v57  ;;  %v4932_v2 = vsel %vm6472_vm5, %v567_v58, %v568_v59  ;;  %v569_v9 = vrot.slane %v4948_v8, 1  ;;  %vm429_vm8 = vcmp.eq.s32.totalorder %v4850_v17, 15  ;;  %v403_v19 = vld [vmem:[%s6457_s0 + $0x78] sm:$0xff]  ;;  %v402_v17 = vld [vmem:[%s6457_s0 + $0x70] sm:$0xff]  ;;  %s6339_s16 = scalar_lea.vmem [#allocation10], %s3170_s15  ;;  %s3669_s23 = sshll.u32 %s4601_s9, 12 }
  0xa1   : > { %3709 = vmatpush3.bf16.msra.mxu0 %v4099_v32  ;;  %3786 = vmatprep.subr.bf16.mxu1 %v4109_v47  ;;  %v4941_v5 = vsel %vm6471_vm4, %v451_v61, %v436_v56  ;;  %vm428_vm9 = vcmp.eq.s32.totalorder %v4855_v18, 15  ;;  %v609_v15 = vsel %vm429_vm8, 1, %v6487_v0  ;;  %v4114_v18 = vld [vmem:[#allocation5 + $0xb0] sm:$0xff]   ;;  %vm431_vm10 = vcmp.eq.s32.totalorder %v4866_v25, 15  ;;  %v4115_v22 = vld [vmem:[#allocation5 + $0xb8] sm:$0xff]   ;;  %s3053_s25 = sshll.u32 %s6339_s16, 4  ;;  %s6408_s11 = scalar_lea.hbm %s6465_s8, %s3669_s23  ;;  %s6410_s25 = int_to_ptr.vmem [resolvable:$true] %s3053_s25 }
  0xa2   : > { %3710 = vmatprep.subr.bf16.mxu0 %v4100_v33  ;;  %951 = vmatprep.mubr.bf16.mxu0 %v704_v60  ;;  %v3199_v6 = vpack.c.bf16 %v4926_v1, %v4941_v5  ;;  %v4957_v12 = vsel %vm6472_vm5, %v568_v59, %v569_v9  ;;  %v608_v16 = vsel %vm428_vm9, 1, %v6487_v0  ;;  %vm430_vm11 = vcmp.eq.s32.totalorder %v4871_v26, 15  ;;  %v375_v31 = vld [vmem:[%s4783_s10 + $0x18] sm:$0xff]  ;;  %s3039_s9 = scalar_lea.sflag [#allocation4], %s4779_s24  ;;  %s4447_s14 = scalar_lea.vmem %s6410_s25, 4096 }
  0xa3   : > { %515 = vperm.xlu1 %4091, %v480_v23   ;;  %512 = vperm.xlu0 %4090, %v479_v24   ;;  %v3239_v14 = vpack.c.bf16 %v4957_v12, %v4932_v2  ;;  %v611_v20 = vsel %vm431_vm10, 1, %v6487_v0  ;;  %v610_v21 = vsel %vm430_vm11, 1, %v6487_v0  ;;  %vm419_vm12 = vcmp.eq.s32.totalorder %v403_v19, 0  ;;  %v381_v2 = vld [vmem:[%s4783_s10 + $0x48] sm:$0xff]  ;;  %p4448_p10 = scmp.ne.s32.totalorder %s6410_s25, %s4447_s14  ;;  %s4532_s12 = smov [#allocation10]  }
  0xa4   : > { %3787 = vmatpush3.bf16.msra.mxu1 %v4109_v47  ;;  %vm418_vm13 = vcmp.eq.s32.totalorder %v402_v17, 0  ;;  %v486_v23 = vsel %vm419_vm12, 1, %v6487_v0  ;;  %vm433_vm14 = vcmp.eq.s32.totalorder %v4894_v50, 15  ;;  %vm432_vm15 = vcmp.eq.s32.totalorder %v4899_v51, 15 }
  0xa5   : > { %3711 = vmatpush3.bf16.msra.mxu0 %v4101_v40  ;;  %3788 = vmatprep.subr.bf16.mxu1 %v4111_v62  ;;  %v485_v24 = vsel %vm418_vm13, 1, %v6487_v0  ;;  %v613_v25 = vsel %vm433_vm14, 1, %v6487_v0  ;;  %v612_v26 = vsel %vm432_vm15, 1, %v6487_v0  ;;  %vm435_vm0 = vcmp.eq.s32.totalorder %v403_v19, 15  ;;  %v376_v40 = vld [vmem:[%s4783_s10 + $0x20] sm:$0xff]  ;;  %p4449_p3 = pnand %p4448_p10, %p4728_p5 }
  0xa6   : > { %3712 = vmatprep.subr.bf16.mxu0 %v4102_v41  ;;  %vm434_vm1 = vcmp.eq.s32.totalorder %v402_v17, 15  ;;  %v615_v27 = vsel %vm435_vm0, 1, %v6487_v0  ;;  %v571_v54 = vrot.slane %v376_v40, 1  ;;  %v6604_v12 = vmov 0 }
  0xa7   : > { %620 = vperm.xlu1 %4091, %v601_v28   ;;  %617 = vperm.xlu0 %4090, %v600_v30   ;;  %v614_v28 = vsel %vm434_vm1, 1, %v6487_v0  ;;  %p4450_p7 = pneg %p4449_p3 }
  0xa8   : > { %3789 = vmatpush3.bf16.msra.mxu1 %v4111_v62  ;;  %v378_v62 = vld [vmem:[%s4783_s10 + $0x30] sm:$0xff] }
  0xa9   : > { %3713 = vmatpush3.bf16.msra.mxu0 %v4104_v43  ;;  %3790 = vmatprep.subr.bf16.mxu1 %v4112_v7  ;;  %v377_v43 = vld [vmem:[%s4783_s10 + $0x28] sm:$0xff] }
  0xaa   : > { %3714 = vmatprep.subr.bf16.mxu0 %v4105_v45  ;;  %v440_v45 = vrot.slane %v376_v40, 7  ;;  %v706_v50 = vpack.c.bf16 %v377_v43, %v376_v40  ;;  %v382_v40 = vld [vmem:[%s4783_s10 + $0x50] sm:$0xff] }
  0xab   : > { %626 = vperm.xlu1 %4091, %v603_v34   ;;  %623 = vperm.xlu0 %4090, %v602_v35   ;;  %v438_v34 = vrot.slane %v4948_v8, 7  ;;  %v439_v35 = vrot.slane %v375_v31, 7 }
  0xac   : > { %3791 = vmatpush3.bf16.msra.mxu1 %v4112_v7 }
  0xad   : > { %3715 = vmatpush3.bf16.msra.mxu0 %v4107_v49  ;;  %3792 = vmatprep.subr.bf16.mxu1 %v4113_v13  ;;  %v467_v41 = vsel %vm6471_vm4, %v438_v34, %v439_v35  ;;  %v468_v42 = vsel %vm6471_vm4, %v437_v57, %v438_v34  ;;  %v441_v49 = vrot.slane %v377_v43, 7  ;;  %v466_v60 = vsel %vm6471_vm4, %v439_v35, %v440_v45 }
  0xae   : > { %3716 = vmatprep.subr.bf16.mxu0 %v4108_v52  ;;  %v570_v52 = vrot.slane %v375_v31, 1 }
  0xaf   : > { %521 = vperm.xlu1 %4091, %v482_v36   ;;  %518 = vperm.xlu0 %4090, %v481_v39   ;;  %v705_v36 = vpack.c.bf16 %v375_v31, %v4948_v8  ;;  %v465_v59 = vsel %vm6471_vm4, %v440_v45, %v441_v49 }
  0xb0   : > { %3793 = vmatpush3.bf16.msra.mxu1 %v4113_v13  ;;  %v3209_v1 = vpack.c.bf16 %v465_v59, %v466_v60  ;;  %v596_v7 = vsel %vm6472_vm5, %v569_v9, %v570_v52  ;;  %v6600_v13 = vmov 0  ;;  %v573_v9 = vrot.slane %v378_v62, 1 }
  0xb1   : > { %3717 = vmatpush3.bf16.msra.mxu0 %v4110_v4  ;;  %3794 = vmatprep.subr.bf16.mxu1 %v4114_v18  ;;  %v442_v4 = vrot.slane %v378_v62, 7  ;;  %v6611_v60 = vmov 0 }
  0xb3   : > { %632 = vperm.xlu1 %4091, %v605_v46   ;;  %629 = vperm.xlu0 %4090, %v604_v48   ;;  %v3204_v48 = vpack.c.bf16 %v467_v41, %v468_v42  ;;  %v383_v41 = vld [vmem:[%s4783_s10 + $0x58] sm:$0xff]  ;;  %v6608_v42 = vmov 0 }
  0xb4   : > { %3795 = vmatpush3.bf16.msra.mxu1 %v4114_v18  ;;  %v709_v59 = vpack.c.bf16 %v383_v41, %v382_v40 }
  0xb5   : > { %3796 = vmatprep.subr.bf16.mxu1 %v4115_v22 }
  0xb7   : > { %638 = vperm.xlu1 %4091, %v607_v63   ;;  %635 = vperm.xlu0 %4090, %v606_v3   ;;  %v379_v63 = vld [vmem:[%s4783_s10 + $0x38] sm:$0xff]  ;;  %v595_v3 = vsel %vm6472_vm5, %v570_v52, %v571_v54  ;;  %v577_v52 = vrot.slane %v382_v40, 1 }
  0xb8   : > { %3797 = vmatpush3.bf16.msra.mxu1 %v4115_v22  ;;  %v3244_v8 = vpack.c.bf16 %v595_v3, %v596_v7  ;;  %v385_v7 = vld [vmem:[%s4783_s10 + $0x68] sm:$0xff] }
  0xbb   : > { %527 = vperm.xlu1 %4091, %v484_v10   ;;  %524 = vperm.xlu0 %4090, %v483_v11   ;;  %v443_v10 = vrot.slane %v379_v63, 7  ;;  %v707_v11 = vpack.c.bf16 %v379_v63, %v378_v62 }
  0xbd   : > { %v463_v18 = vsel %vm6471_vm4, %v442_v4, %v443_v10 }
  0xbf   : > { %644 = vperm.xlu1 %4091, %v609_v15   ;;  %641 = vperm.xlu0 %4090, %v608_v16   ;;  %v572_v16 = vrot.slane %v377_v43, 1  ;;  %v576_v43 = vrot.slane %v381_v2, 1 }
  0xc3   : > { %650 = vperm.xlu1 %4091, %v611_v20   ;;  %647 = vperm.xlu0 %4090, %v610_v21   ;;  %v464_v20 = vsel %vm6471_vm4, %v441_v49, %v442_v4  ;;  %v380_v21 = vld [vmem:[%s4783_s10 + $0x40] sm:$0xff] }
  0xc4   : > { %v3214_v22 = vpack.c.bf16 %v463_v18, %v464_v20  ;;  %v386_v20 = vld [vmem:[%s4783_s10 + $0x70] sm:$0xff] }
  0xc7   : > { %533 = vperm.xlu1 %4091, %v486_v23   ;;  %530 = vperm.xlu0 %4090, %v485_v24   ;;  %v593_v23 = vsel %vm6472_vm5, %v572_v16, %v573_v9  ;;  %v594_v24 = vsel %vm6472_vm5, %v571_v54, %v572_v16  ;;  %v384_v54 = vld [vmem:[%s4783_s10 + $0x60] sm:$0xff]  ;;  %s4451_s10 = sshll.u32 %s4532_s12, 4  ;;  %s4452_s10 = int_to_ptr.vmem [resolvable:$false] %s4451_s10 }
  0xc8   : > { %v448_v18 = vrot.slane %v384_v54, 7  ;;  %s4453_s21 = scalar_lea.vmem %s4452_s10, 8192  ;;  %p4454_p12 = scmp.lt.s32.totalorder %s6410_s25, %s4452_s10 }
  0xc9   : > { %p4455_p2 = scmp.lt.s32.totalorder %s4453_s21, %s4447_s14 }
  0xcb   : > { %656 = vperm.xlu1 %4091, %v613_v25   ;;  %653 = vperm.xlu0 %4090, %v612_v26   ;;  %v444_v25 = vrot.slane %v380_v21, 7  ;;  %p4456_p1 = por %p4455_p2, %p4454_p12 }
  0xcd   : > { %p4457_p4 = pnand %p4456_p1, %p4450_p7 }
  0xcf   : > { %662 = vperm.xlu1 %4091, %v615_v27   ;;  %659 = vperm.xlu0 %4090, %v614_v28   ;;  %v445_v28 = vrot.slane %v381_v2, 7 }
  0xd1   : > { %v461_v35 = vsel %vm6471_vm4, %v444_v25, %v445_v28 }
 0x112   : > { %v495_v29 = vpop.permute.xlu1 %494  ;;  %v489_v30 = vpop.permute.xlu0 %488 }
 0x113   : > { %vm3671_vm3 = vcmp.ne.s32.totalorder %v489_v30, 1  ;;  %vm3673_vm7 = vcmp.ne.s32.totalorder %v495_v29, 1  ;;  %v575_v29 = vrot.slane %v380_v21, 1  ;;  %v708_v30 = vpack.c.bf16 %v381_v2, %v380_v21 }
 0x114   : > { %v710_v21 = vpack.c.bf16 %v385_v7, %v384_v54  ;;  %v6616_v2 = vmov 0 }
 0x116   : > { %v498_v32 = vpop.permute.xlu1 %497  ;;  %v492_v33 = vpop.permute.xlu0 %491 }
 0x117   : > { %vm3670_vm2 = vcmp.ne.s32.totalorder %v492_v33, 1  ;;  %vm3672_vm8 = vcmp.ne.s32.totalorder %v498_v32, 1  ;;  %v3249_v32 = vpack.c.bf16 %v593_v23, %v594_v24  ;;  %v580_v23 = vrot.slane %v385_v7, 1 }
 0x118   : > { %vm4986_vm6 = vmpackc.low %vm3670_vm2, %vm3671_vm3  ;;  %v581_v24 = vrot.slane %v386_v20, 1 }
 0x119   : > { %3200 = vmatmul.mubr.msk.bf16.vlgmr.msra.gmra.mrb[0].mxu0 %vm4986_vm6, %v3199_v6  ;;  %vm5003_vm9 = vmpackc.low %vm3672_vm8, %vm3673_vm7 }
 0x11a   : > { %v504_v38 = vpop.permute.xlu1 %503  ;;  %v501_v39 = vpop.permute.xlu0 %500  ;;  %959 = vmatprep.mubr.bf16.mxu0 %v705_v36  ;;  %v462_v36 = vsel %vm6471_vm4, %v443_v10, %v444_v25 }
 0x11b   : > { %vm3674_vm10 = vcmp.ne.s32.totalorder %v504_v38, 1  ;;  %vm3675_vm11 = vcmp.ne.s32.totalorder %v501_v39, 1  ;;  %v3219_v45 = vpack.c.bf16 %v461_v35, %v462_v36  ;;  %v582_v36 = vrot.slane %v4908_v55, 1 }
 0x11c   : > { %vm5029_vm15 = vmpackc.low %vm3674_vm10, %vm3675_vm11 }
 0x11e   : > { %v510_v46 = vpop.permute.xlu1 %509  ;;  %v507_v47 = vpop.permute.xlu0 %506 }
 0x11f   : > { %vm3676_vm3 = vcmp.ne.s32.totalorder %v510_v46, 1  ;;  %vm3677_vm7 = vcmp.ne.s32.totalorder %v507_v47, 1  ;;  %v446_v47 = vrot.slane %v382_v40, 7  ;;  %v6628_v40 = vmov 0 }
 0x120   : > { %vm5060_vm8 = vmpackc.low %vm3676_vm3, %vm3677_vm7 }
 0x121   : > { %3205 = vmatmul.mubr.msk.bf16.gmra.mrb[4].mxu0 %vm5003_vm9, %v3204_v48  ;;  %v460_v4 = vsel %vm6471_vm4, %v445_v28, %v446_v47 }
 0x122   : > { %v5009_v56 = vpop.permute.xlu1 %515  ;;  %v5011_v57 = vpop.permute.xlu0 %512  ;;  %967 = vmatprep.mubr.bf16.mxu0 %v706_v50  ;;  %v447_v50 = vrot.slane %v383_v41, 7 }
 0x124   : > { %v459_v3 = vsel %vm6471_vm4, %v446_v47, %v447_v50 }
 0x125   : > { %v3224_v10 = vpack.c.bf16 %v459_v3, %v460_v4  ;;  %v4122_v3 = vld [vmem:[#allocation7 + $0x20] ss:$8 sps:$4 sm:$0xff]   ;;  %v4127_v4 = vld [vmem:[#allocation7 + $0x34] ss:$8 sps:$4 sm:$0xff]  }
 0x126   : > { %v621_v5 = vpop.permute.xlu1 %620  ;;  %v618_v6 = vpop.permute.xlu0 %617 }
 0x127   : > { %vm3686_vm12 = vcmp.ne.s32.totalorder %v621_v5, 1  ;;  %vm3687_vm13 = vcmp.ne.s32.totalorder %v618_v6, 1  ;;  %v589_v5 = vsel %vm6472_vm5, %v576_v43, %v577_v52  ;;  %v590_v6 = vsel %vm6472_vm5, %v575_v29, %v576_v43 }
 0x128   : > { %vm5025_vm14 = vmpackc.low %vm3686_vm12, %vm3687_vm13  ;;  %vm3678_vm13 = vcmp.ne.s32.totalorder %v5009_v56, 1  ;;  %v578_v56 = vrot.slane %v383_v41, 1 }
 0x129   : > { %v6601_v13 = vsel %vm5025_vm14, 4294967295, %v6600_v13  ;;  %3798 = vmatprep.mubr.msk.bf16.mxu1 %vm5025_vm14, %v3239_v14  ;;  %3210 = vmatmul.mubr.msk.bf16.gmra.mrb[8].mxu0 %vm5029_vm15, %v3209_v1  ;;  %v574_v14 = vrot.slane %v379_v63, 1 }
 0x12a   : > { %v627_v19 = vpop.permute.xlu1 %626  ;;  %v624_v17 = vpop.permute.xlu0 %623  ;;  %975 = vmatprep.mubr.bf16.mxu0 %v707_v11  ;;  %v3259_v11 = vpack.c.bf16 %v589_v5, %v590_v6  ;;  %v4125_v5 = vld [vmem:[#allocation7 + $0x30] ss:$8 sps:$4 sm:$0xff]   ;;  %v4130_v6 = vld [vmem:[#allocation7 + $0x44] ss:$8 sps:$4 sm:$0xff]  }
 0x12b   : > { %vm3688_vm0 = vcmp.ne.s32.totalorder %v627_v19, 1  ;;  %vm3689_vm1 = vcmp.ne.s32.totalorder %v624_v17, 1  ;;  %v591_v38 = vsel %vm6472_vm5, %v574_v14, %v575_v29  ;;  %v592_v39 = vsel %vm6472_vm5, %v573_v9, %v574_v14  ;;  %v4323_v14 = vld [vmem:[#allocation8 + $0x1d0] ss:$8 sps:$4 sm:$0xff]  }
 0x12c   : > { %vm5046_vm2 = vmpackc.low %vm3688_vm0, %vm3689_vm1  ;;  %v3254_v46 = vpack.c.bf16 %v591_v38, %v592_v39  ;;  %vm3679_vm0 = vcmp.ne.s32.totalorder %v5011_v57, 1  ;;  %v579_v57 = vrot.slane %v384_v54, 1  ;;  %v449_v17 = vrot.slane %v385_v7, 7  ;;  %v4128_v7 = vld [vmem:[#allocation7 + $0x40] ss:$8 sps:$4 sm:$0xff]  }
 0x12d   : > { %v6605_v12 = vsel %vm5046_vm2, 4294967295, %v6604_v12  ;;  %3799 = vmatmul.mubr.msk.bf16.vlgmr.msra.gmra.mrb[0].mxu1 %vm5046_vm2, %v3244_v8  ;;  %v588_v8 = vsel %vm6472_vm5, %v577_v52, %v578_v56  ;;  %v6623_v29 = vmov 0  ;;  %v711_v38 = vpack.c.bf16 %v4908_v55, %v386_v20 }
 0x12e   : > { %v5056_v26 = vpop.permute.xlu1 %521  ;;  %v5058_v27 = vpop.permute.xlu0 %518  ;;  %v587_v16 = vsel %vm6472_vm5, %v578_v56, %v579_v57  ;;  %v450_v39 = vrot.slane %v386_v20, 7  ;;  %v6637_v55 = vmov 0  ;;  %v4116_v56 = vld [vmem:[#allocation7] ss:$8 sps:$4 sm:$0xff]   ;;  %v4145_v20 = vld [vmem:[#allocation7 + $0x94] ss:$8 sps:$4 sm:$0xff]  }
 0x131   : > { %3215 = vmatmul.mubr.msk.bf16.gmra.mrb[12].mxu0 %vm5060_vm8, %v3214_v22  ;;  %v3264_v22 = vpack.c.bf16 %v587_v16, %v588_v8  ;;  %v4136_v16 = vld [vmem:[#allocation7 + $0x64] ss:$8 sps:$4 sm:$0xff]   ;;  %v4134_v8 = vld [vmem:[#allocation7 + $0x60] ss:$8 sps:$4 sm:$0xff]  }
 0x132   : > { %v633_v33 = vpop.permute.xlu1 %632  ;;  %v630_v34 = vpop.permute.xlu0 %629  ;;  %983 = vmatprep.mubr.bf16.mxu0 %v708_v30 }
 0x133   : > { %vm3690_vm10 = vcmp.ne.s32.totalorder %v633_v33, 1  ;;  %vm3691_vm11 = vcmp.ne.s32.totalorder %v630_v34, 1 }
 0x134   : > { %vm5076_vm12 = vmpackc.low %vm3690_vm10, %vm3691_vm11  ;;  %vm3680_vm11 = vcmp.ne.s32.totalorder %v5056_v26, 1 }
 0x135   : > { %v6609_v42 = vsel %vm5076_vm12, 4294967295, %v6608_v42  ;;  %3802 = vmatprep.mubr.msk.bf16.mxu1 %vm5076_vm12, %v3249_v32  ;;  %vm5089_vm10 = vmpackc.low %vm3678_vm13, %vm3679_vm0  ;;  %vm3681_vm13 = vcmp.ne.s32.totalorder %v5058_v27, 1 }
 0x136   : > { %6610 = vst [vmem:[#allocation17_spill] sm:$0xff] %v6609_v42  ;;  %v639_v48 = vpop.permute.xlu1 %638  ;;  %v636_v49 = vpop.permute.xlu0 %635  ;;  %vm5117_vm4 = vmpackc.low %vm3680_vm11, %vm3681_vm13 }
 0x137   : > { %vm3692_vm1 = vcmp.ne.s32.totalorder %v639_v48, 1  ;;  %vm3693_vm3 = vcmp.ne.s32.totalorder %v636_v49, 1 }
 0x138   : > { %vm5085_vm7 = vmpackc.low %vm3692_vm1, %vm3693_vm3 }
 0x139   : > { %v6612_v60 = vsel %vm5085_vm7, 4294967295, %v6611_v60  ;;  %3803 = vmatmul.mubr.msk.bf16.gmra.mrb[4].mxu1 %vm5085_vm7, %v3254_v46  ;;  %3220 = vmatmul.mubr.msk.bf16.gmra.mrb[16].mxu0 %vm5089_vm10, %v3219_v45 }
 0x13a   : > { %6613 = vst [vmem:[#allocation18_spill] sm:$0xff] %v6612_v60  ;;  %v528_v63 = vpop.permute.xlu1 %527  ;;  %v525_v1 = vpop.permute.xlu0 %524  ;;  %991 = vmatprep.mubr.bf16.mxu0 %v709_v59  ;;  %v4118_v59 = vld [vmem:[#allocation7 + $0x4] ss:$8 sps:$4 sm:$0xff]  }
 0x13b   : > { %vm3682_vm7 = vcmp.ne.s32.totalorder %v528_v63, 1  ;;  %vm3683_vm12 = vcmp.ne.s32.totalorder %v525_v1, 1  ;;  %1549 = vmatprep.subr.bf16.mxu0 %v4118_v59  ;;  %v4119_v63 = vld [vmem:[#allocation7 + $0x10] ss:$8 sps:$4 sm:$0xff]   ;;  %v4124_v1 = vld [vmem:[#allocation7 + $0x24] ss:$8 sps:$4 sm:$0xff]  }
 0x13c   : > { %1550 = vmatpush1.bf16.msra.mxu0 %v4116_v56  ;;  %v5180_v59 = vld [vmem:[%s6462_s5] ss:$0 sm:$0xff] }
 0x13e   : > { %v645_v9 = vpop.permute.xlu1 %644  ;;  %v642_v19 = vpop.permute.xlu0 %641 }
 0x13f   : > { %vm3694_vm0 = vcmp.ne.s32.totalorder %v645_v9, 1  ;;  %vm3695_vm1 = vcmp.ne.s32.totalorder %v642_v19, 1  ;;  %v4139_v9 = vld [vmem:[#allocation7 + $0x74] ss:$8 sps:$4 sm:$0xff]   ;;  %v4137_v19 = vld [vmem:[#allocation7 + $0x70] ss:$8 sps:$4 sm:$0xff]  }
 0x140   : > { %vm5113_vm3 = vmpackc.low %vm3694_vm0, %vm3695_vm1  ;;  %vm6621_vm0 = vcmp.lt.s32.totalorder %v4885_v44, 1 }
 0x141   : > { %v6617_v2 = vsel %vm5113_vm3, 4294967295, %v6616_v2  ;;  %3806 = vmatprep.mubr.msk.bf16.mxu1 %vm5113_vm3, %v3259_v11  ;;  %3225 = vmatmul.mubr.msk.bf16.gmra.mrb[20].mxu0 %vm5117_vm4, %v3224_v10  ;;  %v457_v27 = vsel %vm6621_vm0, %v448_v18, %v449_v17  ;;  %vm6622_vm1 = vmmov %vm6621_vm0  ;;  %vm6626_vm3 = vcmp.lt.s32.totalorder %v4885_v44, 7  ;;  %v4133_v10 = vld [vmem:[#allocation7 + $0x54] ss:$8 sps:$4 sm:$0xff]   ;;  %v4131_v11 = vld [vmem:[#allocation7 + $0x50] ss:$8 sps:$4 sm:$0xff]  }
 0x142   : > { %6618 = vst [vmem:[#allocation19_spill] sm:$0xff] %v6617_v2  ;;  %v651_v25 = vpop.permute.xlu1 %650  ;;  %v648_v26 = vpop.permute.xlu0 %647  ;;  %v458_v28 = vsel %vm6622_vm1, %v447_v50, %v448_v18  ;;  %999 = vmatprep.mubr.bf16.mxu0 %v710_v21  ;;  %v585_v32 = vsel %vm6626_vm3, %v580_v23, %v581_v24  ;;  %vm6627_vm0 = vmmov %vm6626_vm3  ;;  %v6634_v50 = vmov 0  ;;  %v4140_v18 = vld [vmem:[#allocation7 + $0x80] ss:$8 sps:$4 sm:$0xff]   ;;  %v4143_v21 = vld [vmem:[#allocation7 + $0x90] ss:$8 sps:$4 sm:$0xff]  }
 0x143   : > { %vm3696_vm11 = vcmp.ne.s32.totalorder %v651_v25, 1  ;;  %vm3697_vm13 = vcmp.ne.s32.totalorder %v648_v26, 1  ;;  %v3229_v30 = vpack.c.bf16 %v457_v27, %v458_v28  ;;  %v586_v35 = vsel %vm6627_vm0, %v579_v57, %v580_v23  ;;  %vm5141_vm1 = vmpackc.low %vm3682_vm7, %vm3683_vm12  ;;  %v4121_v57 = vld [vmem:[#allocation7 + $0x14] ss:$8 sps:$4 sm:$0xff]   ;;  %v4146_v23 = vld [vmem:[#allocation7 + $0xa0] ss:$8 sps:$4 sm:$0xff]  }
 0x144   : > { %vm5129_vm5 = vmpackc.low %vm3696_vm11, %vm3697_vm13  ;;  %v6629_v40 = vsel %vm5141_vm1, 4294967295, %v6628_v40  ;;  %v3269_v41 = vpack.c.bf16 %v585_v32, %v586_v35  ;;  %vm6632_vm12 = vcmp.lt.s32.totalorder %v4885_v44, 1  ;;  %1551 = vmatprep.subr.bf16.mxu0 %v4121_v57  ;;  %v4151_v25 = vld [vmem:[#allocation7 + $0xb4] ss:$8 sps:$4 sm:$0xff]   ;;  %v4152_v26 = vld [vmem:[#allocation7 + $0xc0] ss:$8 sps:$4 sm:$0xff]  }
 0x145   : > { %v6624_v29 = vsel %vm5129_vm5, 4294967295, %v6623_v29  ;;  %3807 = vmatmul.mubr.msk.bf16.gmra.mrb[8].mxu1 %vm5129_vm5, %v3264_v22  ;;  %vm6630_vm3 = vmmov %vm6627_vm0  ;;  %v455_v48 = vsel %vm6632_vm12, %v450_v39, %v451_v61  ;;  %v6640_v61 = vmov 0  ;;  %1552 = vmatpush1.bf16.msra.mxu0 %v4119_v63  ;;  %v4148_v22 = vld [vmem:[#allocation7 + $0xa4] ss:$8 sps:$4 sm:$0xff]   ;;  %v4157_v28 = vld [vmem:[#allocation7 + $0xd4] ss:$8 sps:$4 sm:$0xff]  }
 0x146   : > { %6625 = vst [vmem:[#allocation20_spill] sm:$0xff] %v6624_v29  ;;  %v534_v33 = vpop.permute.xlu1 %533  ;;  %v531_v34 = vpop.permute.xlu0 %530  ;;  %v584_v46 = vsel %vm6630_vm3, %v581_v24, %v582_v36  ;;  %vm6631_vm11 = vmmov %vm6627_vm0  ;;  %1553 = vmatprep.subr.bf16.mxu0 %v4124_v1  ;;  %v4149_v24 = vld [vmem:[#allocation7 + $0xb0] ss:$8 sps:$4 sm:$0xff]   ;;  %v4154_v27 = vld [vmem:[#allocation7 + $0xc4] ss:$8 sps:$4 sm:$0xff]  }
 0x147   : > { %v599_v47 = vsel %vm6631_vm11, %v582_v36, %v567_v58  ;;  %vm6633_vm7 = vmmov %vm6632_vm12  ;;  %vm3684_vm3 = vcmp.ne.s32.totalorder %v534_v33, 1  ;;  %vm3685_vm11 = vcmp.ne.s32.totalorder %v531_v34, 1  ;;  %v4160_v32 = vld [vmem:[#allocation7 + $0xe4] ss:$8 sps:$4 sm:$0xff]   ;;  %v4158_v33 = vld [vmem:[#allocation7 + $0xe0] ss:$8 sps:$4 sm:$0xff]  }
 0x148   : > { %v456_v49 = vsel %vm6633_vm7, %v449_v17, %v450_v39  ;;  %v3274_v53 = vpack.c.bf16 %v599_v47, %v584_v46  ;;  %vm5169_vm12 = vmpackc.low %vm3684_vm3, %vm3685_vm11  ;;  %v4142_v17 = vld [vmem:[#allocation7 + $0x84] ss:$8 sps:$4 sm:$0xff]   ;;  %v4163_v34 = vld [vmem:[#allocation7 + $0xf4] ss:$8 sps:$4 sm:$0xff]  }
 0x149   : > { %3230 = vmatmul.mubr.msk.bf16.gmra.mrb[24].mxu0 %vm5141_vm1, %v3229_v30  ;;  %v3234_v54 = vpack.c.bf16 %v455_v48, %v456_v49  ;;  %v6641_v61 = vsel %vm5169_vm12, 4294967295, %v6640_v61  ;;  %v4155_v30 = vld [vmem:[#allocation7 + $0xd0] ss:$8 sps:$4 sm:$0xff]   ;;  %v4166_v36 = vld [vmem:[#allocation7 + $0x104] ss:$8 sps:$4 sm:$0xff]  }
 0x14a   : > { %v657_v43 = vpop.permute.xlu1 %656  ;;  %v654_v45 = vpop.permute.xlu0 %653  ;;  %1007 = vmatprep.mubr.bf16.mxu0 %v711_v38  ;;  %1554 = vmatpush1.bf16.msra.mxu0 %v4122_v3  ;;  %v4161_v35 = vld [vmem:[#allocation7 + $0xf0] ss:$8 sps:$4 sm:$0xff]  }
 0x14b   : > { %vm3698_vm13 = vcmp.ne.s32.totalorder %v657_v43, 1  ;;  %vm3699_vm0 = vcmp.ne.s32.totalorder %v654_v45, 1  ;;  %1555 = vmatprep.subr.bf16.mxu0 %v4127_v4 }
 0x14c   : > { %vm5159_vm5 = vmpackc.low %vm3698_vm13, %vm3699_vm0 }
 0x14d   : > { %v6635_v50 = vsel %vm5159_vm5, 4294967295, %v6634_v50  ;;  %3810 = vmatprep.mubr.msk.bf16.mxu1 %vm5159_vm5, %v3269_v41  ;;  %vm6644_vm13 = vmmov %vm6633_vm7 }
 0x14e   : > { %6636 = vst [vmem:[#allocation21_spill] sm:$0xff] %v6635_v50  ;;  %v663_v58 = vpop.permute.xlu1 %662  ;;  %v660_v52 = vpop.permute.xlu0 %659  ;;  %1556 = vmatpush1.bf16.msra.mxu0 %v4125_v5  ;;  %vm6647_vm3 = vmmov %vm6644_vm13 }
 0x14f   : > { %vm3700_vm2 = vcmp.ne.s32.totalorder %v663_v58, 1  ;;  %vm3701_vm14 = vcmp.ne.s32.totalorder %v660_v52, 1  ;;  %1557 = vmatprep.subr.bf16.mxu0 %v4130_v6  ;;  %vm6648_vm11 = vmmov %vm6647_vm3 }
 0x150   : > { %vm5165_vm1 = vmpackc.low %vm3700_vm2, %vm3701_vm14  ;;  %vm6643_vm2 = vcmp.lt.s32.totalorder %v4885_v44, 7 }
 0x151   : > { %v6638_v55 = vsel %vm5165_vm1, 4294967295, %v6637_v55  ;;  %3811 = vmatmul.mubr.msk.bf16.gmra.mrb[12].mxu1 %vm5165_vm1, %v3274_v53  ;;  %3235 = vmatmul.mubr.msk.bf16.gmra.mrb[28].mxu0 %vm5169_vm12, %v3234_v54  ;;  %vm6642_vm14 = vmmov %vm6633_vm7 }
 0x152   : > { %6639 = vst [vmem:[#allocation22_spill] sm:$0xff] %v6638_v55  ;;  %1558 = vmatpush1.bf16.msra.mxu0 %v4128_v7  ;;  %vm6645_vm0 = vmmov %vm6643_vm2 }
 0x153   : > { %1559 = vmatprep.subr.bf16.mxu0 %v4133_v10  ;;  %vm6646_vm7 = vmmov %vm6645_vm0 }
 0x156   : > { %1560 = vmatpush1.bf16.msra.mxu0 %v4131_v11 }
 0x157   : > { %1561 = vmatprep.subr.bf16.mxu0 %v4136_v16 }
 0x15a   : > { %1562 = vmatpush1.bf16.msra.mxu0 %v4134_v8 }
 0x15b   : > { %1563 = vmatprep.subr.bf16.mxu0 %v4139_v9 }
 0x15e   : > { %1564 = vmatpush1.bf16.msra.mxu0 %v4137_v19 }
 0x15f   : > { %1565 = vmatprep.subr.bf16.mxu0 %v4142_v17 }
 0x162   : > { %1566 = vmatpush1.bf16.msra.mxu0 %v4140_v18 }
 0x163   : > { %1567 = vmatprep.subr.bf16.mxu0 %v4145_v20 }
 0x166   : > { %1568 = vmatpush1.bf16.msra.mxu0 %v4143_v21 }
 0x167   : > { %1569 = vmatprep.subr.bf16.mxu0 %v4148_v22 }
 0x16a   : > { %1570 = vmatpush1.bf16.msra.mxu0 %v4146_v23 }
 0x16b   : > { %1571 = vmatprep.subr.bf16.mxu0 %v4151_v25 }
 0x16e   : > { %1572 = vmatpush1.bf16.msra.mxu0 %v4149_v24 }
 0x16f   : > { %1573 = vmatprep.subr.bf16.mxu0 %v4154_v27 }
 0x172   : > { %1574 = vmatpush1.bf16.msra.mxu0 %v4152_v26 }
 0x173   : > { %1575 = vmatprep.subr.bf16.mxu0 %v4157_v28 }
 0x176   : > { %1576 = vmatpush1.bf16.msra.mxu0 %v4155_v30 }
 0x177   : > { %1577 = vmatprep.subr.bf16.mxu0 %v4160_v32 }
 0x17a   : > { %1578 = vmatpush1.bf16.msra.mxu0 %v4158_v33 }
 0x17b   : > { %1579 = vmatprep.subr.bf16.mxu0 %v4163_v34 }
 0x17e   : > { %1580 = vmatpush1.bf16.msra.mxu0 %v4161_v35 }
 0x17f   : > { %1662 = vmatprep.subr.bf16.mxu0 %v4166_v36 }
 0x1ec   : > { %v3718_v38 = vpop.f32.mrb[0].mxu0 }
 0x1ed   : > { %v3719_v39 = vpop.f32.mrb[1].mxu0 }
 0x1ee   : > { %v3720_v41 = vadd.f32 %v3719_v39, %v3718_v38  ;;  %v3721_v43 = vpop.f32.mrb[2].mxu0 }
 0x1ef   : > { %v3722_v45 = vpop.f32.mrb[3].mxu0 }
 0x1f0   : > { %v3723_v46 = vadd.f32 %v3722_v45, %v3721_v43  ;;  %v954_v5 = vadd.f32 %v3720_v41, %v5180_v59 }
 0x1f2   : > { %v957_v9 = vadd.f32 %v3723_v46, %v5180_v59 }
 0x1f4   : > { %v3724_v47 = vpop.f32.mrb[4].mxu0 }
 0x1f5   : > { %v3725_v48 = vpop.f32.mrb[5].mxu0 }
 0x1f6   : > { %v3726_v49 = vadd.f32 %v3725_v48, %v3724_v47  ;;  %v3727_v53 = vpop.f32.mrb[6].mxu0 }
 0x1f7   : > { %v3728_v58 = vpop.f32.mrb[7].mxu0 }
 0x1f8   : > { %v3729_v52 = vadd.f32 %v3728_v58, %v3727_v53  ;;  %v962_v1 = vadd.f32 %v3726_v49, %v5180_v59 }
 0x1fa   : > { %v965_v11 = vadd.f32 %v3729_v52, %v5180_v59 }
 0x1fc   : > { %v3730_v54 = vpop.f32.mrb[8].mxu0 }
 0x1fd   : > { %v3731_v56 = vpop.f32.mrb[9].mxu0 }
 0x1fe   : > { %v3732_v57 = vadd.f32 %v3731_v56, %v3730_v54  ;;  %v3733_v63 = vpop.f32.mrb[10].mxu0 }
 0x1ff   : > { %v3734_v3 = vpop.f32.mrb[11].mxu0 }
 0x200   : > { %v3800_v4 = vpop.f32.mrb[0].mxu1  ;;  %v3735_v6 = vadd.f32 %v3734_v3, %v3733_v63 }
 0x201   : > { %v1059_v7 = vadd.f32 %v3800_v4, %v962_v1  ;;  %v1050_v10 = vpop.f32.mrb[1].mxu1  ;;  %v970_v1 = vadd.f32 %v3732_v57, %v5180_v59 }
 0x202   : > { %v1051_v16 = vadd.f32 %v1050_v10, %v954_v5  ;;  %v3801_v8 = vpop.f32.mrb[2].mxu1 }
 0x203   : > { %v5186_v19 = vmax.f32 %v1059_v7, 0.0  ;;  %v1062_v17 = vadd.f32 %v3801_v8, %v965_v11  ;;  %v1053_v18 = vpop.f32.mrb[3].mxu1  ;;  %v973_v8 = vadd.f32 %v3735_v6, %v5180_v59 }
 0x204   : > { %v5188_v20 = vmax.f32 %v1051_v16, 0.0  ;;  %v1054_v21 = vadd.f32 %v1053_v18, %v957_v9  ;;  %v3736_v23 = vpop.f32.mrb[12].mxu0 }
 0x205   : > { %v5190_v22 = vmax.f32 %v1062_v17, 0.0  ;;  %v1131_v24 = vrot.slane %v5186_v19, 7  ;;  %v1179_v25 = vrot.slane %v5186_v19, 1  ;;  %v3737_v28 = vpop.f32.mrb[13].mxu0 }
 0x206   : > { %v6490_v26 = vrot.slane %v5188_v20, 7  ;;  %v1114_v27 = vmax.f32 %v1054_v21, 0.0  ;;  %v3738_v33 = vadd.f32 %v3737_v28, %v3736_v23  ;;  %v3739_v34 = vpop.f32.mrb[14].mxu0  ;;  %v6489_v36 = vrot.slane %v5188_v20, 1 }
 0x207   : > { %v1132_v30 = vrot.slane %v5190_v22, 7  ;;  %v1180_v32 = vrot.slane %v5190_v22, 1  ;;  %v3740_v41 = vpop.f32.mrb[15].mxu0 }
 0x208   : > { %v1130_v38 = vrot.slane %v1114_v27, 7  ;;  %v1178_v39 = vrot.slane %v1114_v27, 1  ;;  %v1233_v43 = vpack.c.bf16 %v1114_v27, %v5188_v20  ;;  %v3741_v45 = vadd.f32 %v3740_v41, %v3739_v34 }
 0x209   : > { %v5203_v46 = vsel %vm6642_vm14, %v1131_v24, %v1132_v30  ;;  %v5207_v47 = vsel %vm6643_vm2, %v1179_v25, %v1180_v32  ;;  %v978_v54 = vadd.f32 %v3738_v33, %v5180_v59  ;;  %vm6649_vm14 = vmmov %vm6647_vm3 }
 0x20a   : > { %v5213_v48 = vsel %vm6644_vm13, %v6490_v26, %v1130_v38  ;;  %v5217_v49 = vsel %vm6645_vm0, %v1178_v39, %v1179_v25  ;;  %v5223_v53 = vsel %vm6646_vm7, %v6489_v36, %v1178_v39  ;;  %1581 = vmatprep.mubr.bf16.mxu0 %v1233_v43  ;;  %v5227_v58 = vsel %vm6647_vm3, %v1130_v38, %v1131_v24  ;;  %vm6650_vm2 = vmmov %vm6645_vm0 }
 0x20b   : > { %v981_v7 = vadd.f32 %v3741_v45, %v5180_v59  ;;  %vm6651_vm13 = vmmov %vm6645_vm0 }
 0x20c   : > { %v3804_v63 = vpop.f32.mrb[4].mxu1  ;;  %v3742_v3 = vpop.f32.mrb[16].mxu0  ;;  %vm6653_vm0 = vmmov %vm6647_vm3 }
 0x20d   : > { %v1075_v4 = vadd.f32 %v3804_v63, %v978_v54  ;;  %v1066_v5 = vpop.f32.mrb[5].mxu1  ;;  %v3743_v10 = vpop.f32.mrb[17].mxu0  ;;  %vm6654_vm7 = vmmov %vm6653_vm0 }
 0x20e   : > { %v1067_v11 = vadd.f32 %v1066_v5, %v970_v1  ;;  %v3805_v16 = vpop.f32.mrb[6].mxu1  ;;  %v3744_v17 = vadd.f32 %v3743_v10, %v3742_v3  ;;  %v3745_v18 = vpop.f32.mrb[18].mxu0  ;;  %vm6655_vm3 = vmmov %vm6650_vm2 }
 0x20f   : > { %v5237_v9 = vmax.f32 %v1075_v4, 0.0  ;;  %v1078_v21 = vadd.f32 %v3805_v16, %v981_v7  ;;  %v1069_v23 = vpop.f32.mrb[7].mxu1  ;;  %v3746_v25 = vpop.f32.mrb[19].mxu0 }
 0x210   : > { %v5239_v24 = vmax.f32 %v1067_v11, 0.0  ;;  %v1070_v57 = vadd.f32 %v1069_v23, %v973_v8  ;;  %v3747_v34 = vadd.f32 %v3746_v25, %v3745_v18  ;;  %v986_v41 = vadd.f32 %v3744_v17, %v5180_v59 }
 0x211   : > { %v1135_v27 = vrot.slane %v5237_v9, 7  ;;  %v1183_v28 = vrot.slane %v5237_v9, 1  ;;  %v5243_v33 = vmax.f32 %v1078_v21, 0.0 }
 0x212   : > { %v1133_v38 = vrot.slane %v5239_v24, 7  ;;  %v1181_v6 = vrot.slane %v5239_v24, 1  ;;  %v5247_v39 = vmax.f32 %v1070_v57, 0.0  ;;  %v989_v54 = vadd.f32 %v3747_v34, %v5180_v59 }
 0x213   : > { %v1136_v43 = vrot.slane %v5243_v33, 7  ;;  %v1184_v45 = vrot.slane %v5243_v33, 1 }
 0x214   : > { %v1134_v1 = vrot.slane %v5247_v39, 7  ;;  %v1182_v3 = vrot.slane %v5247_v39, 1  ;;  %v5261_v5 = vsel %vm6648_vm11, %v1132_v30, %v1133_v38  ;;  %v3748_v7 = vpop.f32.mrb[20].mxu0  ;;  %v5269_v11 = vsel %vm6650_vm2, %v1180_v32, %v1181_v6  ;;  %vm6656_vm11 = vmmov %vm6650_vm2 }
 0x215   : > { %v5265_v10 = vsel %vm6649_vm14, %v1135_v27, %v1136_v43  ;;  %v5273_v16 = vsel %vm6651_vm13, %v1183_v28, %v1184_v45  ;;  %v3749_v8 = vpop.f32.mrb[21].mxu0  ;;  %vm6658_vm14 = vmmov %vm6653_vm0 }
 0x216   : > { %6652 = vst [vmem:[#allocation23_spill] sm:$0xff] %v5273_v16  ;;  %v5277_v17 = vsel %vm6653_vm0, %v1133_v38, %v1134_v1  ;;  %v5281_v30 = vsel %vm6654_vm7, %v1134_v1, %v1135_v27  ;;  %v5287_v32 = vsel %vm6655_vm3, %v1182_v3, %v1183_v28  ;;  %v3750_v21 = vadd.f32 %v3749_v8, %v3748_v7  ;;  %v3751_v23 = vpop.f32.mrb[22].mxu0  ;;  %vm6659_vm2 = vmmov %vm6653_vm0 }
 0x217   : > { %v5295_v34 = vsel %vm6656_vm11, %v1181_v6, %v1182_v3  ;;  %v3752_v27 = vpop.f32.mrb[23].mxu0  ;;  %vm6660_vm13 = vmmov %vm6653_vm0 }
 0x218   : > { %6657 = vst [vmem:[#allocation24_spill] sm:$0xff] %v5295_v34  ;;  %v3808_v38 = vpop.f32.mrb[8].mxu1  ;;  %v3753_v18 = vadd.f32 %v3752_v27, %v3751_v23  ;;  %v994_v28 = vadd.f32 %v3750_v21, %v5180_v59  ;;  %vm6661_vm0 = vmmov %vm6655_vm3 }
 0x219   : > { %v1082_v7 = vpop.f32.mrb[9].mxu1  ;;  %vm6663_vm7 = vmmov %vm6659_vm2 }
 0x21a   : > { %v1083_v8 = vadd.f32 %v1082_v7, %v986_v41  ;;  %v3809_v52 = vpop.f32.mrb[10].mxu1  ;;  %v1091_v0 = vadd.f32 %v3808_v38, %v994_v28  ;;  %v997_v63 = vadd.f32 %v3753_v18, %v5180_v59  ;;  %vm6664_vm3 = vmmov %vm6661_vm0 }
 0x21b   : > { %v1085_v25 = vpop.f32.mrb[11].mxu1  ;;  %vm6665_vm11 = vmmov %vm6661_vm0 }
 0x21c   : > { %v5301_v57 = vmax.f32 %v1083_v8, 0.0  ;;  %v1086_v4 = vadd.f32 %v1085_v25, %v989_v54  ;;  %v5303_v6 = vmax.f32 %v1091_v0, 0.0  ;;  %v1094_v3 = vadd.f32 %v3809_v52, %v997_v63  ;;  %v3754_v56 = vpop.f32.mrb[24].mxu0 }
 0x21d   : > { %v3755_v21 = vpop.f32.mrb[25].mxu0 }
 0x21e   : > { %v1137_v35 = vrot.slane %v5301_v57, 7  ;;  %v1185_v23 = vrot.slane %v5301_v57, 1  ;;  %v5307_v27 = vmax.f32 %v1086_v4, 0.0  ;;  %v1139_v41 = vrot.slane %v5303_v6, 7  ;;  %v3757_v7 = vpop.f32.mrb[26].mxu0 }
 0x21f   : > { %v1187_v38 = vrot.slane %v5303_v6, 1  ;;  %v5311_v18 = vmax.f32 %v1094_v3, 0.0  ;;  %v3756_v28 = vadd.f32 %v3755_v21, %v3754_v56  ;;  %v3758_v54 = vpop.f32.mrb[27].mxu0 }
 0x220   : > { %v1138_v0 = vrot.slane %v5307_v27, 7  ;;  %v1186_v52 = vrot.slane %v5307_v27, 1  ;;  %v5319_v4 = vsel %vm6658_vm14, %v1136_v43, %v1137_v35  ;;  %v3759_v3 = vadd.f32 %v3758_v54, %v3757_v7  ;;  %vm6666_vm14 = vmmov %vm6661_vm0 }
 0x221   : > { %v1140_v25 = vrot.slane %v5311_v18, 7  ;;  %v1188_v8 = vrot.slane %v5311_v18, 1  ;;  %v1002_v56 = vadd.f32 %v3756_v28, %v5180_v59  ;;  %v5336_v43 = vsel %vm6661_vm0, %v1184_v45, %v1185_v23 }
 0x222   : > { %v5326_v21 = vsel %vm6659_vm2, %v1137_v35, %v1138_v0  ;;  %v5332_v63 = vsel %vm6660_vm13, %v1138_v0, %v1139_v41  ;;  %6662 = vst [vmem:[#allocation25_spill] sm:$0xff] %v5336_v43  ;;  %v1005_v36 = vadd.f32 %v3759_v3, %v5180_v59  ;;  %v5351_v45 = vsel %vm6664_vm3, %v1186_v52, %v1187_v38  ;;  %vm6667_vm13 = vmmov %vm6661_vm0 }
 0x223   : > { %v5343_v35 = vsel %vm6663_vm7, %v1139_v41, %v1140_v25  ;;  %v5355_v3 = vsel %vm6665_vm11, %v1185_v23, %v1186_v52  ;;  %v5359_v1 = vsel %vm6666_vm14, %v1187_v38, %v1188_v8  ;;  %vm6668_vm0 = vmmov %vm6659_vm2 }
 0x224   : > { %v3812_v54 = vpop.f32.mrb[12].mxu1  ;;  %v3760_v41 = vpop.f32.mrb[28].mxu0  ;;  %vm6669_vm7 = vmmov %vm6664_vm3 }
 0x225   : > { %v1098_v28 = vpop.f32.mrb[13].mxu1  ;;  %v3761_v26 = vpop.f32.mrb[29].mxu0  ;;  %vm6670_vm3 = vmmov %vm6668_vm0 }
 0x226   : > { %v1099_v55 = vadd.f32 %v1098_v28, %v1002_v56  ;;  %v3813_v0 = vpop.f32.mrb[14].mxu1  ;;  %v3762_v50 = vadd.f32 %v3761_v26, %v3760_v41  ;;  %v3763_v29 = vpop.f32.mrb[30].mxu0  ;;  %vm6671_vm11 = vmmov %vm6669_vm7 }
 0x227   : > { %v1101_v2 = vpop.f32.mrb[15].mxu1  ;;  %v3764_v16 = vpop.f32.mrb[31].mxu0  ;;  %vm6673_vm14 = vmmov %vm6668_vm0 }
 0x228   : > { %v5363_v60 = vmax.f32 %v1099_v55, 0.0  ;;  %v1102_v23 = vadd.f32 %v1101_v2, %v1005_v36  ;;  %v1010_v52 = vadd.f32 %v3762_v50, %v5180_v59  ;;  %v3765_v43 = vadd.f32 %v3764_v16, %v3763_v29 }
 0x229   : > { %v6676_v16 = vrot.slane %v5188_v20, 1 }
 0x22a   : > { %v1141_v38 = vrot.slane %v5363_v60, 7  ;;  %v1189_v42 = vrot.slane %v5363_v60, 1  ;;  %v5368_v34 = vmax.f32 %v1102_v23, 0.0  ;;  %v1107_v7 = vadd.f32 %v3812_v54, %v1010_v52 }
 0x22b   : > { %v1013_v56 = vadd.f32 %v3765_v43, %v5180_v59 }
 0x22c   : > { %v1142_v26 = vrot.slane %v5368_v34, 7  ;;  %v1190_v28 = vrot.slane %v5368_v34, 1  ;;  %v1239_v55 = vpack.c.bf16 %v5368_v34, %v5363_v60  ;;  %v5377_v2 = vsel %vm6659_vm2, %v1140_v25, %v1141_v38  ;;  %vm6674_vm2 = vmmov %vm6668_vm0  ;;  %v5488_v60 = vld [vmem:[#allocation8 + $0x210] ss:$8 sps:$4 sm:$0xff]   ;;  %v5491_v34 = vld [vmem:[#allocation8 + $0x224] ss:$8 sps:$4 sm:$0xff]  }
 0x22d   : > { %v5379_v29 = vmax.f32 %v1107_v7, 0.0  ;;  %v1110_v50 = vadd.f32 %v3813_v0, %v1013_v56  ;;  %v5383_v36 = vsel %vm6667_vm13, %v1188_v8, %v1189_v42  ;;  %vm6675_vm13 = vmmov %vm6669_vm7  ;;  %6693 = vst [vmem:[#allocation27_spill] sm:$0xff] %v5488_v60 }
 0x22e   : > { %v5387_v59 = vsel %vm6668_vm0, %v1141_v38, %v1142_v26  ;;  %v5393_v43 = vsel %vm6669_vm7, %v1189_v42, %v1190_v28  ;;  %v6672_v42 = vrot.slane %v5188_v20, 7  ;;  %vm6677_vm0 = vmmov %vm6669_vm7  ;;  %v4170_v20 = vld [vmem:[#allocation7 + $0x120] ss:$8 sps:$4 sm:$0xff]   ;;  %vm6688_vm7 = vnez %v6629_v40  ;;  %6694 = vst [vmem:[#allocation28_spill] sm:$0xff] %v5491_v34 }
 0x22f   : > { %v1143_v25 = vrot.slane %v5379_v29, 7  ;;  %v1191_v7 = vrot.slane %v5379_v29, 1  ;;  %v1128_v54 = vmax.f32 %v1110_v50, 0.0  ;;  %v3357_v8 = vpack.c.bf16 %v5387_v59, %v5377_v2  ;;  %v4164_v50 = vld [vmem:[#allocation7 + $0x100] ss:$8 sps:$4 sm:$0xff]  }
 0x231   : > { %v1144_v0 = vrot.slane %v1128_v54, 7  ;;  %v1192_v41 = vrot.slane %v1128_v54, 1  ;;  %v1240_v23 = vpack.c.bf16 %v1128_v54, %v5379_v29  ;;  %v1146_v52 = vsel %vm6670_vm3, %v1142_v26, %v1143_v25 }
 0x232   : > { %v5404_v38 = vsel %vm6671_vm11, %v1190_v28, %v1191_v7  ;;  %v4169_v28 = vld [vmem:[#allocation7 + $0x114] ss:$8 sps:$4 sm:$0xff]   ;;  %vm6692_vm3 = vnez %v6601_v13  ;;  %vm6698_vm11 = vnez %v6605_v12 }
 0x233   : > { %v1160_v56 = vsel %vm6673_vm14, %v1144_v0, %v6672_v42  ;;  %v1145_v2 = vsel %vm6674_vm2, %v1143_v25, %v1144_v0  ;;  %v3397_v59 = vpack.c.bf16 %v5404_v38, %v5393_v43  ;;  %v5416_v29 = vsel %vm6675_vm13, %v1191_v7, %v1192_v41  ;;  %v4172_v0 = vld [vmem:[#allocation7 + $0x124] ss:$8 sps:$4 sm:$0xff]   ;;  %v5595_v38 = vld [vmem:[#allocation8 + $0x2c0] ss:$8 sps:$4 sm:$0xff]  }
 0x234   : > { %v3327_v26 = vpack.c.bf16 %v5213_v48, %v1160_v56  ;;  %v3362_v54 = vpack.c.bf16 %v1145_v2, %v1146_v52  ;;  %v5423_v42 = vsel %vm6677_vm0, %v1192_v41, %v6676_v16  ;;  %v6678_v7 = vpack.c.bf16 %v5190_v22, %v5186_v19  ;;  %v4167_v48 = vld [vmem:[#allocation7 + $0x110] ss:$8 sps:$4 sm:$0xff]   ;;  %v4175_v52 = vld [vmem:[#allocation7 + $0x134] ss:$8 sps:$4 sm:$0xff]   ;;  %v4178_v22 = vld [vmem:[#allocation7 + $0x144] ss:$8 sps:$4 sm:$0xff]  }
 0x235   : > { %v3402_v25 = vpack.c.bf16 %v5423_v42, %v5416_v29  ;;  %v6679_v16 = vpack.c.bf16 %v5203_v46, %v5227_v58  ;;  %v6680_v41 = vpack.c.bf16 %v5247_v39, %v5239_v24  ;;  %v4173_v19 = vld [vmem:[#allocation7 + $0x130] ss:$8 sps:$4 sm:$0xff]   ;;  %v4176_v56 = vld [vmem:[#allocation7 + $0x140] ss:$8 sps:$4 sm:$0xff]   ;;  %v6681_v2 = vpack.c.bf16 %v5277_v17, %v5261_v5  ;;  %v4184_v24 = vld [vmem:[#allocation7 + $0x164] ss:$8 sps:$4 sm:$0xff]  }
 0x236   : > { %3328 = vmatmul.mubr.msk.bf16.vlgmr.msra.gmra.mrb[32].mxu0 %vm4986_vm6, %v3327_v26  ;;  %v6682_v46 = vpack.c.bf16 %v5243_v33, %v5237_v9  ;;  %v4179_v58 = vld [vmem:[#allocation7 + $0x150] ss:$8 sps:$4 sm:$0xff]   ;;  %v4182_v39 = vld [vmem:[#allocation7 + $0x160] ss:$8 sps:$4 sm:$0xff]   ;;  %v4187_v26 = vld [vmem:[#allocation7 + $0x174] ss:$8 sps:$4 sm:$0xff]   ;;  %v6684_v5 = vpack.c.bf16 %v5307_v27, %v5301_v57  ;;  %v6685_v17 = vpack.c.bf16 %v5326_v21, %v5319_v4 }
 0x237   : > { %1663 = vmatpush1.bf16.msra.mxu0 %v4164_v50  ;;  %1591 = vmatprep.mubr.bf16.mxu0 %v6678_v7  ;;  %v4181_v50 = vld [vmem:[#allocation7 + $0x154] ss:$8 sps:$4 sm:$0xff]   ;;  %v4185_v9 = vld [vmem:[#allocation7 + $0x170] ss:$8 sps:$4 sm:$0xff]   ;;  %v4190_v33 = vld [vmem:[#allocation8 + $0x204] ss:$8 sps:$4 sm:$0xff]  }
 0x238   : > { %1664 = vmatprep.subr.bf16.mxu0 %v4169_v28  ;;  %v6683_v28 = vpack.c.bf16 %v5265_v10, %v5281_v30  ;;  %v6686_v10 = vpack.c.bf16 %v5311_v18, %v5303_v6  ;;  %v6687_v30 = vpack.c.bf16 %v5343_v35, %v5332_v63  ;;  %v6689_v57 = vmov 0   ;;  %v5477_v6 = vld [vmem:[#allocation8 + $0x200] ss:$8 sps:$4 sm:$0xff]   ;;  %v5479_v27 = vld [vmem:[#allocation8 + $0x214] ss:$8 sps:$4 sm:$0xff]   ;;  %6734 = vst [vmem:[#allocation44_spill] sm:$0xff] %v5595_v38 }
 0x239   : > { %6690 = vst [vmem:[#allocation26_spill] sm:$0xff] %v5479_v27  ;;  %v6691_v18 = vpack.c.bf16 %v5217_v49, %v5223_v53  ;;  %v5494_v63 = vld [vmem:[#allocation8 + $0x220] ss:$8 sps:$4 sm:$0xff]   ;;  %v5497_v49 = vld [vmem:[#allocation8 + $0x234] ss:$8 sps:$4 sm:$0xff]   ;;  %v6697_v53 = vpack.c.bf16 %v5269_v11, %v5207_v47 }
 0x23a   : > { %6695 = vst [vmem:[#allocation29_spill] sm:$0xff] %v5494_v63  ;;  %6696 = vst [vmem:[#allocation30_spill] sm:$0xff] %v5497_v49  ;;  %v5506_v4 = vld [vmem:[#allocation8 + $0x230] ss:$8 sps:$4 sm:$0xff]   ;;  %v5509_v21 = vld [vmem:[#allocation8 + $0x244] ss:$8 sps:$4 sm:$0xff]  }
 0x23b   : > { %1665 = vmatpush1.bf16.msra.mxu0 %v4167_v48  ;;  %6699 = vst [vmem:[#allocation31_spill] sm:$0xff] %v5506_v4  ;;  %6700 = vst [vmem:[#allocation32_spill] sm:$0xff] %v5509_v21  ;;  %v5512_v35 = vld [vmem:[#allocation8 + $0x240] ss:$8 sps:$4 sm:$0xff]   ;;  %v5515_v47 = vld [vmem:[#allocation8 + $0x254] ss:$8 sps:$4 sm:$0xff]  }
 0x23c   : > { %1666 = vmatprep.subr.bf16.mxu0 %v4172_v0  ;;  %6701 = vst [vmem:[#allocation33_spill] sm:$0xff] %v5512_v35  ;;  %6702 = vst [vmem:[#allocation34_spill] sm:$0xff] %v5515_v47  ;;  %v6703_v11 = vld [vmem:[#allocation24_spill] sm:$0xff]  ;;  %v5530_v7 = vld [vmem:[#allocation8 + $0x260] ss:$8 sps:$4 sm:$0xff]  }
 0x23d   : > { %6709 = vst [vmem:[#allocation35_spill] sm:$0xff] %v5530_v7  ;;  %v6711_v48 = vld [vmem:[#allocation25_spill] sm:$0xff]  ;;  %v6712_v0 = vld [vmem:[#allocation23_spill] sm:$0xff] }
 0x23e   : > { %3333 = vmatmul.mubr.msk.bf16.gmra.mrb[36].mxu0 %vm5003_vm9, %v6679_v16  ;;  %v5542_v16 = vld [vmem:[#allocation8 + $0x270] ss:$8 sps:$4 sm:$0xff]   ;;  %v5593_v43 = vld [vmem:[#allocation8 + $0x2c4] ss:$8 sps:$4 sm:$0xff]   ;;  %v5599_v29 = vld [vmem:[#allocation8 + $0x2d4] ss:$8 sps:$4 sm:$0xff]  }
 0x23f   : > { %1601 = vmatprep.mubr.bf16.mxu0 %v6680_v41  ;;  %1667 = vmatpush1.bf16.msra.mxu0 %v4170_v20  ;;  %v6713_v20 = vpack.c.bf16 %v6711_v48, %v6712_v0  ;;  %6716 = vst [vmem:[#allocation25_spill] sm:$0xff] %v5542_v16  ;;  %v5545_v41 = vld [vmem:[#allocation8 + $0x284] ss:$8 sps:$4 sm:$0xff]   ;;  %6733 = vst [vmem:[#allocation43_spill] sm:$0xff] %v5593_v43  ;;  %v5601_v42 = vld [vmem:[#allocation8 + $0x2d0] ss:$8 sps:$4 sm:$0xff]  }
 0x240   : > { %1668 = vmatprep.subr.bf16.mxu0 %v4175_v52  ;;  %v6714_v52 = vld [vmem:[#allocation18_spill] sm:$0xff]  ;;  %6717 = vst [vmem:[#allocation23_spill] sm:$0xff] %v5545_v41  ;;  %6735 = vst [vmem:[#allocation45_spill] sm:$0xff] %v5599_v29  ;;  %v4251_v48 = vld [vmem:[#allocation8 + $0x50] ss:$8 sps:$4 sm:$0xff]  }
 0x241   : > { %vm6715_vm2 = vnez %v6714_v52  ;;  %6736 = vst [vmem:[#allocation46_spill] sm:$0xff] %v5601_v42  ;;  %v4256_v0 = vld [vmem:[#allocation8 + $0x64] ss:$8 sps:$4 sm:$0xff]  }
 0x243   : > { %1669 = vmatpush1.bf16.msra.mxu0 %v4173_v19  ;;  %v5548_v19 = vld [vmem:[#allocation8 + $0x280] ss:$8 sps:$4 sm:$0xff]  }
 0x244   : > { %1670 = vmatprep.subr.bf16.mxu0 %v4178_v22  ;;  %6718 = vst [vmem:[#allocation18_spill] sm:$0xff] %v5548_v19  ;;  %v5551_v22 = vld [vmem:[#allocation8 + $0x294] ss:$8 sps:$4 sm:$0xff]  }
 0x245   : > { %6719 = vst [vmem:[#allocation37_spill] sm:$0xff] %v5551_v22 }
 0x246   : > { %3338 = vmatmul.mubr.msk.bf16.gmra.mrb[40].mxu0 %vm5029_vm15, %v6681_v2  ;;  %v5560_v2 = vld [vmem:[#allocation8 + $0x290] ss:$8 sps:$4 sm:$0xff]  }
 0x247   : > { %1611 = vmatprep.mubr.bf16.mxu0 %v6682_v46  ;;  %1671 = vmatpush1.bf16.msra.mxu0 %v4176_v56  ;;  %v6720_v56 = vpack.c.bf16 %v5351_v45, %v5355_v3  ;;  %6723 = vst [vmem:[#allocation38_spill] sm:$0xff] %v5560_v2  ;;  %v5563_v46 = vld [vmem:[#allocation8 + $0x2a4] ss:$8 sps:$4 sm:$0xff]   ;;  %v6726_v45 = vpack.c.bf16 %v5383_v36, %v5359_v1  ;;  %v6727_v3 = vld [vmem:[#allocation20_spill] sm:$0xff] }
 0x248   : > { %1672 = vmatprep.subr.bf16.mxu0 %v4181_v50  ;;  %v6721_v50 = vld [vmem:[#allocation19_spill] sm:$0xff]  ;;  %6724 = vst [vmem:[#allocation39_spill] sm:$0xff] %v5563_v46  ;;  %vm6728_vm0 = vnez %v6727_v3 }
 0x249   : > { %vm6722_vm13 = vnez %v6721_v50  ;;  %v5587_v1 = vld [vmem:[#allocation8 + $0x2b4] ss:$8 sps:$4 sm:$0xff]   ;;  %v5589_v36 = vld [vmem:[#allocation8 + $0x2b0] ss:$8 sps:$4 sm:$0xff]  }
 0x24a   : > { %6731 = vst [vmem:[#allocation41_spill] sm:$0xff] %v5587_v1  ;;  %6732 = vst [vmem:[#allocation42_spill] sm:$0xff] %v5589_v36 }
 0x24b   : > { %1673 = vmatpush1.bf16.msra.mxu0 %v4179_v58  ;;  %v5566_v58 = vld [vmem:[#allocation8 + $0x2a0] ss:$8 sps:$4 sm:$0xff]  }
 0x24c   : > { %1674 = vmatprep.subr.bf16.mxu0 %v4184_v24  ;;  %6725 = vst [vmem:[#allocation40_spill] sm:$0xff] %v5566_v58 }
 0x24e   : > { %3343 = vmatmul.mubr.msk.bf16.gmra.mrb[44].mxu0 %vm5060_vm8, %v6683_v28  ;;  %v4233_v28 = vld [vmem:[#allocation8 + $0x10] ss:$8 sps:$4 sm:$0xff]  }
 0x24f   : > { %1621 = vmatprep.mubr.bf16.mxu0 %v6684_v5  ;;  %1675 = vmatpush1.bf16.msra.mxu0 %v4182_v39  ;;  %v5605_v5 = vld [vmem:[#allocation8 + $0x2e4] ss:$8 sps:$4 sm:$0xff]  }
 0x250   : > { %1676 = vmatprep.subr.bf16.mxu0 %v4187_v26  ;;  %v4227_v26 = vld [vmem:[#allocation8] ss:$8 sps:$4 sm:$0xff]   ;;  %6737 = vst [vmem:[#allocation47_spill] sm:$0xff] %v5605_v5 }
 0x253   : > { %1677 = vmatpush1.bf16.msra.mxu0 %v4185_v9  ;;  %v5607_v9 = vld [vmem:[#allocation8 + $0x2e0] ss:$8 sps:$4 sm:$0xff]  }
 0x254   : > { %2861 = vmatprep.subr.bf16.mxu0 %v4190_v33  ;;  %6738 = vst [vmem:[#allocation48_spill] sm:$0xff] %v5607_v9  ;;  %v4241_v33 = vld [vmem:[#allocation8 + $0x24] ss:$8 sps:$4 sm:$0xff]  }
 0x256   : > { %3348 = vmatmul.mubr.msk.bf16.gmra.mrb[48].mxu0 %vm5089_vm10, %v6685_v17  ;;  %v4239_v17 = vld [vmem:[#allocation8 + $0x20] ss:$8 sps:$4 sm:$0xff]  }
 0x257   : > { %1631 = vmatprep.mubr.bf16.mxu0 %v6686_v10  ;;  %v5611_v10 = vld [vmem:[#allocation8 + $0x2f4] ss:$8 sps:$4 sm:$0xff]  }
 0x258   : > { %6739 = vst [vmem:[#allocation49_spill] sm:$0xff] %v5611_v10 }
 0x25e   : > { %3353 = vmatmul.mubr.msk.bf16.gmra.mrb[52].mxu0 %vm5117_vm4, %v6687_v30  ;;  %v5613_v30 = vld [vmem:[#allocation8 + $0x2f0] ss:$8 sps:$4 sm:$0xff]  }
 0x25f   : > { %1641 = vmatprep.mubr.bf16.mxu0 %v1239_v55  ;;  %v6704_v55 = vpack.c.bf16 %v5287_v32, %v6703_v11  ;;  %v5533_v32 = vld [vmem:[#allocation8 + $0x274] ss:$8 sps:$4 sm:$0xff]   ;;  %6740 = vst [vmem:[#allocation50_spill] sm:$0xff] %v5613_v30  ;;  %v4248_v11 = vld [vmem:[#allocation8 + $0x40] ss:$8 sps:$4 sm:$0xff]  }
 0x260   : > { %6710 = vst [vmem:[#allocation36_spill] sm:$0xff] %v5533_v32 }
 0x266   : > { %3358 = vmatmul.mubr.msk.bf16.gmra.mrb[56].mxu0 %vm6688_vm7, %v3357_v8  ;;  %v6705_v8 = vld [vmem:[#allocation17_spill] sm:$0xff] }
 0x267   : > { %1651 = vmatprep.mubr.bf16.mxu0 %v1240_v23  ;;  %vm6706_vm14 = vnez %v6705_v8  ;;  %v5524_v23 = vld [vmem:[#allocation8 + $0x250] ss:$8 sps:$4 sm:$0xff]  }
 0x268   : > { %6707 = vst [vmem:[#allocation24_spill] sm:$0xff] %v5524_v23 }
 0x26e   : > { %3363 = vmatmul.mubr.msk.bf16.gmra.mrb[60].mxu0 %vm5169_vm12, %v3362_v54  ;;  %v5527_v54 = vld [vmem:[#allocation8 + $0x264] ss:$8 sps:$4 sm:$0xff]  }
 0x26f   : > { %1694 = vmatprep.mubr.bf16.mxu0 %v6689_v57  ;;  %6708 = vst [vmem:[#allocation17_spill] sm:$0xff] %v5527_v54 }
 0x276   : > { %3368 = vmatmul.mubr.msk.bf16.vlgmr.msra.gmra.mrb[32].mxu0 %vm6692_vm3, %v6691_v18  ;;  %v4245_v18 = vld [vmem:[#allocation8 + $0x30] ss:$8 sps:$4 sm:$0xff]  }
 0x277   : > { %1704 = vmatprep.mubr.bf16.mxu0 %v6689_v57  ;;  %2862 = vmatpush1.bf16.msra.mxu0 %v5477_v6 }
 0x278   : > { %2863 = vmatprep.subr.bf16.mxu0 %v5479_v27 }
 0x27b   : > { %2864 = vmatpush1.bf16.msra.mxu0 %v5488_v60 }
 0x27c   : > { %2865 = vmatprep.subr.bf16.mxu0 %v5491_v34 }
 0x27e   : > { %3373 = vmatmul.mubr.msk.bf16.gmra.mrb[36].mxu0 %vm6698_vm11, %v6697_v53  ;;  %v4250_v53 = vld [vmem:[#allocation8 + $0x44] ss:$8 sps:$4 sm:$0xff]  }
 0x27f   : > { %1714 = vmatprep.mubr.bf16.mxu0 %v6689_v57  ;;  %2866 = vmatpush1.bf16.msra.mxu0 %v5494_v63 }
 0x280   : > { %2867 = vmatprep.subr.bf16.mxu0 %v5497_v49 }
 0x283   : > { %2868 = vmatpush1.bf16.msra.mxu0 %v5506_v4 }
 0x284   : > { %2869 = vmatprep.subr.bf16.mxu0 %v5509_v21 }
 0x286   : > { %3378 = vmatmul.mubr.msk.bf16.gmra.mrb[40].mxu0 %vm6706_vm14, %v6704_v55  ;;  %v4253_v55 = vld [vmem:[#allocation8 + $0x54] ss:$8 sps:$4 sm:$0xff]  }
 0x287   : > { %1724 = vmatprep.mubr.bf16.mxu0 %v6689_v57  ;;  %2870 = vmatpush1.bf16.msra.mxu0 %v5512_v35 }
 0x288   : > { %2871 = vmatprep.subr.bf16.mxu0 %v5515_v47 }
 0x28b   : > { %2872 = vmatpush1.bf16.msra.mxu0 %v5524_v23 }
 0x28c   : > { %2873 = vmatprep.subr.bf16.mxu0 %v5527_v54 }
 0x28e   : > { %3383 = vmatmul.mubr.msk.bf16.gmra.mrb[44].mxu0 %vm6715_vm2, %v6713_v20  ;;  %v4254_v20 = vld [vmem:[#allocation8 + $0x60] ss:$8 sps:$4 sm:$0xff]  }
 0x28f   : > { %1734 = vmatprep.mubr.bf16.mxu0 %v6689_v57  ;;  %2874 = vmatpush1.bf16.msra.mxu0 %v5530_v7 }
 0x290   : > { %2875 = vmatprep.subr.bf16.mxu0 %v5533_v32 }
 0x293   : > { %2876 = vmatpush1.bf16.msra.mxu0 %v5542_v16 }
 0x294   : > { %2877 = vmatprep.subr.bf16.mxu0 %v5545_v41 }
 0x296   : > { %3388 = vmatmul.mubr.msk.bf16.gmra.mrb[48].mxu0 %vm6722_vm13, %v6720_v56  ;;  %v4259_v56 = vld [vmem:[#allocation8 + $0x74] ss:$8 sps:$4 sm:$0xff]  }
 0x297   : > { %1744 = vmatprep.mubr.bf16.mxu0 %v6689_v57  ;;  %2878 = vmatpush1.bf16.msra.mxu0 %v5548_v19 }
 0x298   : > { %2879 = vmatprep.subr.bf16.mxu0 %v5551_v22 }
 0x29b   : > { %2880 = vmatpush1.bf16.msra.mxu0 %v5560_v2 }
 0x29c   : > { %2881 = vmatprep.subr.bf16.mxu0 %v5563_v46 }
 0x29e   : > { %3393 = vmatmul.mubr.msk.bf16.gmra.mrb[52].mxu0 %vm6728_vm0, %v6726_v45  ;;  %v4257_v45 = vld [vmem:[#allocation8 + $0x70] ss:$8 sps:$4 sm:$0xff]  }
 0x29f   : > { %1754 = vmatprep.mubr.bf16.mxu0 %v6689_v57  ;;  %2882 = vmatpush1.bf16.msra.mxu0 %v5566_v58 }
 0x2a0   : > { %2883 = vmatprep.subr.bf16.mxu0 %v5587_v1 }
 0x2a3   : > { %2884 = vmatpush1.bf16.msra.mxu0 %v5589_v36 }
 0x2a4   : > { %2885 = vmatprep.subr.bf16.mxu0 %v5593_v43 }
 0x2a6   : > { %3398 = vmatmul.mubr.msk.bf16.gmra.mrb[56].mxu0 %vm5159_vm5, %v3397_v59  ;;  %v4229_v59 = vld [vmem:[#allocation8 + $0x4] ss:$8 sps:$4 sm:$0xff]   ;;  %vm6744_vm5 = vcmp.lt.s32.totalorder %v4885_v44, 7 }
 0x2a7   : > { %1764 = vmatprep.mubr.bf16.mxu0 %v6689_v57  ;;  %2886 = vmatpush1.bf16.msra.mxu0 %v5595_v38  ;;  %v4247_v57 = vld [vmem:[#allocation8 + $0x34] ss:$8 sps:$4 sm:$0xff]   ;;  %vm6746_vm0 = vmmov %vm6744_vm5 }
 0x2a8   : > { %2635 = vmatprep.subr.bf16.mxu1 %v4229_v59  ;;  %2887 = vmatprep.subr.bf16.mxu0 %v5599_v29  ;;  %v4262_v59 = vld [vmem:[#allocation8 + $0x84] ss:$8 sps:$4 sm:$0xff]  }
 0x2a9   : > { %2636 = vmatpush1.bf16.msra.mxu1 %v4227_v26  ;;  %v4260_v26 = vld [vmem:[#allocation8 + $0x80] ss:$8 sps:$4 sm:$0xff]  }
 0x2ab   : > { %2888 = vmatpush1.bf16.msra.mxu0 %v5601_v42 }
 0x2ac   : > { %2889 = vmatprep.subr.bf16.mxu0 %v5605_v5 }
 0x2ae   : > { %3403 = vmatmul.mubr.msk.bf16.gmra.mrb[60].mxu0 %vm5165_vm1, %v3402_v25  ;;  %v4235_v25 = vld [vmem:[#allocation8 + $0x14] ss:$8 sps:$4 sm:$0xff]   ;;  %vm6742_vm1 = vcmp.lt.s32.totalorder %v4885_v44, 1 }
 0x2af   : > { %2637 = vmatprep.subr.bf16.mxu1 %v4235_v25  ;;  %2890 = vmatpush1.bf16.msra.mxu0 %v5607_v9  ;;  %v4265_v25 = vld [vmem:[#allocation8 + $0x94] ss:$8 sps:$4 sm:$0xff]  }
 0x2b0   : > { %2638 = vmatpush1.bf16.msra.mxu1 %v4233_v28  ;;  %2891 = vmatprep.subr.bf16.mxu0 %v5611_v10  ;;  %v4263_v28 = vld [vmem:[#allocation8 + $0x90] ss:$8 sps:$4 sm:$0xff]  }
 0x2b1   : > { %2639 = vmatprep.subr.bf16.mxu1 %v4241_v33  ;;  %v4268_v33 = vld [vmem:[#allocation8 + $0xa4] ss:$8 sps:$4 sm:$0xff]  }
 0x2b3   : > { %2892 = vmatpush1.bf16.msra.mxu0 %v5613_v30 }
 0x2b4   : > { %2640 = vmatpush1.bf16.msra.mxu1 %v4239_v17  ;;  %v4266_v17 = vld [vmem:[#allocation8 + $0xa0] ss:$8 sps:$4 sm:$0xff]  }
 0x2b5   : > { %2641 = vmatprep.subr.bf16.mxu1 %v4247_v57  ;;  %v4271_v57 = vld [vmem:[#allocation8 + $0xb4] ss:$8 sps:$4 sm:$0xff]  }
 0x2b8   : > { %2642 = vmatpush1.bf16.msra.mxu1 %v4245_v18  ;;  %v4269_v18 = vld [vmem:[#allocation8 + $0xb0] ss:$8 sps:$4 sm:$0xff]  }
 0x2b9   : > { %2643 = vmatprep.subr.bf16.mxu1 %v4250_v53  ;;  %v4274_v53 = vld [vmem:[#allocation8 + $0xc4] ss:$8 sps:$4 sm:$0xff]  }
 0x2bc   : > { %2644 = vmatpush1.bf16.msra.mxu1 %v4248_v11  ;;  %v4272_v11 = vld [vmem:[#allocation8 + $0xc0] ss:$8 sps:$4 sm:$0xff]  }
 0x2bd   : > { %2645 = vmatprep.subr.bf16.mxu1 %v4253_v55  ;;  %v4277_v55 = vld [vmem:[#allocation8 + $0xd4] ss:$8 sps:$4 sm:$0xff]  }
 0x2c0   : > { %2646 = vmatpush1.bf16.msra.mxu1 %v4251_v48  ;;  %v4275_v48 = vld [vmem:[#allocation8 + $0xd0] ss:$8 sps:$4 sm:$0xff]  }
 0x2c1   : > { %2647 = vmatprep.subr.bf16.mxu1 %v4256_v0  ;;  %v4280_v0 = vld [vmem:[#allocation8 + $0xe4] ss:$8 sps:$4 sm:$0xff]  }
 0x2c4   : > { %2648 = vmatpush1.bf16.msra.mxu1 %v4254_v20  ;;  %v4278_v20 = vld [vmem:[#allocation8 + $0xe0] ss:$8 sps:$4 sm:$0xff]  }
 0x2c5   : > { %2649 = vmatprep.subr.bf16.mxu1 %v4259_v56  ;;  %v4283_v56 = vld [vmem:[#allocation8 + $0xf4] ss:$8 sps:$4 sm:$0xff]  }
 0x2c8   : > { %2650 = vmatpush1.bf16.msra.mxu1 %v4257_v45  ;;  %v4281_v45 = vld [vmem:[#allocation8 + $0xf0] ss:$8 sps:$4 sm:$0xff]  }
 0x2c9   : > { %2651 = vmatprep.subr.bf16.mxu1 %v4262_v59  ;;  %v4286_v59 = vld [vmem:[#allocation8 + $0x104] ss:$8 sps:$4 sm:$0xff]  }
 0x2cc   : > { %2652 = vmatpush1.bf16.msra.mxu1 %v4260_v26  ;;  %v6507_v26 = vsub.s32 0, %v4885_v44 }
 0x2cd   : > { %2653 = vmatprep.subr.bf16.mxu1 %v4265_v25  ;;  %v1297_v25 = vld [vmem:[%s6463_s6] sm:$0x3] }
 0x2d0   : > { %2654 = vmatpush1.bf16.msra.mxu1 %v4263_v28  ;;  %v6506_v28 = vsub.s32 1, %v4885_v44 }
 0x2d1   : > { %2655 = vmatprep.subr.bf16.mxu1 %v4268_v33  ;;  %v5624_v33 = vrot.slane %v1297_v25, %v6507_v26 }
 0x2d4   : > { %2656 = vmatpush1.bf16.msra.mxu1 %v4266_v17  ;;  %v5628_v17 = vrot.slane %v1297_v25, %v6506_v28 }
 0x2d5   : > { %2657 = vmatprep.subr.bf16.mxu1 %v4271_v57 }
 0x2d8   : > { %2658 = vmatpush1.bf16.msra.mxu1 %v4269_v18 }
 0x2d9   : > { %2659 = vmatprep.subr.bf16.mxu1 %v4274_v53 }
 0x2dc   : > { %2660 = vmatpush1.bf16.msra.mxu1 %v4272_v11 }
 0x2dd   : > { %2661 = vmatprep.subr.bf16.mxu1 %v4277_v55 }
 0x2e0   : > { %2662 = vmatpush1.bf16.msra.mxu1 %v4275_v48 }
 0x2e1   : > { %2663 = vmatprep.subr.bf16.mxu1 %v4280_v0 }
 0x2e4   : > { %2664 = vmatpush1.bf16.msra.mxu1 %v4278_v20 }
 0x2e5   : > { %2665 = vmatprep.subr.bf16.mxu1 %v4283_v56 }
 0x2e8   : > { %2666 = vmatpush1.bf16.msra.mxu1 %v4281_v45 }
 0x2e9   : > { %2748 = vmatprep.subr.bf16.mxu1 %v4286_v59 }
 0x349   : > { %v1696_v57 = vpop.f32.mrb[32].mxu0 }
 0x34a   : > { %v3846_v18 = vadd.f32 %v1696_v57, %v5624_v33  ;;  %v1698_v53 = vpop.f32.mrb[33].mxu0 }
 0x34b   : > { %v3847_v11 = vadd.f32 %v1698_v53, %v5628_v17  ;;  %v1700_v55 = vpop.f32.mrb[34].mxu0 }
 0x34c   : > { %v5632_v48 = vmax.f32 %v3846_v18, 0.0  ;;  %v3848_v0 = vadd.f32 %v1700_v55, %v5624_v33  ;;  %v1702_v20 = vpop.f32.mrb[35].mxu0 }
 0x34d   : > { %v5635_v56 = vmax.f32 %v3847_v11, 0.0  ;;  %v3849_v45 = vadd.f32 %v1702_v20, %v5628_v17 }
 0x34e   : > { %v5638_v59 = vmax.f32 %v3848_v0, 0.0  ;;  %v6741_v28 = vrot.slane %v5632_v48, 7  ;;  %v6743_v39 = vrot.slane %v5632_v48, 1 }
 0x34f   : > { %v5642_v57 = vmax.f32 %v3849_v45, 0.0  ;;  %v6745_v10 = vrot.slane %v5635_v56, 1  ;;  %v6747_v50 = vrot.slane %v5635_v56, 7 }
 0x350   : > { %v1809_v18 = vrot.slane %v5638_v59, 7  ;;  %v1905_v26 = vrot.slane %v5638_v59, 1 }
 0x351   : > { %v1810_v0 = vrot.slane %v5642_v57, 7  ;;  %v1906_v20 = vrot.slane %v5642_v57, 1  ;;  %v1706_v25 = vpop.f32.mrb[36].mxu0  ;;  %v6854_v40 = vpack.c.bf16 %v5642_v57, %v5635_v56 }
 0x352   : > { %v5658_v53 = vsel %vm6742_vm1, %v6741_v28, %v1809_v18  ;;  %v1963_v11 = vsel %vm6744_vm5, %v6743_v39, %v1905_v26  ;;  %v3850_v55 = vadd.f32 %v1706_v25, %v5624_v33  ;;  %v1708_v24 = vpop.f32.mrb[37].mxu0  ;;  %vm6752_vm5 = vmmov %vm6746_vm0 }
 0x353   : > { %v3851_v3 = vadd.f32 %v1708_v24, %v5628_v17  ;;  %v1710_v30 = vpop.f32.mrb[38].mxu0  ;;  %v1964_v45 = vsel %vm6746_vm0, %v6745_v10, %v1906_v20  ;;  %v5674_v28 = vsel %vm6742_vm1, %v6747_v50, %v1810_v0  ;;  %vm6753_vm0 = vmmov %vm6742_vm1 }
 0x354   : > { %v5676_v9 = vmax.f32 %v3850_v55, 0.0  ;;  %v3852_v39 = vadd.f32 %v1710_v30, %v5624_v33  ;;  %v1712_v25 = vpop.f32.mrb[39].mxu0  ;;  %vm6754_vm1 = vmmov %vm6752_vm5 }
 0x355   : > { %v5679_v5 = vmax.f32 %v3851_v3, 0.0  ;;  %v3853_v24 = vadd.f32 %v1712_v25, %v5628_v17  ;;  %vm6756_vm13 = vmmov %vm6753_vm0 }
 0x356   : > { %6748 = vst [vmem:[#allocation51_spill] sm:$0xff] %v5676_v9  ;;  %v1811_v42 = vrot.slane %v5676_v9, 7  ;;  %v1907_v29 = vrot.slane %v5676_v9, 1  ;;  %v5684_v10 = vmax.f32 %v3852_v39, 0.0  ;;  %vm6758_vm12 = vmmov %vm6756_vm13 }
 0x357   : > { %6749 = vst [vmem:[#allocation52_spill] sm:$0xff] %v5679_v5  ;;  %v1812_v38 = vrot.slane %v5679_v5, 7  ;;  %v1908_v50 = vrot.slane %v5679_v5, 1  ;;  %v5688_v43 = vmax.f32 %v3853_v24, 0.0 }
 0x358   : > { %6750 = vst [vmem:[#allocation53_spill] sm:$0xff] %v5684_v10  ;;  %v1961_v30 = vsel %vm6752_vm5, %v1905_v26, %v1907_v29  ;;  %v1813_v3 = vrot.slane %v5684_v10, 7  ;;  %v1909_v55 = vrot.slane %v5684_v10, 1  ;;  %v5696_v25 = vsel %vm6753_vm0, %v1809_v18, %v1811_v42  ;;  %vm6755_vm5 = vmmov %vm6754_vm1 }
 0x359   : > { %6751 = vst [vmem:[#allocation54_spill] sm:$0xff] %v5688_v43  ;;  %v3588_v36 = vpack.c.bf16 %v1961_v30, %v1963_v11  ;;  %v1814_v39 = vrot.slane %v5688_v43, 7  ;;  %v1910_v1 = vrot.slane %v5688_v43, 1  ;;  %v1716_v58 = vpop.f32.mrb[40].mxu0  ;;  %v1962_v24 = vsel %vm6754_vm1, %v1906_v20, %v1908_v50  ;;  %vm6757_vm0 = vmmov %vm6754_vm1 }
 0x35a   : > { %v3854_v46 = vadd.f32 %v1716_v58, %v5624_v33  ;;  %v1718_v26 = vpop.f32.mrb[41].mxu0  ;;  %v3583_v2 = vpack.c.bf16 %v1962_v24, %v1964_v45  ;;  %v1959_v22 = vsel %vm6755_vm5, %v1907_v29, %v1909_v55  ;;  %v5707_v18 = vsel %vm6756_vm13, %v1810_v0, %v1812_v38  ;;  %vm6759_vm1 = vmmov %vm6758_vm12 }
 0x35b   : > { %v3855_v11 = vadd.f32 %v1718_v26, %v5628_v17  ;;  %v1720_v30 = vpop.f32.mrb[42].mxu0  ;;  %v1960_v19 = vsel %vm6757_vm0, %v1908_v50, %v1910_v1  ;;  %v5714_v20 = vsel %vm6758_vm12, %v1812_v38, %v1814_v39  ;;  %v5718_v58 = vsel %vm6759_vm1, %v1811_v42, %v1813_v3  ;;  %vm6764_vm12 = vmmov %vm6757_vm0 }
 0x35c   : > { %v5720_v45 = vmax.f32 %v3854_v46, 0.0  ;;  %v3856_v29 = vadd.f32 %v1720_v30, %v5624_v33  ;;  %v1722_v0 = vpop.f32.mrb[43].mxu0  ;;  %3584 = vmatprep.mubr.msk.bf16.mxu0 %vm6692_vm3, %v3583_v2  ;;  %vm6766_vm13 = vmmov %vm6757_vm0 }
 0x35d   : > { %v5729_v38 = vmax.f32 %v3855_v11, 0.0  ;;  %v3857_v26 = vadd.f32 %v1722_v0, %v5628_v17  ;;  %3589 = vmatmul.mubr.msk.bf16.vlgmr.msra.gmra.mrb[64].mxu0 %vm6692_vm3, %v3588_v36  ;;  %vm6765_vm3 = vmmov %vm6759_vm1 }
 0x35e   : > { %6760 = vst [vmem:[#allocation55_spill] sm:$0xff] %v5720_v45  ;;  %v1815_v2 = vrot.slane %v5720_v45, 7  ;;  %v1911_v30 = vrot.slane %v5720_v45, 1  ;;  %v5740_v24 = vmax.f32 %v3856_v29, 0.0  ;;  %vm6767_vm5 = vmmov %vm6757_vm0 }
 0x35f   : > { %6761 = vst [vmem:[#allocation56_spill] sm:$0xff] %v5729_v38  ;;  %v1816_v11 = vrot.slane %v5729_v38, 7  ;;  %v1912_v50 = vrot.slane %v5729_v38, 1  ;;  %v5744_v0 = vmax.f32 %v3857_v26, 0.0  ;;  %vm6768_vm0 = vmmov %vm6759_vm1  ;;  %v6862_v57 = vld [vmem:[#allocation53_spill] sm:$0xff] }
 0x360   : > { %6762 = vst [vmem:[#allocation57_spill] sm:$0xff] %v5740_v24  ;;  %v1817_v13 = vrot.slane %v5740_v24, 7  ;;  %v1913_v36 = vrot.slane %v5740_v24, 1  ;;  %v1957_v46 = vsel %vm6764_vm12, %v1909_v55, %v1911_v30  ;;  %v5752_v42 = vsel %vm6765_vm3, %v1813_v3, %v1815_v2  ;;  %vm6769_vm1 = vmmov %vm6767_vm5 }
 0x361   : > { %6763 = vst [vmem:[#allocation58_spill] sm:$0xff] %v5744_v0  ;;  %v1818_v29 = vrot.slane %v5744_v0, 7  ;;  %v1914_v41 = vrot.slane %v5744_v0, 1  ;;  %v1726_v16 = vpop.f32.mrb[44].mxu0  ;;  %v1958_v26 = vsel %vm6766_vm13, %v1910_v1, %v1912_v50  ;;  %v3598_v32 = vpack.c.bf16 %v1957_v46, %v1959_v22  ;;  %vm6770_vm12 = vmmov %vm6768_vm0 }
 0x362   : > { %v3858_v7 = vadd.f32 %v1726_v16, %v5624_v33  ;;  %v1728_v54 = vpop.f32.mrb[45].mxu0  ;;  %v3593_v23 = vpack.c.bf16 %v1958_v26, %v1960_v19  ;;  %v1955_v55 = vsel %vm6767_vm5, %v1911_v30, %v1913_v36  ;;  %v5763_v3 = vsel %vm6768_vm0, %v1814_v39, %v1816_v11  ;;  %vm6771_vm3 = vmmov %vm6768_vm0 }
 0x363   : > { %v3859_v47 = vadd.f32 %v1728_v54, %v5628_v17  ;;  %v1730_v35 = vpop.f32.mrb[46].mxu0  ;;  %v1956_v21 = vsel %vm6769_vm1, %v1912_v50, %v1914_v41  ;;  %v5770_v22 = vsel %vm6770_vm12, %v1816_v11, %v1818_v29  ;;  %v5774_v16 = vsel %vm6771_vm3, %v1815_v2, %v1817_v13  ;;  %vm6777_vm13 = vmmov %vm6768_vm0 }
 0x364   : > { %v5776_v19 = vmax.f32 %v3858_v7, 0.0  ;;  %v3860_v1 = vadd.f32 %v1730_v35, %v5624_v33  ;;  %v1732_v39 = vpop.f32.mrb[47].mxu0  ;;  %3594 = vmatprep.mubr.msk.bf16.mxu0 %vm6698_vm11, %v3593_v23  ;;  %vm6778_vm5 = vmmov %vm6769_vm1  ;;  %v6843_v37 = vpack.c.bf16 %v5770_v22, %v5763_v3  ;;  %v4304_v3 = vld [vmem:[#allocation8 + $0x164] ss:$8 sps:$4 sm:$0xff]   ;;  %v4302_v22 = vld [vmem:[#allocation8 + $0x160] ss:$8 sps:$4 sm:$0xff]  }
 0x365   : > { %v5785_v46 = vmax.f32 %v3859_v47, 0.0  ;;  %v3861_v30 = vadd.f32 %v1732_v39, %v5628_v17  ;;  %3599 = vmatmul.mubr.msk.bf16.gmra.mrb[68].mxu0 %vm6698_vm11, %v3598_v32  ;;  %vm6776_vm11 = vmmov %vm6769_vm1 }
 0x366   : > { %6772 = vst [vmem:[#allocation59_spill] sm:$0xff] %v5776_v19  ;;  %v1819_v23 = vrot.slane %v5776_v19, 7  ;;  %v1915_v2 = vrot.slane %v5776_v19, 1  ;;  %v5796_v11 = vmax.f32 %v3860_v1, 0.0  ;;  %vm6779_vm0 = vmmov %vm6769_vm1 }
 0x367   : > { %6773 = vst [vmem:[#allocation60_spill] sm:$0xff] %v5785_v46  ;;  %v1820_v47 = vrot.slane %v5785_v46, 7  ;;  %v1916_v26 = vrot.slane %v5785_v46, 1  ;;  %v5800_v39 = vmax.f32 %v3861_v30, 0.0  ;;  %vm6780_vm1 = vmmov %vm6771_vm3 }
 0x368   : > { %6774 = vst [vmem:[#allocation61_spill] sm:$0xff] %v5796_v11  ;;  %v1821_v12 = vrot.slane %v5796_v11, 7  ;;  %v1917_v32 = vrot.slane %v5796_v11, 1  ;;  %v1953_v35 = vsel %vm6776_vm11, %v1913_v36, %v1915_v2  ;;  %v5808_v7 = vsel %vm6777_vm13, %v1817_v13, %v1819_v23  ;;  %vm6781_vm12 = vmmov %vm6779_vm0 }
 0x369   : > { %6775 = vst [vmem:[#allocation62_spill] sm:$0xff] %v5800_v39  ;;  %v1822_v1 = vrot.slane %v5800_v39, 7  ;;  %v1918_v50 = vrot.slane %v5800_v39, 1  ;;  %v1736_v54 = vpop.f32.mrb[48].mxu0  ;;  %v1954_v30 = vsel %vm6778_vm5, %v1914_v41, %v1916_v26  ;;  %v3608_v45 = vpack.c.bf16 %v1953_v35, %v1955_v55  ;;  %vm6782_vm3 = vmmov %vm6780_vm1 }
 0x36a   : > { %v3862_v24 = vadd.f32 %v1736_v54, %v5624_v33  ;;  %v1738_v4 = vpop.f32.mrb[49].mxu0  ;;  %v3603_v49 = vpack.c.bf16 %v1954_v30, %v1956_v21  ;;  %v1951_v36 = vsel %vm6779_vm0, %v1915_v2, %v1917_v32  ;;  %v5819_v13 = vsel %vm6780_vm1, %v1818_v29, %v1820_v47  ;;  %vm6783_vm11 = vmmov %vm6780_vm1 }
 0x36b   : > { %v3863_v38 = vadd.f32 %v1738_v4, %v5628_v17  ;;  %v1740_v0 = vpop.f32.mrb[50].mxu0  ;;  %v1952_v63 = vsel %vm6781_vm12, %v1916_v26, %v1918_v50  ;;  %v5826_v41 = vsel %vm6782_vm3, %v1820_v47, %v1822_v1  ;;  %v5830_v21 = vsel %vm6783_vm11, %v1819_v23, %v1821_v12  ;;  %vm6789_vm13 = vmmov %vm6780_vm1 }
 0x36c   : > { %v5832_v55 = vmax.f32 %v3862_v24, 0.0  ;;  %v3864_v54 = vadd.f32 %v1740_v0, %v5624_v33  ;;  %v1742_v29 = vpop.f32.mrb[51].mxu0  ;;  %3604 = vmatprep.mubr.msk.bf16.mxu0 %vm6706_vm14, %v3603_v49  ;;  %vm6790_vm5 = vmmov %vm6779_vm0  ;;  %v6845_v51 = vpack.c.bf16 %v5826_v41, %v5819_v13  ;;  %v4310_v13 = vld [vmem:[#allocation8 + $0x184] ss:$8 sps:$4 sm:$0xff]   ;;  %v4308_v41 = vld [vmem:[#allocation8 + $0x180] ss:$8 sps:$4 sm:$0xff]  }
 0x36d   : > { %v5841_v2 = vmax.f32 %v3863_v38, 0.0  ;;  %v3865_v47 = vadd.f32 %v1742_v29, %v5628_v17  ;;  %3609 = vmatmul.mubr.msk.bf16.gmra.mrb[72].mxu0 %vm6706_vm14, %v3608_v45  ;;  %vm6788_vm14 = vmmov %vm6779_vm0 }
 0x36e   : > { %6784 = vst [vmem:[#allocation63_spill] sm:$0xff] %v5832_v55  ;;  %v1823_v49 = vrot.slane %v5832_v55, 7  ;;  %v1919_v23 = vrot.slane %v5832_v55, 1  ;;  %v5852_v26 = vmax.f32 %v3864_v54, 0.0  ;;  %vm6792_vm12 = vmmov %vm6780_vm1 }
 0x36f   : > { %6785 = vst [vmem:[#allocation64_spill] sm:$0xff] %v5841_v2  ;;  %v1824_v38 = vrot.slane %v5841_v2, 7  ;;  %v1920_v30 = vrot.slane %v5841_v2, 1  ;;  %v5856_v29 = vmax.f32 %v3865_v47, 0.0  ;;  %vm6793_vm3 = vmmov %vm6780_vm1 }
 0x370   : > { %6786 = vst [vmem:[#allocation65_spill] sm:$0xff] %v5852_v26  ;;  %v1825_v8 = vrot.slane %v5852_v26, 7  ;;  %v1921_v45 = vrot.slane %v5852_v26, 1  ;;  %v1949_v24 = vsel %vm6788_vm14, %v1917_v32, %v1919_v23  ;;  %v5864_v0 = vsel %vm6789_vm13, %v1821_v12, %v1823_v49  ;;  %vm6796_vm11 = vmmov %vm6779_vm0 }
 0x371   : > { %6787 = vst [vmem:[#allocation66_spill] sm:$0xff] %v5856_v29  ;;  %v1826_v54 = vrot.slane %v5856_v29, 7  ;;  %v1922_v35 = vrot.slane %v5856_v29, 1  ;;  %v1746_v4 = vpop.f32.mrb[52].mxu0  ;;  %v1950_v47 = vsel %vm6790_vm5, %v1918_v50, %v1920_v30  ;;  %v3618_v19 = vpack.c.bf16 %v1949_v24, %v1951_v36  ;;  %vm6802_vm14 = vmmov %vm6780_vm1 }
 0x372   : > { %v5872_v11 = vsel %vm6779_vm0, %v1919_v23, %v1921_v45  ;;  %v3866_v46 = vadd.f32 %v1746_v4, %v5624_v33  ;;  %v1748_v32 = vpop.f32.mrb[53].mxu0  ;;  %v3613_v39 = vpack.c.bf16 %v1950_v47, %v1952_v63  ;;  %v5877_v12 = vsel %vm6780_vm1, %v1822_v1, %v1824_v38  ;;  %vm6803_vm13 = vmmov %vm6780_vm1 }
 0x373   : > { %6791 = vst [vmem:[#allocation67_spill] sm:$0xff] %v5872_v11  ;;  %v3867_v9 = vadd.f32 %v1748_v32, %v5628_v17  ;;  %v1750_v10 = vpop.f32.mrb[54].mxu0  ;;  %v5882_v34 = vsel %vm6792_vm12, %v1824_v38, %v1826_v54  ;;  %v5886_v50 = vsel %vm6793_vm3, %v1823_v49, %v1825_v8  ;;  %vm6804_vm5 = vmmov %vm6780_vm1 }
 0x374   : > { %v5890_v4 = vmax.f32 %v3866_v46, 0.0  ;;  %v3868_v63 = vadd.f32 %v1750_v10, %v5624_v33  ;;  %v1752_v1 = vpop.f32.mrb[55].mxu0  ;;  %3614 = vmatprep.mubr.msk.bf16.mxu0 %vm6715_vm2, %v3613_v39  ;;  %v5908_v46 = vsel %vm6796_vm11, %v1920_v30, %v1922_v35  ;;  %v6847_v15 = vpack.c.bf16 %v5882_v34, %v5877_v12  ;;  %v4311_v34 = vld [vmem:[#allocation8 + $0x190] ss:$8 sps:$4 sm:$0xff]   ;;  %v4314_v12 = vld [vmem:[#allocation8 + $0x1a0] ss:$8 sps:$4 sm:$0xff]  }
 0x375   : > { %v5899_v38 = vmax.f32 %v3867_v9, 0.0  ;;  %v3869_v49 = vadd.f32 %v1752_v1, %v5628_v17  ;;  %3619 = vmatmul.mubr.msk.bf16.gmra.mrb[76].mxu0 %vm6715_vm2, %v3618_v19  ;;  %6797 = vst [vmem:[#allocation70_spill] sm:$0xff] %v5908_v46  ;;  %vm6800_vm2 = vmmov %vm6779_vm0 }
 0x376   : > { %6794 = vst [vmem:[#allocation68_spill] sm:$0xff] %v5890_v4  ;;  %v1827_v39 = vrot.slane %v5890_v4, 7  ;;  %v1923_v47 = vrot.slane %v5890_v4, 1  ;;  %v5912_v32 = vmax.f32 %v3868_v63, 0.0  ;;  %vm6805_vm0 = vmmov %vm6780_vm1 }
 0x377   : > { %6795 = vst [vmem:[#allocation69_spill] sm:$0xff] %v5899_v38  ;;  %v1828_v9 = vrot.slane %v5899_v38, 7  ;;  %v1924_v1 = vrot.slane %v5899_v38, 1  ;;  %v5916_v36 = vmax.f32 %v3869_v49, 0.0  ;;  %vm6806_vm1 = vmmov %vm6800_vm2 }
 0x378   : > { %6798 = vst [vmem:[#allocation71_spill] sm:$0xff] %v5912_v32  ;;  %v5920_v52 = vsel %vm6800_vm2, %v1921_v45, %v1923_v47  ;;  %v1829_v19 = vrot.slane %v5912_v32, 7  ;;  %v1925_v30 = vrot.slane %v5912_v32, 1  ;;  %v5926_v10 = vsel %vm6802_vm14, %v1825_v8, %v1827_v39  ;;  %vm6810_vm12 = vmmov %vm6806_vm1 }
 0x379   : > { %6799 = vst [vmem:[#allocation72_spill] sm:$0xff] %v5916_v36  ;;  %6801 = vst [vmem:[#allocation73_spill] sm:$0xff] %v5920_v52  ;;  %v1830_v23 = vrot.slane %v5916_v36, 7  ;;  %v1926_v49 = vrot.slane %v5916_v36, 1  ;;  %v1756_v24 = vpop.f32.mrb[56].mxu0  ;;  %v5934_v45 = vsel %vm6803_vm13, %v1826_v54, %v1828_v9 }
 0x37a   : > { %v3870_v55 = vadd.f32 %v1756_v24, %v5624_v33  ;;  %v1758_v26 = vpop.f32.mrb[57].mxu0  ;;  %v5939_v2 = vsel %vm6804_vm5, %v1827_v39, %v1829_v19  ;;  %v5954_v39 = vsel %vm6806_vm1, %v1922_v35, %v1924_v1  ;;  %vm6812_vm3 = vmmov %vm6806_vm1 }
 0x37b   : > { %v3871_v11 = vadd.f32 %v1758_v26, %v5628_v17  ;;  %v1760_v52 = vpop.f32.mrb[58].mxu0  ;;  %v5948_v54 = vsel %vm6805_vm0, %v1828_v9, %v1830_v23  ;;  %6807 = vst [vmem:[#allocation74_spill] sm:$0xff] %v5954_v39  ;;  %v5968_v24 = vsel %vm6810_vm12, %v1924_v1, %v1926_v49  ;;  %vm6816_vm11 = vmmov %vm6805_vm0 }
 0x37c   : > { %v5956_v29 = vmax.f32 %v3870_v55, 0.0  ;;  %v3872_v8 = vadd.f32 %v1760_v52, %v5624_v33  ;;  %v1762_v38 = vpop.f32.mrb[59].mxu0  ;;  %6811 = vst [vmem:[#allocation77_spill] sm:$0xff] %v5968_v24  ;;  %v5972_v55 = vsel %vm6812_vm3, %v1923_v47, %v1925_v30  ;;  %vm6817_vm2 = vmmov %vm6805_vm0  ;;  %v6828_v24 = vrot.slane %v5632_v48, 7 }
 0x37d   : > { %v5963_v9 = vmax.f32 %v3871_v11, 0.0  ;;  %v3873_v4 = vadd.f32 %v1762_v38, %v5628_v17  ;;  %6813 = vst [vmem:[#allocation78_spill] sm:$0xff] %v5972_v55  ;;  %vm6818_vm14 = vmmov %vm6805_vm0  ;;  %v6849_v31 = vpack.c.bf16 %v5948_v54, %v5934_v45  ;;  %v4322_v45 = vld [vmem:[#allocation8 + $0x1c4] ss:$8 sps:$4 sm:$0xff]   ;;  %v4320_v54 = vld [vmem:[#allocation8 + $0x1c0] ss:$8 sps:$4 sm:$0xff]  }
 0x37e   : > { %6808 = vst [vmem:[#allocation75_spill] sm:$0xff] %v5956_v29  ;;  %v1831_v35 = vrot.slane %v5956_v29, 7  ;;  %v1927_v52 = vrot.slane %v5956_v29, 1  ;;  %v5976_v26 = vmax.f32 %v3872_v8, 0.0  ;;  %vm6819_vm13 = vmmov %vm6806_vm1 }
 0x37f   : > { %6809 = vst [vmem:[#allocation76_spill] sm:$0xff] %v5963_v9  ;;  %v1832_v63 = vrot.slane %v5963_v9, 7  ;;  %v1928_v11 = vrot.slane %v5963_v9, 1  ;;  %v5980_v46 = vmax.f32 %v3873_v4, 0.0  ;;  %vm6821_vm5 = vmmov %vm6806_vm1 }
 0x380   : > { %6814 = vst [vmem:[#allocation79_spill] sm:$0xff] %v5976_v26  ;;  %v1833_v38 = vrot.slane %v5976_v26, 7  ;;  %v1929_v1 = vrot.slane %v5976_v26, 1  ;;  %v5986_v47 = vsel %vm6816_vm11, %v1829_v19, %v1831_v35  ;;  %v6009_v29 = vsel %vm6821_vm5, %v1925_v30, %v1927_v52  ;;  %vm6824_vm12 = vmmov %vm6806_vm1 }
 0x381   : > { %6815 = vst [vmem:[#allocation80_spill] sm:$0xff] %v5980_v46  ;;  %v1834_v8 = vrot.slane %v5980_v46, 7  ;;  %v1930_v32 = vrot.slane %v5980_v46, 1  ;;  %v1766_v36 = vpop.f32.mrb[60].mxu0  ;;  %v5994_v4 = vsel %vm6817_vm2, %v1830_v23, %v1832_v63  ;;  %v6005_v39 = vsel %vm6819_vm13, %v1926_v49, %v1928_v11  ;;  %6822 = vst [vmem:[#allocation82_spill] sm:$0xff] %v6009_v29 }
 0x382   : > { %v3874_v27 = vadd.f32 %v1766_v36, %v5624_v33  ;;  %v1768_v5 = vpop.f32.mrb[61].mxu0  ;;  %v6001_v19 = vsel %vm6818_vm14, %v1831_v35, %v1833_v38  ;;  %6820 = vst [vmem:[#allocation81_spill] sm:$0xff] %v6005_v39  ;;  %vm6826_vm3 = vmmov %vm6805_vm0 }
 0x383   : > { %v3875_v23 = vadd.f32 %v1768_v5, %v5628_v17  ;;  %v1770_v26 = vpop.f32.mrb[62].mxu0  ;;  %v6014_v60 = vsel %vm6805_vm0, %v1832_v63, %v1834_v8  ;;  %v6032_v36 = vsel %vm6806_vm1, %v1928_v11, %v1930_v32  ;;  %vm6827_vm11 = vmmov %vm6805_vm0 }
 0x384   : > { %v6020_v9 = vmax.f32 %v3874_v27, 0.0  ;;  %v3876_v49 = vadd.f32 %v1770_v26, %v5624_v33  ;;  %v1772_v46 = vpop.f32.mrb[63].mxu0  ;;  %v6036_v27 = vsel %vm6824_vm12, %v1927_v52, %v1929_v1  ;;  %vm6829_vm2 = vmmov %vm6805_vm0  ;;  %v6851_v62 = vpack.c.bf16 %v6014_v60, %v5994_v4  ;;  %v4328_v60 = vld [vmem:[#allocation8 + $0x1e4] ss:$8 sps:$4 sm:$0xff]   ;;  %v4331_v4 = vld [vmem:[#allocation8 + $0x1f4] ss:$8 sps:$4 sm:$0xff]  }
 0x385   : > { %v6027_v43 = vmax.f32 %v3875_v23, 0.0  ;;  %v3877_v63 = vadd.f32 %v1772_v46, %v5628_v17  ;;  %vm6830_vm14 = vmmov %vm6805_vm0 }
 0x386   : > { %6823 = vst [vmem:[#allocation83_spill] sm:$0xff] %v6020_v9  ;;  %v1835_v33 = vrot.slane %v6020_v9, 7  ;;  %v1931_v26 = vrot.slane %v6020_v9, 1  ;;  %v6040_v35 = vmax.f32 %v3876_v49, 0.0  ;;  %vm6831_vm13 = vmmov %vm6806_vm1 }
 0x387   : > { %v1836_v5 = vrot.slane %v6027_v43, 7  ;;  %v1932_v23 = vrot.slane %v6027_v43, 1  ;;  %v6044_v30 = vmax.f32 %v3877_v63, 0.0  ;;  %vm6832_vm5 = vmmov %vm6806_vm1  ;;  %v6833_v63 = vrot.slane %v5635_v56, 7 }
 0x388   : > { %6825 = vst [vmem:[#allocation84_spill] sm:$0xff] %v6040_v35  ;;  %v1837_v17 = vrot.slane %v6040_v35, 7  ;;  %v1933_v46 = vrot.slane %v6040_v35, 1  ;;  %v6050_v52 = vsel %vm6826_vm3, %v1833_v38, %v1835_v33  ;;  %vm6834_vm1 = vmmov %vm6805_vm0 }
 0x389   : > { %v1838_v49 = vrot.slane %v6044_v30, 7  ;;  %v1934_v55 = vrot.slane %v6044_v30, 1  ;;  %v6058_v29 = vsel %vm6827_vm11, %v1834_v8, %v1836_v5  ;;  %v6072_v11 = vsel %vm6831_vm13, %v1930_v32, %v1932_v23  ;;  %vm6835_vm12 = vmmov %vm6832_vm5 }
 0x38a   : > { %v1869_v38 = vsel %vm6829_vm2, %v1837_v17, %v6828_v24  ;;  %v6068_v39 = vsel %vm6830_vm14, %v1835_v33, %v1837_v17  ;;  %v6076_v8 = vsel %vm6832_vm5, %v1929_v1, %v1931_v26  ;;  %v4284_v17 = vld [vmem:[#allocation8 + $0x100] ss:$8 sps:$4 sm:$0xff]   ;;  %vm6837_vm3 = vmmov %vm6832_vm5 }
 0x38b   : > { %v3508_v9 = vpack.c.bf16 %v5658_v53, %v1869_v38  ;;  %v1870_v35 = vsel %vm6805_vm0, %v1838_v49, %v6833_v63  ;;  %v6085_v24 = vsel %vm6834_vm1, %v1836_v5, %v1838_v49  ;;  %v3578_v33 = vpack.c.bf16 %v6068_v39, %v6050_v52  ;;  %v4289_v63 = vld [vmem:[#allocation8 + $0x114] ss:$8 sps:$4 sm:$0xff]   ;;  %vm6838_vm11 = vmmov %vm6837_vm3  ;;  %v6856_v39 = vld [vmem:[#allocation54_spill] sm:$0xff] }
 0x38c   : > { %v3503_v32 = vpack.c.bf16 %v5674_v28, %v1870_v35  ;;  %v3573_v1 = vpack.c.bf16 %v6085_v24, %v6058_v29  ;;  %v6098_v5 = vsel %vm6835_vm12, %v1932_v23, %v1934_v55  ;;  %v6836_v49 = vrot.slane %v5635_v56, 1  ;;  %vm6840_vm2 = vmmov %vm6837_vm3  ;;  %v4329_v29 = vld [vmem:[#allocation8 + $0x1f0] ss:$8 sps:$4 sm:$0xff]   ;;  %v6859_v24 = vld [vmem:[#allocation26_spill] sm:$0xff] }
 0x38d   : > { %v6108_v35 = vsel %vm6838_vm11, %v1931_v26, %v1933_v46  ;;  %v6839_v53 = vrot.slane %v5632_v48, 1  ;;  %v6841_v26 = vpack.c.bf16 %v5714_v20, %v5707_v18  ;;  %v4293_v18 = vld [vmem:[#allocation8 + $0x130] ss:$8 sps:$4 sm:$0xff]   ;;  %v4298_v20 = vld [vmem:[#allocation8 + $0x144] ss:$8 sps:$4 sm:$0xff]  }
 0x38e   : > { %v6104_v28 = vsel %vm6837_vm3, %v1934_v55, %v6836_v49  ;;  %3504 = vmatprep.mubr.msk.bf16.mxu1 %vm4986_vm6, %v3503_v32  ;;  %v4290_v32 = vld [vmem:[#allocation8 + $0x120] ss:$8 sps:$4 sm:$0xff]   ;;  %v4295_v49 = vld [vmem:[#allocation8 + $0x134] ss:$8 sps:$4 sm:$0xff]   ;;  %v6842_v55 = vpack.c.bf16 %v5718_v58, %v5696_v25  ;;  %v6844_v25 = vpack.c.bf16 %v5774_v16, %v5752_v42  ;;  %v4299_v58 = vld [vmem:[#allocation8 + $0x150] ss:$8 sps:$4 sm:$0xff]   ;;  %v6846_v42 = vpack.c.bf16 %v5830_v21, %v5808_v7 }
 0x38f   : > { %v6114_v38 = vsel %vm6840_vm2, %v1933_v46, %v6839_v53  ;;  %v3653_v23 = vpack.c.bf16 %v6104_v28, %v6098_v5  ;;  %3509 = vmatmul.mubr.msk.bf16.vlgmr.msra.gmra.mrb[16].mxu1 %vm4986_vm6, %v3508_v9  ;;  %v4287_v46 = vld [vmem:[#allocation8 + $0x110] ss:$8 sps:$4 sm:$0xff]   ;;  %v4292_v53 = vld [vmem:[#allocation8 + $0x124] ss:$8 sps:$4 sm:$0xff]   ;;  %v4296_v9 = vld [vmem:[#allocation8 + $0x140] ss:$8 sps:$4 sm:$0xff]   ;;  %v6848_v7 = vpack.c.bf16 %v5886_v50, %v5864_v0  ;;  %v6850_v0 = vpack.c.bf16 %v5939_v2, %v5926_v10 }
 0x390   : > { %2749 = vmatpush1.bf16.msra.mxu1 %v4284_v17  ;;  %3514 = vmatprep.mubr.msk.bf16.mxu1 %vm5003_vm9, %v6841_v26  ;;  %v4301_v17 = vld [vmem:[#allocation8 + $0x154] ss:$8 sps:$4 sm:$0xff]   ;;  %v4305_v16 = vld [vmem:[#allocation8 + $0x170] ss:$8 sps:$4 sm:$0xff]   ;;  %v4316_v21 = vld [vmem:[#allocation8 + $0x1a4] ss:$8 sps:$4 sm:$0xff]   ;;  %v6852_v2 = vpack.c.bf16 %v6001_v19, %v5986_v47  ;;  %v6855_v19 = vpack.c.bf16 %v5638_v59, %v5632_v48 }
 0x391   : > { %2750 = vmatprep.subr.bf16.mxu1 %v4289_v63  ;;  %v4307_v63 = vld [vmem:[#allocation8 + $0x174] ss:$8 sps:$4 sm:$0xff]   ;;  %v4317_v50 = vld [vmem:[#allocation8 + $0x1b0] ss:$8 sps:$4 sm:$0xff]   ;;  %v4326_v10 = vld [vmem:[#allocation8 + $0x1e0] ss:$8 sps:$4 sm:$0xff]  }
 0x392   : > { %v4319_v26 = vld [vmem:[#allocation8 + $0x1b4] ss:$8 sps:$4 sm:$0xff]   ;;  %v4332_v47 = vld [vmem:[#allocation8 + $0x204] ss:$8 sps:$4 sm:$0xff]  }
 0x393   : > { %v6857_v52 = vld [vmem:[#allocation52_spill] sm:$0xff]  ;;  %v6866_v48 = vld [vmem:[#allocation58_spill] sm:$0xff] }
 0x394   : > { %2751 = vmatpush1.bf16.msra.mxu1 %v4287_v46  ;;  %v4325_v46 = vld [vmem:[#allocation8 + $0x1d4] ss:$8 sps:$4 sm:$0xff]  }
 0x395   : > { %2752 = vmatprep.subr.bf16.mxu1 %v4292_v53  ;;  %v6861_v56 = vld [vmem:[#allocation28_spill] sm:$0xff] }
 0x396   : > { %v6867_v59 = vld [vmem:[#allocation56_spill] sm:$0xff] }
 0x397   : > { %3519 = vmatmul.mubr.msk.bf16.gmra.mrb[20].mxu1 %vm5003_vm9, %v6842_v55  ;;  %v4313_v55 = vld [vmem:[#allocation8 + $0x194] ss:$8 sps:$4 sm:$0xff]  }
 0x398   : > { %2753 = vmatpush1.bf16.msra.mxu1 %v4290_v32  ;;  %3524 = vmatprep.mubr.msk.bf16.mxu1 %vm5029_vm15, %v6843_v37  ;;  %v6865_v32 = vld [vmem:[#allocation29_spill] sm:$0xff]  ;;  %v6870_v37 = vld [vmem:[#allocation31_spill] sm:$0xff] }
 0x399   : > { %2754 = vmatprep.subr.bf16.mxu1 %v4295_v49  ;;  %v6868_v49 = vpack.c.bf16 %v6866_v48, %v6867_v59  ;;  %v6918_v48 = vld [vmem:[#allocation46_spill] sm:$0xff]  ;;  %v6919_v59 = vld [vmem:[#allocation47_spill] sm:$0xff] }
 0x39c   : > { %2755 = vmatpush1.bf16.msra.mxu1 %v4293_v18  ;;  %v6871_v18 = vld [vmem:[#allocation32_spill] sm:$0xff] }
 0x39d   : > { %2756 = vmatprep.subr.bf16.mxu1 %v4298_v20  ;;  %v6872_v20 = vld [vmem:[#allocation57_spill] sm:$0xff] }
 0x39f   : > { %3529 = vmatmul.mubr.msk.bf16.gmra.mrb[24].mxu1 %vm5029_vm15, %v6844_v25  ;;  %v6875_v25 = vld [vmem:[#allocation33_spill] sm:$0xff] }
 0x3a0   : > { %2757 = vmatpush1.bf16.msra.mxu1 %v4296_v9  ;;  %3534 = vmatprep.mubr.msk.bf16.mxu1 %vm5060_vm8, %v6845_v51  ;;  %v6873_v9 = vld [vmem:[#allocation55_spill] sm:$0xff]  ;;  %v6876_v51 = vld [vmem:[#allocation62_spill] sm:$0xff] }
 0x3a1   : > { %2758 = vmatprep.subr.bf16.mxu1 %v4301_v17  ;;  %v6874_v17 = vpack.c.bf16 %v6872_v20, %v6873_v9  ;;  %v6924_v20 = vld [vmem:[#allocation74_spill] sm:$0xff] }
 0x3a2   : > { %v6925_v9 = vld [vmem:[#allocation70_spill] sm:$0xff] }
 0x3a4   : > { %2759 = vmatpush1.bf16.msra.mxu1 %v4299_v58  ;;  %v6877_v58 = vld [vmem:[#allocation60_spill] sm:$0xff] }
 0x3a5   : > { %2760 = vmatprep.subr.bf16.mxu1 %v4304_v3  ;;  %v6878_v3 = vpack.c.bf16 %v6876_v51, %v6877_v58  ;;  %v6931_v51 = vld [vmem:[#allocation73_spill] sm:$0xff]  ;;  %v6932_v58 = vld [vmem:[#allocation67_spill] sm:$0xff] }
 0x3a7   : > { %3539 = vmatmul.mubr.msk.bf16.gmra.mrb[28].mxu1 %vm5060_vm8, %v6846_v42  ;;  %v6881_v42 = vld [vmem:[#allocation17_spill] sm:$0xff] }
 0x3a8   : > { %2761 = vmatpush1.bf16.msra.mxu1 %v4302_v22  ;;  %3544 = vmatprep.mubr.msk.bf16.mxu1 %vm5089_vm10, %v6847_v15  ;;  %v6879_v22 = vld [vmem:[#allocation34_spill] sm:$0xff]  ;;  %v6882_v15 = vld [vmem:[#allocation61_spill] sm:$0xff] }
 0x3a9   : > { %2762 = vmatprep.subr.bf16.mxu1 %v4307_v63  ;;  %v6880_v63 = vld [vmem:[#allocation24_spill] sm:$0xff] }
 0x3ac   : > { %2763 = vmatpush1.bf16.msra.mxu1 %v4305_v16  ;;  %v6883_v16 = vld [vmem:[#allocation59_spill] sm:$0xff] }
 0x3ad   : > { %2764 = vmatprep.subr.bf16.mxu1 %v4310_v13  ;;  %v6884_v13 = vpack.c.bf16 %v6882_v15, %v6883_v16  ;;  %v6937_v15 = vld [vmem:[#allocation20_spill] sm:$0xff]  ;;  %v6939_v16 = vld [vmem:[#allocation82_spill] sm:$0xff] }
 0x3ae   : > { %vm6938_vm9 = vnez %v6937_v15 }
 0x3af   : > { %3549 = vmatmul.mubr.msk.bf16.gmra.mrb[32].mxu1 %vm5089_vm10, %v6848_v7  ;;  %v6887_v7 = vld [vmem:[#allocation64_spill] sm:$0xff] }
 0x3b0   : > { %2765 = vmatpush1.bf16.msra.mxu1 %v4308_v41  ;;  %3554 = vmatprep.mubr.msk.bf16.mxu1 %vm5117_vm4, %v6849_v31  ;;  %v6885_v41 = vld [vmem:[#allocation35_spill] sm:$0xff] }
 0x3b1   : > { %2766 = vmatprep.subr.bf16.mxu1 %v4313_v55  ;;  %v6886_v55 = vld [vmem:[#allocation66_spill] sm:$0xff] }
 0x3b2   : > { %v6888_v31 = vpack.c.bf16 %v6886_v55, %v6887_v7  ;;  %v6942_v55 = vpack.c.bf16 %v6072_v11, %v6032_v36  ;;  %v6943_v7 = vld [vmem:[#allocation21_spill] sm:$0xff] }
 0x3b3   : > { %vm6944_vm15 = vnez %v6943_v7 }
 0x3b4   : > { %2767 = vmatpush1.bf16.msra.mxu1 %v4311_v34  ;;  %v6889_v34 = vld [vmem:[#allocation36_spill] sm:$0xff] }
 0x3b5   : > { %2768 = vmatprep.subr.bf16.mxu1 %v4316_v21  ;;  %v6890_v21 = vld [vmem:[#allocation25_spill] sm:$0xff] }
 0x3b7   : > { %3559 = vmatmul.mubr.msk.bf16.gmra.mrb[36].mxu1 %vm5117_vm4, %v6850_v0  ;;  %vm6853_vm4 = vnez %v6641_v61  ;;  %v6858_v61 = vpack.c.bf16 %v6856_v39, %v6857_v52  ;;  %v6893_v0 = vld [vmem:[#allocation63_spill] sm:$0xff]  ;;  %v6909_v52 = vld [vmem:[#allocation41_spill] sm:$0xff] }
 0x3b8   : > { %2769 = vmatpush1.bf16.msra.mxu1 %v4314_v12  ;;  %3564 = vmatprep.mubr.msk.bf16.mxu1 %vm6688_vm7, %v6851_v62  ;;  %v6891_v12 = vld [vmem:[#allocation23_spill] sm:$0xff] }
 0x3b9   : > { %2770 = vmatprep.subr.bf16.mxu1 %v4319_v26  ;;  %v6892_v26 = vld [vmem:[#allocation65_spill] sm:$0xff] }
 0x3ba   : > { %v6894_v62 = vpack.c.bf16 %v6892_v26, %v6893_v0 }
 0x3bc   : > { %2771 = vmatpush1.bf16.msra.mxu1 %v4317_v50  ;;  %v6895_v50 = vld [vmem:[#allocation18_spill] sm:$0xff] }
 0x3bd   : > { %2772 = vmatprep.subr.bf16.mxu1 %v4322_v45  ;;  %v6896_v45 = vld [vmem:[#allocation72_spill] sm:$0xff] }
 0x3bf   : > { %3569 = vmatmul.mubr.msk.bf16.gmra.mrb[40].mxu1 %vm6688_vm7, %v6852_v2  ;;  %v6899_v2 = vld [vmem:[#allocation37_spill] sm:$0xff] }
 0x3c0   : > { %2773 = vmatpush1.bf16.msra.mxu1 %v4320_v54  ;;  %3574 = vmatprep.mubr.msk.bf16.mxu1 %vm6853_vm4, %v3573_v1  ;;  %v6863_v1 = vld [vmem:[#allocation51_spill] sm:$0xff]  ;;  %v6897_v54 = vld [vmem:[#allocation69_spill] sm:$0xff] }
 0x3c1   : > { %2774 = vmatprep.subr.bf16.mxu1 %v4325_v46  ;;  %v6864_v53 = vpack.c.bf16 %v6862_v57, %v6863_v1  ;;  %v6898_v46 = vpack.c.bf16 %v6896_v45, %v6897_v54  ;;  %v6915_v1 = vld [vmem:[#allocation44_spill] sm:$0xff] }
 0x3c4   : > { %2775 = vmatpush1.bf16.msra.mxu1 %v4323_v14  ;;  %v6900_v14 = vld [vmem:[#allocation38_spill] sm:$0xff] }
 0x3c5   : > { %2776 = vmatprep.subr.bf16.mxu1 %v4328_v60  ;;  %v6901_v60 = vld [vmem:[#allocation39_spill] sm:$0xff] }
 0x3c7   : > { %3579 = vmatmul.mubr.msk.bf16.gmra.mrb[44].mxu1 %vm6853_vm4, %v3578_v33  ;;  %v6860_v33 = vld [vmem:[#allocation27_spill] sm:$0xff] }
 0x3c8   : > { %2777 = vmatpush1.bf16.msra.mxu1 %v4326_v10  ;;  %2780 = vmatprep.mubr.bf16.mxu1 %v6854_v40  ;;  %v6902_v10 = vld [vmem:[#allocation71_spill] sm:$0xff] }
 0x3c9   : > { %2778 = vmatprep.subr.bf16.mxu1 %v4331_v4  ;;  %v6903_v4 = vld [vmem:[#allocation68_spill] sm:$0xff] }
 0x3ca   : > { %v6904_v40 = vpack.c.bf16 %v6902_v10, %v6903_v4 }
 0x3cc   : > { %2779 = vmatpush1.bf16.msra.mxu1 %v4329_v29  ;;  %v6905_v29 = vld [vmem:[#allocation40_spill] sm:$0xff] }
 0x3cd   : > { %3814 = vmatprep.subr.bf16.mxu1 %v4332_v47  ;;  %v6906_v47 = vld [vmem:[#allocation80_spill] sm:$0xff] }
 0x3cf   : > { %2781 = vmatmul.mubr.bf16.vlgmr.msra.gmra.mrb[16].mxu1 %v6855_v19  ;;  %v6907_v19 = vld [vmem:[#allocation76_spill] sm:$0xff] }
 0x3d0   : > { %3830 = vmatpush1.bf16.msra.mxu1 %v5477_v6  ;;  %2790 = vmatprep.mubr.bf16.mxu1 %v6858_v61  ;;  %v6869_v6 = vld [vmem:[#allocation30_spill] sm:$0xff]  ;;  %v6908_v39 = vpack.c.bf16 %v6906_v47, %v6907_v19 }
 0x3d1   : > { %3815 = vmatprep.subr.bf16.mxu1 %v6859_v24  ;;  %v6910_v61 = vld [vmem:[#allocation42_spill] sm:$0xff]  ;;  %v6911_v24 = vld [vmem:[#allocation43_spill] sm:$0xff] }
 0x3d4   : > { %3831 = vmatpush1.bf16.msra.mxu1 %v6860_v33  ;;  %v6912_v33 = vld [vmem:[#allocation79_spill] sm:$0xff] }
 0x3d5   : > { %3816 = vmatprep.subr.bf16.mxu1 %v6861_v56  ;;  %v6913_v56 = vld [vmem:[#allocation75_spill] sm:$0xff] }
 0x3d6   : > { %v6914_v57 = vpack.c.bf16 %v6912_v33, %v6913_v56 }
 0x3d7   : > { %2791 = vmatmul.mubr.bf16.gmra.mrb[20].mxu1 %v6864_v53  ;;  %v6916_v53 = vpack.c.bf16 %v6044_v30, %v6027_v43  ;;  %v6929_v43 = vld [vmem:[#allocation49_spill] sm:$0xff]  ;;  %v6930_v30 = vld [vmem:[#allocation50_spill] sm:$0xff] }
 0x3d8   : > { %3832 = vmatpush1.bf16.msra.mxu1 %v6865_v32  ;;  %2800 = vmatprep.mubr.bf16.mxu1 %v6868_v49  ;;  %v6917_v32 = vld [vmem:[#allocation45_spill] sm:$0xff]  ;;  %v6920_v49 = vld [vmem:[#allocation84_spill] sm:$0xff] }
 0x3d9   : > { %3817 = vmatprep.subr.bf16.mxu1 %v6869_v6  ;;  %v6921_v6 = vld [vmem:[#allocation83_spill] sm:$0xff] }
 0x3dc   : > { %3833 = vmatpush1.bf16.msra.mxu1 %v6870_v37  ;;  %v6922_v37 = vpack.c.bf16 %v6920_v49, %v6921_v6 }
 0x3dd   : > { %3818 = vmatprep.subr.bf16.mxu1 %v6871_v18  ;;  %v6923_v18 = vld [vmem:[#allocation48_spill] sm:$0xff] }
 0x3df   : > { %2801 = vmatmul.mubr.bf16.gmra.mrb[24].mxu1 %v6874_v17  ;;  %v6926_v17 = vpack.c.bf16 %v6924_v20, %v6925_v9 }
 0x3e0   : > { %3834 = vmatpush1.bf16.msra.mxu1 %v6875_v25  ;;  %2810 = vmatprep.mubr.bf16.mxu1 %v6878_v3  ;;  %v6927_v25 = vld [vmem:[#allocation19_spill] sm:$0xff]  ;;  %v6933_v3 = vpack.c.bf16 %v6931_v51, %v6932_v58 }
 0x3e1   : > { %3819 = vmatprep.subr.bf16.mxu1 %v6879_v22  ;;  %vm6928_vm6 = vnez %v6927_v25  ;;  %v6934_v22 = vld [vmem:[#allocation81_spill] sm:$0xff] }
 0x3e4   : > { %3835 = vmatpush1.bf16.msra.mxu1 %v6880_v63  ;;  %v6935_v63 = vld [vmem:[#allocation77_spill] sm:$0xff] }
 0x3e5   : > { %3820 = vmatprep.subr.bf16.mxu1 %v6881_v42  ;;  %v6936_v42 = vpack.c.bf16 %v6934_v22, %v6935_v63 }
 0x3e7   : > { %2811 = vmatmul.mubr.bf16.gmra.mrb[28].mxu1 %v6884_v13  ;;  %v6940_v13 = vld [vmem:[#allocation78_spill] sm:$0xff] }
 0x3e8   : > { %3836 = vmatpush1.bf16.msra.mxu1 %v6885_v41  ;;  %2820 = vmatprep.mubr.bf16.mxu1 %v6888_v31  ;;  %v6941_v41 = vpack.c.bf16 %v6939_v16, %v6940_v13  ;;  %v6945_v31 = vpack.c.bf16 %v6076_v8, %v6036_v27 }
 0x3e9   : > { %3821 = vmatprep.subr.bf16.mxu1 %v6889_v34  ;;  %v6946_v34 = vld [vmem:[#allocation22_spill] sm:$0xff] }
 0x3ea   : > { %vm6947_vm8 = vnez %v6946_v34 }
 0x3ec   : > { %3837 = vmatpush1.bf16.msra.mxu1 %v6890_v21  ;;  %v6948_v21 = vpack.c.bf16 %v6114_v38, %v6108_v35 }
 0x3ed   : > { %3822 = vmatprep.subr.bf16.mxu1 %v6891_v12 }
 0x3ef   : > { %2821 = vmatmul.mubr.bf16.gmra.mrb[32].mxu1 %v6894_v62 }
 0x3f0   : > { %3838 = vmatpush1.bf16.msra.mxu1 %v6895_v50  ;;  %2830 = vmatprep.mubr.bf16.mxu1 %v6898_v46  ;;  %v2143_v46 = vld [vmem:[%s6464_s7] sm:$0x3] }
 0x3f1   : > { %3823 = vmatprep.subr.bf16.mxu1 %v6899_v2  ;;  %v6949_v2 = vsub.s32 0, %v4885_v44 }
 0x3f4   : > { %3839 = vmatpush1.bf16.msra.mxu1 %v6900_v14  ;;  %v6328_v14 = vrot.slane %v2143_v46, %v6949_v2 }
 0x3f5   : > { %3824 = vmatprep.subr.bf16.mxu1 %v6901_v60  ;;  %v6950_v60 = vsub.s32 1, %v4885_v44 }
 0x3f7   : > { %2831 = vmatmul.mubr.bf16.gmra.mrb[36].mxu1 %v6904_v40  ;;  %v6332_v10 = vrot.slane %v2143_v46, %v6950_v60 }
 0x3f8   : > { %3840 = vmatpush1.bf16.msra.mxu1 %v6905_v29  ;;  %2840 = vmatprep.mubr.bf16.mxu1 %v6908_v39 }
 0x3f9   : > { %3825 = vmatprep.subr.bf16.mxu1 %v6909_v52 }
 0x3fc   : > { %3841 = vmatpush1.bf16.msra.mxu1 %v6910_v61 }
 0x3fd   : > { %3826 = vmatprep.subr.bf16.mxu1 %v6911_v24 }
 0x3ff   : > { %2841 = vmatmul.mubr.bf16.gmra.mrb[40].mxu1 %v6914_v57 }
 0x400   : > { %3842 = vmatpush1.bf16.msra.mxu1 %v6915_v1  ;;  %2850 = vmatprep.mubr.bf16.mxu1 %v6916_v53 }
 0x401   : > { %3827 = vmatprep.subr.bf16.mxu1 %v6917_v32 }
 0x404   : > { %3843 = vmatpush1.bf16.msra.mxu1 %v6918_v48 }
 0x405   : > { %3828 = vmatprep.subr.bf16.mxu1 %v6919_v59 }
 0x407   : > { %2851 = vmatmul.mubr.bf16.gmra.mrb[44].mxu1 %v6922_v37 }
 0x408   : > { %3844 = vmatpush1.bf16.msra.mxu1 %v6923_v18  ;;  %3624 = vmatprep.mubr.msk.bf16.mxu1 %vm6928_vm6, %v6926_v17 }
 0x409   : > { %3829 = vmatprep.subr.bf16.mxu1 %v6929_v43 }
 0x40c   : > { %3845 = vmatpush1.bf16.msra.mxu1 %v6930_v30 }
 0x40f   : > { %3629 = vmatmul.mubr.msk.bf16.vlgmr.msra.gmra.mrb[32].mxu1 %vm6928_vm6, %v6933_v3 }
 0x410   : > { %3634 = vmatprep.mubr.msk.bf16.mxu1 %vm6938_vm9, %v6936_v42 }
 0x417   : > { %3639 = vmatmul.mubr.msk.bf16.gmra.mrb[36].mxu1 %vm6938_vm9, %v6941_v41 }
 0x418   : > { %3644 = vmatprep.mubr.msk.bf16.mxu1 %vm6944_vm15, %v6942_v55 }
 0x41f   : > { %3649 = vmatmul.mubr.msk.bf16.gmra.mrb[40].mxu1 %vm6944_vm15, %v6945_v31 }
 0x420   : > { %3654 = vmatprep.mubr.msk.bf16.mxu1 %vm6947_vm8, %v3653_v23 }
 0x427   : > { %3659 = vmatmul.mubr.msk.bf16.gmra.mrb[44].mxu1 %vm6947_vm8, %v6948_v21 }
 0x430   : > { %v2895_v36 = vpop.f32.mrb[64].mxu0 }
 0x431   : > { %v2897_v11 = vpop.f32.mrb[65].mxu0 }
 0x432   : > { %v2899_v12 = vpop.f32.mrb[66].mxu0 }
 0x433   : > { %v2901_v26 = vpop.f32.mrb[67].mxu0 }
 0x438   : > { %v2905_v27 = vpop.f32.mrb[68].mxu0 }
 0x439   : > { %v2907_v8 = vpop.f32.mrb[69].mxu0 }
 0x43a   : > { %v2909_v0 = vpop.f32.mrb[70].mxu0 }
 0x43b   : > { %v2911_v62 = vpop.f32.mrb[71].mxu0 }
 0x440   : > { %v2915_v50 = vpop.f32.mrb[72].mxu0 }
 0x441   : > { %v2917_v5 = vpop.f32.mrb[73].mxu0 }
 0x442   : > { %v2919_v28 = vpop.f32.mrb[74].mxu0 }
 0x443   : > { %v6313_v45 = vpop.f32.mrb[75].mxu0 }
 0x448   : > { %v6315_v23 = vpop.f32.mrb[76].mxu0 }
 0x449   : > { %v6317_v38 = vpop.f32.mrb[77].mxu0 }
 0x44a   : > { %v6319_v35 = vpop.f32.mrb[78].mxu0 }
 0x44b   : > { %v6321_v54 = vpop.f32.mrb[79].mxu0 }
 0x4a2   : > { %v2782_v4 = vpop.f32.mrb[16].mxu1 }
 0x4a3   : > { %v3878_v40 = vadd.f32 %v2782_v4, %v6328_v14  ;;  %v2784_v29 = vpop.f32.mrb[17].mxu1 }
 0x4a4   : > { %v3880_v47 = vadd.f32 %v2784_v29, %v6332_v10  ;;  %v2786_v19 = vpop.f32.mrb[18].mxu1 }
 0x4a5   : > { %v3879_v39 = vadd.f32 %v3878_v40, %v2895_v36  ;;  %v3882_v52 = vadd.f32 %v2786_v19, %v6328_v14  ;;  %v2788_v61 = vpop.f32.mrb[19].mxu1 }
 0x4a6   : > { %v3881_v24 = vadd.f32 %v3880_v47, %v2897_v11  ;;  %v3884_v33 = vadd.f32 %v2788_v61, %v6332_v10 }
 0x4a7   : > { %v2974_v56 = vmax.f32 %v3879_v39, 0.0  ;;  %v3883_v57 = vadd.f32 %v3882_v52, %v2899_v12 }
 0x4a8   : > { %v2975_v44 = vmax.f32 %v3881_v24, 0.0  ;;  %v3885_v1 = vadd.f32 %v3884_v33, %v2901_v26 }
 0x4a9   : > { %3006 = vst [vmem:[%s6339_s16] sm:$0xff] %v2974_v56  ;;  %v2976_v53 = vmax.f32 %v3883_v57, 0.0 }
 0x4aa   : > { %3007 = vst [vmem:[%s6339_s16 + $0x8] sm:$0xff] %v2975_v44  ;;  %v2977_v32 = vmax.f32 %v3885_v1, 0.0  ;;  %v2792_v48 = vpop.f32.mrb[20].mxu1 }
 0x4ab   : > { %3008 = vst [vmem:[%s6339_s16 + $0x10] sm:$0xff] %v2976_v53  ;;  %v3886_v59 = vadd.f32 %v2792_v48, %v6328_v14  ;;  %v2794_v49 = vpop.f32.mrb[21].mxu1 }
 0x4ac   : > { %3009 = vst [vmem:[%s6339_s16 + $0x18] sm:$0xff] %v2977_v32  ;;  %v3888_v6 = vadd.f32 %v2794_v49, %v6332_v10  ;;  %v2796_v37 = vpop.f32.mrb[22].mxu1 }
 0x4ad   : > { %v3887_v18 = vadd.f32 %v3886_v59, %v2905_v27  ;;  %v3890_v20 = vadd.f32 %v2796_v37, %v6328_v14  ;;  %v2798_v9 = vpop.f32.mrb[23].mxu1 }
 0x4ae   : > { %v3889_v17 = vadd.f32 %v3888_v6, %v2907_v8  ;;  %v3892_v25 = vadd.f32 %v2798_v9, %v6332_v10 }
 0x4af   : > { %v2978_v43 = vmax.f32 %v3887_v18, 0.0  ;;  %v3891_v30 = vadd.f32 %v3890_v20, %v2909_v0 }
 0x4b0   : > { %v2979_v51 = vmax.f32 %v3889_v17, 0.0  ;;  %v3893_v58 = vadd.f32 %v3892_v25, %v2911_v62 }
 0x4b1   : > { %3010 = vst [vmem:[%s6339_s16 + $0x20] sm:$0xff] %v2978_v43  ;;  %v2980_v3 = vmax.f32 %v3891_v30, 0.0 }
 0x4b2   : > { %3011 = vst [vmem:[%s6339_s16 + $0x28] sm:$0xff] %v2979_v51  ;;  %v2981_v22 = vmax.f32 %v3893_v58, 0.0  ;;  %v2802_v63 = vpop.f32.mrb[24].mxu1 }
 0x4b3   : > { %3012 = vst [vmem:[%s6339_s16 + $0x30] sm:$0xff] %v2980_v3  ;;  %v3894_v42 = vadd.f32 %v2802_v63, %v6328_v14  ;;  %v2804_v15 = vpop.f32.mrb[25].mxu1 }
 0x4b4   : > { %3013 = vst [vmem:[%s6339_s16 + $0x38] sm:$0xff] %v2981_v22  ;;  %v3896_v16 = vadd.f32 %v2804_v15, %v6332_v10  ;;  %v2806_v13 = vpop.f32.mrb[26].mxu1 }
 0x4b5   : > { %v3895_v41 = vadd.f32 %v3894_v42, %v2915_v50  ;;  %v3898_v55 = vadd.f32 %v2806_v13, %v6328_v14  ;;  %v2808_v7 = vpop.f32.mrb[27].mxu1 }
 0x4b6   : > { %v3897_v31 = vadd.f32 %v3896_v16, %v2917_v5  ;;  %v3900_v34 = vadd.f32 %v2808_v7, %v6332_v10 }
 0x4b7   : > { %v2982_v21 = vmax.f32 %v3895_v41, 0.0  ;;  %v3899_v36 = vadd.f32 %v3898_v55, %v2919_v28 }
 0x4b8   : > { %v2983_v11 = vmax.f32 %v3897_v31, 0.0  ;;  %v3901_v12 = vadd.f32 %v3900_v34, %v6313_v45 }
 0x4b9   : > { %3014 = vst [vmem:[%s6339_s16 + $0x40] sm:$0xff] %v2982_v21  ;;  %v2984_v26 = vmax.f32 %v3899_v36, 0.0 }
 0x4ba   : > { %3015 = vst [vmem:[%s6339_s16 + $0x48] sm:$0xff] %v2983_v11  ;;  %v2985_v27 = vmax.f32 %v3901_v12, 0.0  ;;  %v2812_v8 = vpop.f32.mrb[28].mxu1 }
 0x4bb   : > { %3016 = vst [vmem:[%s6339_s16 + $0x50] sm:$0xff] %v2984_v26  ;;  %v3902_v0 = vadd.f32 %v2812_v8, %v6328_v14  ;;  %v2814_v62 = vpop.f32.mrb[29].mxu1 }
 0x4bc   : > { %3017 = vst [vmem:[%s6339_s16 + $0x58] sm:$0xff] %v2985_v27  ;;  %v3904_v50 = vadd.f32 %v2814_v62, %v6332_v10  ;;  %v2816_v5 = vpop.f32.mrb[30].mxu1 }
 0x4bd   : > { %v3903_v28 = vadd.f32 %v3902_v0, %v6315_v23  ;;  %v3906_v45 = vadd.f32 %v2816_v5, %v6328_v14  ;;  %v2818_v46 = vpop.f32.mrb[31].mxu1 }
 0x4be   : > { %v3905_v2 = vadd.f32 %v3904_v50, %v6317_v38  ;;  %v3908_v60 = vadd.f32 %v2818_v46, %v6332_v10 }
 0x4bf   : > { %v2986_v4 = vmax.f32 %v3903_v28, 0.0  ;;  %v3907_v40 = vadd.f32 %v3906_v45, %v6319_v35 }
 0x4c0   : > { %v2987_v29 = vmax.f32 %v3905_v2, 0.0  ;;  %v3909_v47 = vadd.f32 %v3908_v60, %v6321_v54 }
 0x4c1   : > { %3018 = vst [vmem:[%s6339_s16 + $0x60] sm:$0xff] %v2986_v4  ;;  %v2988_v19 = vmax.f32 %v3907_v40, 0.0 }
 0x4c2   : > { %3019 = vst [vmem:[%s6339_s16 + $0x68] sm:$0xff] %v2987_v29  ;;  %v2989_v39 = vmax.f32 %v3909_v47, 0.0 }
 0x4c3   : > { %3020 = vst [vmem:[%s6339_s16 + $0x70] sm:$0xff] %v2988_v19 }
 0x4c4   : > { %3021 = vst [vmem:[%s6339_s16 + $0x78] sm:$0xff] %v2989_v39 }
 0x4e2   : > { %v2935_v23 = vpop.f32.mrb[32].mxu1 }
 0x4e3   : > { %v3910_v38 = vadd.f32 %v2935_v23, %v6328_v14  ;;  %v2937_v52 = vpop.f32.mrb[33].mxu1 }
 0x4e4   : > { %v3911_v61 = vadd.f32 %v2937_v52, %v6332_v10  ;;  %v2939_v35 = vpop.f32.mrb[34].mxu1 }
 0x4e5   : > { %v2990_v24 = vmax.f32 %v3910_v38, 0.0  ;;  %v3912_v54 = vadd.f32 %v2939_v35, %v6328_v14  ;;  %v2941_v33 = vpop.f32.mrb[35].mxu1 }
 0x4e6   : > { %v2991_v56 = vmax.f32 %v3911_v61, 0.0  ;;  %v3913_v57 = vadd.f32 %v2941_v33, %v6332_v10 }
 0x4e7   : > { %3022 = vst [vmem:[%s6339_s16 + $0x80] sm:$0xff] %v2990_v24  ;;  %v2992_v44 = vmax.f32 %v3912_v54, 0.0 }
 0x4e8   : > { %3023 = vst [vmem:[%s6339_s16 + $0x88] sm:$0xff] %v2991_v56  ;;  %v2993_v1 = vmax.f32 %v3913_v57, 0.0 }
 0x4e9   : > { %3024 = vst [vmem:[%s6339_s16 + $0x90] sm:$0xff] %v2992_v44 }
 0x4ea   : > { %3025 = vst [vmem:[%s6339_s16 + $0x98] sm:$0xff] %v2993_v1  ;;  %v2945_v53 = vpop.f32.mrb[36].mxu1 }
 0x4eb   : > { %v3914_v32 = vadd.f32 %v2945_v53, %v6328_v14  ;;  %v2947_v48 = vpop.f32.mrb[37].mxu1 }
 0x4ec   : > { %v3915_v59 = vadd.f32 %v2947_v48, %v6332_v10  ;;  %v2949_v49 = vpop.f32.mrb[38].mxu1 }
 0x4ed   : > { %v2994_v6 = vmax.f32 %v3914_v32, 0.0  ;;  %v3916_v37 = vadd.f32 %v2949_v49, %v6328_v14  ;;  %v2951_v18 = vpop.f32.mrb[39].mxu1 }
 0x4ee   : > { %v2995_v20 = vmax.f32 %v3915_v59, 0.0  ;;  %v3917_v9 = vadd.f32 %v2951_v18, %v6332_v10 }
 0x4ef   : > { %3026 = vst [vmem:[%s6339_s16 + $0xa0] sm:$0xff] %v2994_v6  ;;  %v2996_v17 = vmax.f32 %v3916_v37, 0.0 }
 0x4f0   : > { %3027 = vst [vmem:[%s6339_s16 + $0xa8] sm:$0xff] %v2995_v20  ;;  %v2997_v25 = vmax.f32 %v3917_v9, 0.0 }
 0x4f1   : > { %3028 = vst [vmem:[%s6339_s16 + $0xb0] sm:$0xff] %v2996_v17 }
 0x4f2   : > { %3029 = vst [vmem:[%s6339_s16 + $0xb8] sm:$0xff] %v2997_v25  ;;  %v2955_v43 = vpop.f32.mrb[40].mxu1 }
 0x4f3   : > { %v3918_v30 = vadd.f32 %v2955_v43, %v6328_v14  ;;  %v2957_v51 = vpop.f32.mrb[41].mxu1 }
 0x4f4   : > { %v3919_v58 = vadd.f32 %v2957_v51, %v6332_v10  ;;  %v2959_v3 = vpop.f32.mrb[42].mxu1 }
 0x4f5   : > { %v2998_v22 = vmax.f32 %v3918_v30, 0.0  ;;  %v3920_v63 = vadd.f32 %v2959_v3, %v6328_v14  ;;  %v2961_v42 = vpop.f32.mrb[43].mxu1 }
 0x4f6   : > { %v2999_v15 = vmax.f32 %v3919_v58, 0.0  ;;  %v3921_v16 = vadd.f32 %v2961_v42, %v6332_v10 }
 0x4f7   : > { %3030 = vst [vmem:[%s6339_s16 + $0xc0] sm:$0xff] %v2998_v22  ;;  %v3000_v13 = vmax.f32 %v3920_v63, 0.0 }
 0x4f8   : > { %3031 = vst [vmem:[%s6339_s16 + $0xc8] sm:$0xff] %v2999_v15  ;;  %v3001_v41 = vmax.f32 %v3921_v16, 0.0 }
 0x4f9   : > { %3032 = vst [vmem:[%s6339_s16 + $0xd0] sm:$0xff] %v3000_v13 }
 0x4fa   : > { %3033 = vst [vmem:[%s6339_s16 + $0xd8] sm:$0xff] %v3001_v41  ;;  %v2965_v55 = vpop.f32.mrb[44].mxu1 }
 0x4fb   : > { %v3922_v7 = vadd.f32 %v2965_v55, %v6328_v14  ;;  %v2967_v31 = vpop.f32.mrb[45].mxu1 }
 0x4fc   : > { %v3923_v34 = vadd.f32 %v2967_v31, %v6332_v10  ;;  %v2969_v21 = vpop.f32.mrb[46].mxu1 }
 0x4fd   : > { %v3002_v36 = vmax.f32 %v3922_v7, 0.0  ;;  %v3924_v11 = vadd.f32 %v2969_v21, %v6328_v14  ;;  %v2971_v12 = vpop.f32.mrb[47].mxu1 }
 0x4fe   : > { %v3003_v26 = vmax.f32 %v3923_v34, 0.0  ;;  %v3925_v27 = vadd.f32 %v2971_v12, %v6332_v10 }
 0x4ff   : > { %3034 = vst [vmem:[%s6339_s16 + $0xe0] sm:$0xff] %v3002_v36  ;;  %v3004_v8 = vmax.f32 %v3924_v11, 0.0 }
 0x500   : > { %3035 = vst [vmem:[%s6339_s16 + $0xe8] sm:$0xff] %v3003_v26  ;;  %v3005_v0 = vmax.f32 %v3925_v27, 0.0 }
 0x501   : > { %3036 = vst [vmem:[%s6339_s16 + $0xf0] sm:$0xff] %v3004_v8 }
 0x502   : > { %3037 = vst [vmem:[%s6339_s16 + $0xf8] sm:$0xff] %v3005_v0 }
 0x503   : > { %4460 = shalt.err (!%p4457_p4)
}
 0x504   : > { %s4461_s18 = scalar_lea.hbm %s6408_s11, 4096  ;;  %s4465_s20 = scalar_lea.hbm %s6465_s8, 8192 }
 0x505   : > { %p4462_p9 = scmp.ne.s32.totalorder %s6408_s11, %s4461_s18  ;;  %p4466_p8 = scmp.lt.u32.totalorder %s6408_s11, %s6465_s8 }
 0x506   : > { %p4467_p13 = scmp.lt.u32.totalorder %s4465_s20, %s4461_s18  ;;  %p4469_p10 = scmp.lt.u32.totalorder %s4461_s18, %s6408_s11 }
 0x507   : > { %p4463_p0 = pnand %p4462_p9, %p4728_p5 }
 0x508   : > { %p4468_p6 = por %p4467_p13, %p4466_p8 }
 0x509   : > { %p4464_p11 = pneg %p4463_p0 }
 0x50a   : > { %p4470_p3 = por %p4469_p10, %p4468_p6 }
 0x50c   : > { %p4471_p7 = pnand %p4470_p3, %p4464_p11 }
 0x50e   : > { %4474 = shalt.err (!%p4471_p7)
}
 0x50f   : > { %s4533_s23 = smov 256   ;;  %s4534_s26 = smov 16  }
 0x510   : > { %4020 = dma.vmem_to_hbm [thread:$0]  (%p4728_p5), %s6410_s25, 4096, %s6408_s11, %s3039_s9, %s4533_s23, %s4533_s23, %s4534_s26  }
 0x511 PF: > { %s6951_s13 = sld [smem:[#allocation15_spill]]  ;;  %s6952_s14 = sld [smem:[#allocation16_spill]] }
 0x512   : > { %p6954_p2 = scmp.ge.s32.totalorder %s4521_s30, 2 }
 0x517   : > { %s3068_s12 = sand.u32 1, %s6951_s13   ;;  %p6953_p12 = scmp.ne.s32.totalorder %s6952_s14, 0 }
 0x518   : > { %s3069_s10 = scalar_lea.sflag [#allocation4], %s3068_s12 }
 0x519   : > { %p4037_p1 = pnand %p6954_p2, %p6953_p12 }
 0x51b   : > { %4504 = dma.done.wait (!%p4037_p1), %s3069_s10, 4096  }
 0x51c   : > { %4506 = vsyncadd (!%p4037_p1), %s3069_s10, 4294963200  ;;  %p23_p4 = scmp.ge.s32.totalorder %s4693_s22, 4   ;;  %s6955_s27 = smov %s4513_s28 }
 0x51d   : > { %s6956_s28 = smov %s4517_s29  ;;  %s6957_s29 = smov %s4724_s17 }
 0x51e   : > { %s6958_s30 = smov %s4693_s22  ;;  %25 = sbr.rel (!%p23_p4) target bundleno = 9 (0x9), region = 109 }
 0x525   :  { %3074 = vsyncpa [#allocation3], 1 }
 0x526   :  { %3076 = vsyncpa [#allocation3 + $0x1], 1 }
 0x527   :  { %3077 = vsyncpa [#allocation6], 1 }
 0x528   :  { %3078 = vsyncpa [#allocation9], 1 }
 0x529   :  { %3079 = vsyncpa [#allocation4], 1 }
 0x52a   :  { %3081 = vsyncpa [#allocation4 + $0x1], 1 }

</bundles_post_ra>
